<compile_context>
chip_gen: v5e
topology: v5e:2x2
jax: 0.10.0
libtpu: 0.0.40
codegen_flags: <defaults>
</compile_context>

<pallas_src>
import functools

import jax
import jax.numpy as jnp
from jax.experimental import pallas as pl
from jax.experimental.pallas import tpu as pltpu


def _round_up(v, m):
    return (v + m - 1) // m * m


# --------------------------------------------------------------------------
# Kernel 1: GCN encoder  z = A_hat @ (ELU(BN(A_hat @ (X W1) + b1)) W2) + b2
# All operands are zero-padded to 128 lanes; node rows may be padded to a
# multiple of 8 (node_mask marks real nodes for the BatchNorm statistics).
# --------------------------------------------------------------------------
def gcn_encoder_kernel(x_ref, a_ref, nmask_ref, w1_ref, b1_ref, gamma_ref,
                       beta_ref, w2_ref, b2_ref, z_ref, *, inv_n):
    x = x_ref[...]
    a = a_ref[...]
    nmask = nmask_ref[...]                       # (Np, 1), 1.0 for real nodes
    # GCN layer 1
    h = jnp.dot(a, jnp.dot(x, w1_ref[...], preferred_element_type=jnp.float32),
                preferred_element_type=jnp.float32) + b1_ref[...]
    # BatchNorm1d (training-mode batch stats over the real nodes, biased var)
    mean = jnp.sum(h * nmask, axis=0, keepdims=True) * inv_n
    cen = (h - mean) * nmask
    var = jnp.sum(cen * cen, axis=0, keepdims=True) * inv_n
    h = (h - mean) * jax.lax.rsqrt(var + 1e-5) * gamma_ref[...] + beta_ref[...]
    # ELU
    h = jnp.where(h > 0, h, jnp.exp(h) - 1.0)
    # GCN layer 2 (padded lane columns of z stay exactly zero)
    z_ref[...] = jnp.dot(
        a, jnp.dot(h, w2_ref[...], preferred_element_type=jnp.float32),
        preferred_element_type=jnp.float32) + b2_ref[...]


# --------------------------------------------------------------------------
# Kernel 2: fused transformer encoder stack + u_mlp + FeatureDecoder.
# One grid step per graph.  All per-layer weights arrive stacked:
#   w_ref : (L, 6, P, P)   [wq, wk, wv, wo, w1, w2]   (head-packed qkv/o)
#   v_ref : (L, 16, P)     [bq, bk, bv, bo, b1, b2, g1, be1, g2, be2, 0...]
#   wh_ref: (4, P, P)      [wu1, wu2, wf1, wf2]
#   vh_ref: (8, P)         [bu1, bu2, bf1, bf2, 0...]
# Padded lanes of the activations are kept exactly zero throughout.
# --------------------------------------------------------------------------
def fused_transformer_kernel(src_ref, mask_ref, w_ref, v_ref, wh_ref, vh_ref,
                             out_ref, xr_ref, *, nhead, num_layers,
                             d_real, dh_real):
    x = src_ref[0]                               # (S, P), lanes >= d_real zero
    key_pad = mask_ref[0]                        # (1, S), 1.0 where key is pad
    S, P = x.shape
    dh_pad = P // nhead
    scale = 1.0 / float(dh_real) ** 0.5
    inv_d = 1.0 / float(d_real)

    lane = jax.lax.broadcasted_iota(jnp.int32, (1, P), 1)
    fmask = (lane < d_real).astype(jnp.float32)  # real-feature lane mask

    neg = (key_pad * (-1e9))[None]               # (1, 1, S) additive mask, fp32

    def layer_norm(y, g, b):
        # LayerNorm over the real d_model lanes only; padded lanes stay zero.
        mu = jnp.sum(y * fmask, axis=-1, keepdims=True) * inv_d
        c = (y - mu) * fmask
        var = jnp.sum(c * c, axis=-1, keepdims=True) * inv_d
        return c * jax.lax.rsqrt(var + 1e-5) * g + b

    def split_heads(t):                          # (S, P) -> (H, S, dh_pad)
        return jnp.swapaxes(t.reshape(S, nhead, dh_pad), 0, 1)

    for l in range(num_layers):
        vl = v_ref[l]                            # (16, P)
        bq, bk, bv, bo = vl[0:1], vl[1:2], vl[2:3], vl[3:4]
        b1, b2 = vl[4:5], vl[5:6]
        g1, be1, g2, be2 = vl[6:7], vl[7:8], vl[8:9], vl[9:10]

        q = split_heads(
            jnp.dot(x, w_ref[l, 0], preferred_element_type=jnp.float32) + bq)
        k = split_heads(
            jnp.dot(x, w_ref[l, 1], preferred_element_type=jnp.float32) + bk)
        v = split_heads(
            jnp.dot(x, w_ref[l, 2], preferred_element_type=jnp.float32) + bv)

        s = jnp.einsum('hqd,hkd->hqk', q, k,
                       preferred_element_type=jnp.float32) * scale + neg
        s = s - jnp.max(s, axis=-1, keepdims=True)
        p = jnp.exp(s)
        p = p * pl.reciprocal(jnp.sum(p, axis=-1, keepdims=True), approx=True)
        ctx = jnp.einsum('hqk,hkd->hqd', p, v,
                         preferred_element_type=jnp.float32)   # (H, S, dh_pad)
        ctx = jnp.swapaxes(ctx, 0, 1).reshape(S, P)             # head-packed

        attn = jnp.dot(ctx, w_ref[l, 3],
                       preferred_element_type=jnp.float32) + bo
        x = layer_norm(x + attn, g1, be1)        # dropout == identity

        ff = jnp.dot(x, w_ref[l, 4], preferred_element_type=jnp.float32) + b1
        ff = jnp.maximum(ff, 0.0)                # relu
        ff = jnp.dot(ff, w_ref[l, 5], preferred_element_type=jnp.float32) + b2
        x = layer_norm(x + ff, g2, be2)          # dropout == identity

    out_ref[0] = x

    # u_mlp (Linear-ReLU-Linear) + FeatureDecoder (Linear-LeakyReLU-Linear),
    # applied position-wise to every row; pad / CLS rows are sliced away later.
    vh = vh_ref[...]                             # (8, P)
    h = jnp.maximum(
        jnp.dot(x, wh_ref[0], preferred_element_type=jnp.float32) + vh[0:1],
        0.0)
    u = jnp.dot(h, wh_ref[1], preferred_element_type=jnp.float32) + vh[1:2]
    f = jnp.dot(u, wh_ref[2], preferred_element_type=jnp.float32) + vh[2:3]
    f = jnp.where(f > 0, f, 0.1 * f)             # LeakyReLU(0.1)
    xr_ref[0] = jnp.dot(f, wh_ref[3],
                        preferred_element_type=jnp.float32) + vh[3:4]


# --------------------------------------------------------------------------
# Wrappers
# --------------------------------------------------------------------------
def gcn_encoder(x_pad, a_hat, node_mask, gp, n_real):
    n_pad, pad = x_pad.shape
    return pl.pallas_call(
        functools.partial(gcn_encoder_kernel, inv_n=1.0 / float(n_real)),
        out_shape=jax.ShapeDtypeStruct((n_pad, pad), jnp.float32),
        compiler_params=pltpu.CompilerParams(
            vmem_limit_bytes=32 * 1024 * 1024),
    )(x_pad, a_hat, node_mask, gp["w1"], gp["b1"], gp["gamma"], gp["beta"],
      gp["w2"], gp["b2"])


def fused_transformer(src, mask_f, tp, *, nhead, num_layers, d_real, dh_real):
    b, s_pad, pad = src.shape
    W, V, WH, VH = tp["W"], tp["V"], tp["WH"], tp["VH"]
    kernel = functools.partial(fused_transformer_kernel, nhead=nhead,
                               num_layers=num_layers, d_real=d_real,
                               dh_real=dh_real)
    out, xr = pl.pallas_call(
        kernel,
        grid=(b,),
        in_specs=[
            pl.BlockSpec((1, s_pad, pad), lambda i: (i, 0, 0)),  # src per graph
            pl.BlockSpec((1, 1, s_pad), lambda i: (i, 0, 0)),    # key-pad mask
            pl.BlockSpec(W.shape, lambda i: (0, 0, 0, 0)),       # stacked W
            pl.BlockSpec(V.shape, lambda i: (0, 0, 0)),          # stacked vecs
            pl.BlockSpec(WH.shape, lambda i: (0, 0, 0)),         # head weights
            pl.BlockSpec(VH.shape, lambda i: (0, 0)),            # head biases
        ],
        out_specs=[
            pl.BlockSpec((1, s_pad, pad), lambda i: (i, 0, 0)),  # transformer out
            pl.BlockSpec((1, s_pad, pad), lambda i: (i, 0, 0)),  # x_recon rows
        ],
        out_shape=(jax.ShapeDtypeStruct((b, s_pad, pad), jnp.float32),
                   jax.ShapeDtypeStruct((b, s_pad, pad), jnp.float32)),
        input_output_aliases={0: 0},             # donate src into the output
        compiler_params=pltpu.CompilerParams(
            dimension_semantics=("parallel",)),  # 2 TCs on v7x; serial on v5e/v6e
    )(src, mask_f, W, V, WH, VH)
    return out, xr


# --------------------------------------------------------------------------
# Parameter init (deterministic, synthetic) with lane padding / head packing
# --------------------------------------------------------------------------
def init_params(key, num_features, hidden, nhead, num_layers):
    pad = max(128, _round_up(max(hidden, 4 * hidden, num_features), 128))
    dh = hidden // nhead
    dh_pad = pad // nhead
    assert pad % nhead == 0 and dh_pad >= dh

    ks = iter(jax.random.split(key, 64))

    def lin(k, fi, fo):
        return jax.random.normal(k, (fi, fo), jnp.float32) / jnp.sqrt(
            jnp.float32(fi))

    def pad2(w):
        return jnp.zeros((pad, pad), jnp.float32).at[
            :w.shape[0], :w.shape[1]].set(w)

    def vec_pad(v):
        return jnp.zeros((pad,), jnp.float32).at[:v.shape[0]].set(v)

    def pack_qkv_w(w):
        # column block of head h -> lanes [h*dh_pad, h*dh_pad+dh)
        out = jnp.zeros((pad, pad), jnp.float32)
        for h in range(nhead):
            out = out.at[:hidden, h * dh_pad:h * dh_pad + dh].set(
                w[:, h * dh:(h + 1) * dh])
        return out

    def pack_qkv_b(b):
        out = jnp.zeros((pad,), jnp.float32)
        for h in range(nhead):
            out = out.at[h * dh_pad:h * dh_pad + dh].set(
                b[h * dh:(h + 1) * dh])
        return out

    def pack_o_w(w):
        # rows reindexed from the head-packed ctx layout
        out = jnp.zeros((pad, pad), jnp.float32)
        for h in range(nhead):
            out = out.at[h * dh_pad:h * dh_pad + dh, :hidden].set(
                w[h * dh:(h + 1) * dh, :])
        return out

    # GCN encoder
    gcn = dict(
        w1=pad2(lin(next(ks), num_features, hidden)),
        b1=jnp.zeros((1, pad), jnp.float32),
        gamma=vec_pad(jnp.ones((hidden,), jnp.float32))[None, :],
        beta=jnp.zeros((1, pad), jnp.float32),
        w2=pad2(lin(next(ks), hidden, hidden)),
        b2=jnp.zeros((1, pad), jnp.float32),
    )
    cls_token = vec_pad(
        jax.random.normal(next(ks), (hidden,), jnp.float32))[None, :]

    # Transformer layers -> single stacked slabs
    ff = hidden * 4
    W_layers, V_layers = [], []
    for _ in range(num_layers):
        wq = lin(next(ks), hidden, hidden)
        wk = lin(next(ks), hidden, hidden)
        wv = lin(next(ks), hidden, hidden)
        wo = lin(next(ks), hidden, hidden)
        w1 = lin(next(ks), hidden, ff)
        w2 = lin(next(ks), ff, hidden)
        W_layers.append(jnp.stack(
            [pack_qkv_w(wq), pack_qkv_w(wk), pack_qkv_w(wv),
             pack_o_w(wo), pad2(w1), pad2(w2)]))                 # (6, P, P)
        rows = [pack_qkv_b(jnp.zeros((hidden,), jnp.float32)),   # bq
                pack_qkv_b(jnp.zeros((hidden,), jnp.float32)),   # bk
                pack_qkv_b(jnp.zeros((hidden,), jnp.float32)),   # bv
                vec_pad(jnp.zeros((hidden,), jnp.float32)),      # bo
                vec_pad(jnp.zeros((ff,), jnp.float32)),          # b1
                vec_pad(jnp.zeros((hidden,), jnp.float32)),      # b2
                vec_pad(jnp.ones((hidden,), jnp.float32)),       # g1
                vec_pad(jnp.zeros((hidden,), jnp.float32)),      # be1
                vec_pad(jnp.ones((hidden,), jnp.float32)),       # g2
                vec_pad(jnp.zeros((hidden,), jnp.float32))]      # be2
        rows += [jnp.zeros((pad,), jnp.float32)] * 6
        V_layers.append(jnp.stack(rows))                         # (16, P)
    trans = dict(
        W=jnp.stack(W_layers),                                   # (L, 6, P, P)
        V=jnp.stack(V_layers),                                   # (L, 16, P)
        WH=jnp.stack([pad2(lin(next(ks), hidden, hidden)),       # wu1
                      pad2(lin(next(ks), hidden, hidden)),       # wu2
                      pad2(lin(next(ks), hidden, hidden // 2)),  # wf1
                      pad2(lin(next(ks), hidden // 2, num_features))]),  # wf2
        VH=jnp.stack([vec_pad(jnp.zeros((hidden,), jnp.float32)),
                      vec_pad(jnp.zeros((hidden,), jnp.float32)),
                      vec_pad(jnp.zeros((hidden // 2,), jnp.float32)),
                      vec_pad(jnp.zeros((num_features,), jnp.float32))]
                     + [jnp.zeros((pad,), jnp.float32)] * 4),    # (8, P)
    )
    stats = dict(ws=lin(next(ks), hidden, 5),
                 bs=jnp.zeros((1, 5), jnp.float32))
    return dict(gcn=gcn, cls_token=cls_token, trans=trans, stats=stats)


# --------------------------------------------------------------------------
# Glue: GCN-normalized dense adjacency from (masked) edge list (padded nodes
# get zero rows/cols, no self loops).
# --------------------------------------------------------------------------
def normalized_adjacency(edge_index, keep, num_nodes, n_pad):
    a = jnp.zeros((n_pad, n_pad), jnp.float32)
    a = a.at[edge_index[0], edge_index[1]].add(keep.astype(jnp.float32))
    a = jnp.minimum(a, 1.0)
    self_loops = (jnp.arange(n_pad) < num_nodes).astype(jnp.float32)
    a = a + jnp.diag(self_loops)
    deg = jnp.sum(a, axis=1)
    dinv = jnp.where(deg > 0.0, jax.lax.rsqrt(jnp.maximum(deg, 1e-12)), 0.0)
    return dinv[:, None] * a * dinv[None, :]


# --------------------------------------------------------------------------
# Full forward (is_pretrain=False path)
# --------------------------------------------------------------------------
@functools.partial(jax.jit, static_argnames=("graph_sizes", "nhead", "hidden"))
def graph_autoencoder_forward(params, x, edge_index, mask_key, *, graph_sizes,
                              nhead, hidden):
    n, num_features = x.shape
    pad = params["gcn"]["w1"].shape[1]
    num_layers = params["trans"]["W"].shape[0]
    n_pad = _round_up(n, 8)

    # deterministic Bernoulli edge mask (EdgeMasking-style, p=0.7 masked)
    keep = jax.random.uniform(mask_key, (edge_index.shape[1],)) > 0.7
    a_hat = normalized_adjacency(edge_index, keep, n, n_pad)

    x_pad = jnp.zeros((n_pad, pad), jnp.float32).at[:n, :num_features].set(x)
    node_mask = (jnp.arange(n_pad) < n).astype(jnp.float32)[:, None]

    # 1) GCN encoder (Pallas kernel)
    z = gcn_encoder(x_pad, a_hat, node_mask, params["gcn"], n)   # (n_pad, P)

    # 2) BatchUtils.process_batch + add_cls_token (glue, static graph sizes),
    #    with S rounded up to a sublane multiple.
    max_nodes_in_batch = max(graph_sizes)
    s_pad = _round_up(max_nodes_in_batch + 1, 8)
    rows, masks = [], []
    start = 0
    for g in graph_sizes:
        zg = z[start:start + g]
        tail = jnp.zeros((s_pad - 1 - g, pad), jnp.float32)
        rows.append(jnp.concatenate([params["cls_token"], zg, tail], axis=0))
        masks.append(jnp.concatenate(
            [jnp.zeros((1 + g,), jnp.float32),
             jnp.ones((s_pad - 1 - g,), jnp.float32)]))
        start += g
    src = jnp.stack(rows)                                   # (B, S, P)
    mask_f = jnp.stack(masks)[:, None, :]                   # (B, 1, S)

    # 3) fused transformer stack + node heads (single Pallas kernel)
    out, xr = fused_transformer(src, mask_f, params["trans"], nhead=nhead,
                                num_layers=num_layers, d_real=hidden,
                                dh_real=hidden // nhead)

    # 4) un-pad (glue)
    cls_output = out[:, 0, :hidden]                         # (B, H)
    node_outs = [xr[i, 1:1 + g, :num_features]
                 for i, g in enumerate(graph_sizes)]
    x_recon = jnp.concatenate(node_outs, axis=0)            # (N, F)

    # 5) stats predictor (tiny -> plain JAX per perf review)
    stats_pred = cls_output @ params["stats"]["ws"] + params["stats"]["bs"]
    return cls_output, x_recon, stats_pred


# --------------------------------------------------------------------------
if __name__ == "__main__":
    num_features = 16
    hidden = 32            # hidden_dims[-1]
    nhead = 4
    num_layers = 2
    graph_sizes = (7, 9)   # two graphs in the batch
    num_graphs = len(graph_sizes)
    num_nodes = sum(graph_sizes)

    key = jax.random.PRNGKey(0)
    k_par, k_x, k_mask = jax.random.split(key, 3)

    params = init_params(k_par, num_features, hidden, nhead, num_layers)

    # node features
    x = jax.random.normal(k_x, (num_nodes, num_features), jnp.float32)

    # bidirectional ring edges per graph
    src_list, dst_list = [], []
    off = 0
    for n in graph_sizes:
        for i in range(n):
            j = (i + 1) % n
            src_list += [off + i, off + j]
            dst_list += [off + j, off + i]
        off += n
    edge_index = jnp.array([src_list, dst_list], dtype=jnp.int32)   # (2, E)

    cls_out, x_recon, stats_pred = graph_autoencoder_forward(
        params, x, edge_index, k_mask,
        graph_sizes=graph_sizes, nhead=nhead, hidden=hidden)

    jax.block_until_ready((cls_out, x_recon, stats_pred))
    assert cls_out.shape == (num_graphs, hidden)
    assert x_recon.shape == (num_nodes, num_features)
    assert stats_pred.shape == (num_graphs, 5)
    print("KERNEL_OK")
</pallas_src>

<mosaic_0001>
module attributes {stable_mosaic.version = 11 : i64} {
  func.func @gcn_encoder_kernel(%arg0: memref<16x128xf32, #tpu.memory_space<vmem>>, %arg1: memref<16x16xf32, #tpu.memory_space<vmem>>, %arg2: memref<16x1xf32, #tpu.memory_space<vmem>>, %arg3: memref<128x128xf32, #tpu.memory_space<vmem>>, %arg4: memref<1x128xf32, #tpu.memory_space<vmem>>, %arg5: memref<1x128xf32, #tpu.memory_space<vmem>>, %arg6: memref<1x128xf32, #tpu.memory_space<vmem>>, %arg7: memref<128x128xf32, #tpu.memory_space<vmem>>, %arg8: memref<1x128xf32, #tpu.memory_space<vmem>>, %arg9: memref<16x128xf32, #tpu.memory_space<vmem>>) attributes {dimension_semantics = [], scalar_prefetch = 0 : i64, scratch_operands = 0 : i64, tpu.core_type = #tpu.core_type<tc>} {
    %c0 = arith.constant 0 : index
    %c0_0 = arith.constant 0 : index
    %0 = vector.load %arg0[%c0, %c0_0] : memref<16x128xf32, #tpu.memory_space<vmem>>, vector<16x128xf32>
    %c0_1 = arith.constant 0 : index
    %c0_2 = arith.constant 0 : index
    %1 = vector.load %arg1[%c0_1, %c0_2] : memref<16x16xf32, #tpu.memory_space<vmem>>, vector<16x16xf32>
    %c0_3 = arith.constant 0 : index
    %c0_4 = arith.constant 0 : index
    %2 = vector.load %arg2[%c0_3, %c0_4] : memref<16x1xf32, #tpu.memory_space<vmem>>, vector<16x1xf32>
    %c0_5 = arith.constant 0 : index
    %c0_6 = arith.constant 0 : index
    %3 = vector.load %arg3[%c0_5, %c0_6] : memref<128x128xf32, #tpu.memory_space<vmem>>, vector<128x128xf32>
    %cst = arith.constant dense<0.000000e+00> : vector<16x128xf32>
    %4 = tpu.matmul %0, %3, %cst {dimension_numbers = #tpu.dot_dimension_numbers<[1], [0], [0], [1], [0, 0, 1, 1], [], []>} : vector<16x128xf32>, vector<128x128xf32>, vector<16x128xf32> -> vector<16x128xf32>
    %cst_7 = arith.constant dense<0.000000e+00> : vector<16x128xf32>
    %5 = tpu.matmul %1, %4, %cst_7 {dimension_numbers = #tpu.dot_dimension_numbers<[1], [0], [0], [1], [0, 0, 1, 1], [], []>} : vector<16x16xf32>, vector<16x128xf32>, vector<16x128xf32> -> vector<16x128xf32>
    %c0_8 = arith.constant 0 : index
    %c0_9 = arith.constant 0 : index
    %6 = vector.load %arg4[%c0_8, %c0_9] : memref<1x128xf32, #tpu.memory_space<vmem>>, vector<1x128xf32>
    %7 = vector.broadcast %6 : vector<1x128xf32> to vector<16x128xf32>
    %8 = arith.addf %5, %7 : vector<16x128xf32>
    %9 = vector.broadcast %2 : vector<16x1xf32> to vector<16x128xf32>
    %10 = arith.mulf %8, %9 : vector<16x128xf32>
    %cst_10 = arith.constant dense<0.000000e+00> : vector<128xf32>
    %11 = vector.multi_reduction <add>, %10, %cst_10 [0] : vector<16x128xf32> to vector<128xf32>
    %12 = vector.shape_cast %11 : vector<128xf32> to vector<1x128xf32>
    %cst_11 = arith.constant 6.250000e-02 : f32
    %13 = vector.broadcast %cst_11 : f32 to vector<1x128xf32>
    %14 = arith.mulf %12, %13 : vector<1x128xf32>
    %15 = vector.broadcast %14 : vector<1x128xf32> to vector<16x128xf32>
    %16 = arith.subf %8, %15 : vector<16x128xf32>
    %17 = vector.broadcast %2 : vector<16x1xf32> to vector<16x128xf32>
    %18 = arith.mulf %16, %17 : vector<16x128xf32>
    %19 = arith.mulf %18, %18 : vector<16x128xf32>
    %cst_12 = arith.constant dense<0.000000e+00> : vector<128xf32>
    %20 = vector.multi_reduction <add>, %19, %cst_12 [0] : vector<16x128xf32> to vector<128xf32>
    %21 = vector.shape_cast %20 : vector<128xf32> to vector<1x128xf32>
    %cst_13 = arith.constant 6.250000e-02 : f32
    %22 = vector.broadcast %cst_13 : f32 to vector<1x128xf32>
    %23 = arith.mulf %21, %22 : vector<1x128xf32>
    %24 = vector.broadcast %14 : vector<1x128xf32> to vector<16x128xf32>
    %25 = arith.subf %8, %24 : vector<16x128xf32>
    %cst_14 = arith.constant 9.99999974E-6 : f32
    %26 = vector.broadcast %cst_14 : f32 to vector<1x128xf32>
    %27 = arith.addf %23, %26 : vector<1x128xf32>
    %28 = math.rsqrt %27 : vector<1x128xf32>
    %29 = vector.broadcast %28 : vector<1x128xf32> to vector<16x128xf32>
    %30 = arith.mulf %25, %29 : vector<16x128xf32>
    %c0_15 = arith.constant 0 : index
    %c0_16 = arith.constant 0 : index
    %31 = vector.load %arg5[%c0_15, %c0_16] : memref<1x128xf32, #tpu.memory_space<vmem>>, vector<1x128xf32>
    %32 = vector.broadcast %31 : vector<1x128xf32> to vector<16x128xf32>
    %33 = arith.mulf %30, %32 : vector<16x128xf32>
    %c0_17 = arith.constant 0 : index
    %c0_18 = arith.constant 0 : index
    %34 = vector.load %arg6[%c0_17, %c0_18] : memref<1x128xf32, #tpu.memory_space<vmem>>, vector<1x128xf32>
    %35 = vector.broadcast %34 : vector<1x128xf32> to vector<16x128xf32>
    %36 = arith.addf %33, %35 : vector<16x128xf32>
    %cst_19 = arith.constant 0.000000e+00 : f32
    %37 = vector.broadcast %cst_19 : f32 to vector<16x128xf32>
    %38 = arith.cmpf ogt, %36, %37 : vector<16x128xf32>
    %39 = math.exp %36 : vector<16x128xf32>
    %cst_20 = arith.constant 1.000000e+00 : f32
    %40 = vector.broadcast %cst_20 : f32 to vector<16x128xf32>
    %41 = arith.subf %39, %40 : vector<16x128xf32>
    %42 = arith.select %38, %36, %41 : vector<16x128xi1>, vector<16x128xf32>
    %c0_21 = arith.constant 0 : index
    %c0_22 = arith.constant 0 : index
    %43 = vector.load %arg7[%c0_21, %c0_22] : memref<128x128xf32, #tpu.memory_space<vmem>>, vector<128x128xf32>
    %cst_23 = arith.constant dense<0.000000e+00> : vector<16x128xf32>
    %44 = tpu.matmul %42, %43, %cst_23 {dimension_numbers = #tpu.dot_dimension_numbers<[1], [0], [0], [1], [0, 0, 1, 1], [], []>} : vector<16x128xf32>, vector<128x128xf32>, vector<16x128xf32> -> vector<16x128xf32>
    %cst_24 = arith.constant dense<0.000000e+00> : vector<16x128xf32>
    %45 = tpu.matmul %1, %44, %cst_24 {dimension_numbers = #tpu.dot_dimension_numbers<[1], [0], [0], [1], [0, 0, 1, 1], [], []>} : vector<16x16xf32>, vector<16x128xf32>, vector<16x128xf32> -> vector<16x128xf32>
    %c0_25 = arith.constant 0 : index
    %c0_26 = arith.constant 0 : index
    %46 = vector.load %arg8[%c0_25, %c0_26] : memref<1x128xf32, #tpu.memory_space<vmem>>, vector<1x128xf32>
    %47 = vector.broadcast %46 : vector<1x128xf32> to vector<16x128xf32>
    %48 = arith.addf %45, %47 : vector<16x128xf32>
    %c0_27 = arith.constant 0 : index
    %c0_28 = arith.constant 0 : index
    %49 = vector.load %arg9[%c0_27, %c0_28] : memref<16x128xf32, #tpu.memory_space<vmem>>, vector<16x128xf32>
    tpu.vector_store %arg9[%c0_27, %c0_28], %48 {strides = array<i32>} : memref<16x128xf32, #tpu.memory_space<vmem>>, vector<16x128xf32>,
    return
  }
}

module attributes {stable_mosaic.version = 11 : i64} {
  func.func @fused_transformer_kernel(%arg0: i32, %arg1: memref<1x16x128xf32, #tpu.memory_space<vmem>>, %arg2: memref<1x1x16xf32, #tpu.memory_space<vmem>>, %arg3: memref<2x6x128x128xf32, #tpu.memory_space<vmem>>, %arg4: memref<2x16x128xf32, #tpu.memory_space<vmem>>, %arg5: memref<4x128x128xf32, #tpu.memory_space<vmem>>, %arg6: memref<8x128xf32, #tpu.memory_space<vmem>>, %arg7: memref<1x16x128xf32, #tpu.memory_space<vmem>>, %arg8: memref<1x16x128xf32, #tpu.memory_space<vmem>>) attributes {dimension_semantics = [#tpu.dimension_semantics<parallel>], iteration_bounds = array<i64: 2>, scalar_prefetch = 0 : i64, scratch_operands = 0 : i64, tpu.core_type = #tpu.core_type<tc>, window_params = [{transform_indices = @transform_0, window_bounds = array<i64: 1, 16, 128>}, {transform_indices = @transform_1, window_bounds = array<i64: 1, 1, 16>}, {pipeline_mode = #tpu.pipeline_mode<synchronous>, transform_indices = @transform_2, window_bounds = array<i64: 2, 6, 128, 128>}, {pipeline_mode = #tpu.pipeline_mode<synchronous>, transform_indices = @transform_3, window_bounds = array<i64: 2, 16, 128>}, {pipeline_mode = #tpu.pipeline_mode<synchronous>, transform_indices = @transform_4, window_bounds = array<i64: 4, 128, 128>}, {pipeline_mode = #tpu.pipeline_mode<synchronous>, transform_indices = @transform_5, window_bounds = array<i64: 8, 128>}, {transform_indices = @transform_6, window_bounds = array<i64: 1, 16, 128>}, {transform_indices = @transform_7, window_bounds = array<i64: 1, 16, 128>}]} {
    %c0 = arith.constant 0 : index
    %c0_0 = arith.constant 0 : index
    %c0_1 = arith.constant 0 : index
    %0 = vector.load %arg1[%c0, %c0_0, %c0_1] : memref<1x16x128xf32, #tpu.memory_space<vmem>>, vector<1x16x128xf32>
    %1 = vector.shape_cast %0 : vector<1x16x128xf32> to vector<16x128xf32>
    %c0_2 = arith.constant 0 : index
    %c0_3 = arith.constant 0 : index
    %c0_4 = arith.constant 0 : index
    %2 = vector.load %arg2[%c0_2, %c0_3, %c0_4] : memref<1x1x16xf32, #tpu.memory_space<vmem>>, vector<1x1x16xf32>
    %3 = vector.shape_cast %2 : vector<1x1x16xf32> to vector<1x16xf32>
    %4 = tpu.iota {dimensions = array<i32: 1>} : vector<1x128xi32>
    %c32_i32 = arith.constant 32 : i32
    %5 = vector.broadcast %c32_i32 : i32 to vector<1x128xi32>
    %6 = arith.cmpi slt, %4, %5 : vector<1x128xi32>
    %7 = arith.extui %6 : vector<1x128xi1> to vector<1x128xi32>
    %8 = arith.sitofp %7 : vector<1x128xi32> to vector<1x128xf32>
    %cst = arith.constant -1.000000e+09 : f32
    %9 = vector.broadcast %cst : f32 to vector<1x16xf32>
    %10 = arith.mulf %3, %9 : vector<1x16xf32>
    %11 = vector.shape_cast %10 : vector<1x16xf32> to vector<1x1x16xf32>
    %c0_5 = arith.constant 0 : index
    %c0_6 = arith.constant 0 : index
    %c0_7 = arith.constant 0 : index
    %12 = vector.load %arg4[%c0_5, %c0_6, %c0_7] : memref<2x16x128xf32, #tpu.memory_space<vmem>>, vector<1x16x128xf32>
    %13 = vector.shape_cast %12 : vector<1x16x128xf32> to vector<16x128xf32>
    %14 = vector.extract_strided_slice %13 {offsets = [0, 0], sizes = [1, 128], strides = [1, 1]} : vector<16x128xf32> to vector<1x128xf32>
    %15 = vector.extract_strided_slice %13 {offsets = [1, 0], sizes = [1, 128], strides = [1, 1]} : vector<16x128xf32> to vector<1x128xf32>
    %16 = vector.extract_strided_slice %13 {offsets = [2, 0], sizes = [1, 128], strides = [1, 1]} : vector<16x128xf32> to vector<1x128xf32>
    %17 = vector.extract_strided_slice %13 {offsets = [3, 0], sizes = [1, 128], strides = [1, 1]} : vector<16x128xf32> to vector<1x128xf32>
    %18 = vector.extract_strided_slice %13 {offsets = [4, 0], sizes = [1, 128], strides = [1, 1]} : vector<16x128xf32> to vector<1x128xf32>
    %19 = vector.extract_strided_slice %13 {offsets = [5, 0], sizes = [1, 128], strides = [1, 1]} : vector<16x128xf32> to vector<1x128xf32>
    %20 = vector.extract_strided_slice %13 {offsets = [6, 0], sizes = [1, 128], strides = [1, 1]} : vector<16x128xf32> to vector<1x128xf32>
    %21 = vector.extract_strided_slice %13 {offsets = [7, 0], sizes = [1, 128], strides = [1, 1]} : vector<16x128xf32> to vector<1x128xf32>
    %22 = vector.extract_strided_slice %13 {offsets = [8, 0], sizes = [1, 128], strides = [1, 1]} : vector<16x128xf32> to vector<1x128xf32>
    %23 = vector.extract_strided_slice %13 {offsets = [9, 0], sizes = [1, 128], strides = [1, 1]} : vector<16x128xf32> to vector<1x128xf32>
    %c0_8 = arith.constant 0 : index
    %c0_9 = arith.constant 0 : index
    %c0_10 = arith.constant 0 : index
    %c0_11 = arith.constant 0 : index
    %24 = vector.load %arg3[%c0_8, %c0_9, %c0_10, %c0_11] : memref<2x6x128x128xf32, #tpu.memory_space<vmem>>, vector<1x1x128x128xf32>
    %25 = vector.shape_cast %24 : vector<1x1x128x128xf32> to vector<128x128xf32>
    %cst_12 = arith.constant dense<0.000000e+00> : vector<16x128xf32>
    %26 = tpu.matmul %1, %25, %cst_12 {dimension_numbers = #tpu.dot_dimension_numbers<[1], [0], [0], [1], [0, 0, 1, 1], [], []>} : vector<16x128xf32>, vector<128x128xf32>, vector<16x128xf32> -> vector<16x128xf32>
    %27 = vector.broadcast %14 : vector<1x128xf32> to vector<16x128xf32>
    %28 = arith.addf %26, %27 : vector<16x128xf32>
    %29 = vector.shape_cast %28 : vector<16x128xf32> to vector<16x4x32xf32>
    %30 = tpu.transpose %29, [1, 0, 2] : vector<16x4x32xf32> -> vector<4x16x32xf32>
    %c0_13 = arith.constant 0 : index
    %c1 = arith.constant 1 : index
    %c0_14 = arith.constant 0 : index
    %c0_15 = arith.constant 0 : index
    %31 = vector.load %arg3[%c0_13, %c1, %c0_14, %c0_15] : memref<2x6x128x128xf32, #tpu.memory_space<vmem>>, vector<1x1x128x128xf32>
    %32 = vector.shape_cast %31 : vector<1x1x128x128xf32> to vector<128x128xf32>
    %cst_16 = arith.constant dense<0.000000e+00> : vector<16x128xf32>
    %33 = tpu.matmul %1, %32, %cst_16 {dimension_numbers = #tpu.dot_dimension_numbers<[1], [0], [0], [1], [0, 0, 1, 1], [], []>} : vector<16x128xf32>, vector<128x128xf32>, vector<16x128xf32> -> vector<16x128xf32>
    %34 = vector.broadcast %15 : vector<1x128xf32> to vector<16x128xf32>
    %35 = arith.addf %33, %34 : vector<16x128xf32>
    %36 = vector.shape_cast %35 : vector<16x128xf32> to vector<16x4x32xf32>
    %37 = tpu.transpose %36, [1, 0, 2] : vector<16x4x32xf32> -> vector<4x16x32xf32>
    %c0_17 = arith.constant 0 : index
    %c2 = arith.constant 2 : index
    %c0_18 = arith.constant 0 : index
    %c0_19 = arith.constant 0 : index
    %38 = vector.load %arg3[%c0_17, %c2, %c0_18, %c0_19] : memref<2x6x128x128xf32, #tpu.memory_space<vmem>>, vector<1x1x128x128xf32>
    %39 = vector.shape_cast %38 : vector<1x1x128x128xf32> to vector<128x128xf32>
    %cst_20 = arith.constant dense<0.000000e+00> : vector<16x128xf32>
    %40 = tpu.matmul %1, %39, %cst_20 {dimension_numbers = #tpu.dot_dimension_numbers<[1], [0], [0], [1], [0, 0, 1, 1], [], []>} : vector<16x128xf32>, vector<128x128xf32>, vector<16x128xf32> -> vector<16x128xf32>
    %41 = vector.broadcast %16 : vector<1x128xf32> to vector<16x128xf32>
    %42 = arith.addf %40, %41 : vector<16x128xf32>
    %43 = vector.shape_cast %42 : vector<16x128xf32> to vector<16x4x32xf32>
    %44 = tpu.transpose %43, [1, 0, 2] : vector<16x4x32xf32> -> vector<4x16x32xf32>
    "tpu.trace_start"() <{level = 10 : i32, message = "hqd,hkd->hqk"}> : () -> ()
    %cst_21 = arith.constant dense<0.000000e+00> : vector<4x16x16xf32>
    %45 = tpu.matmul %30, %37, %cst_21 {dimension_numbers = #tpu.dot_dimension_numbers<[2], [2], [1], [1], [0, 0, 0, 1, 1, 1], [0], [0]>} : vector<4x16x32xf32>, vector<4x16x32xf32>, vector<4x16x16xf32> -> vector<4x16x16xf32>
    "tpu.trace_stop"() : () -> ()
    %cst_22 = arith.constant 0.353553385 : f32
    %46 = vector.broadcast %cst_22 : f32 to vector<4x16x16xf32>
    %47 = arith.mulf %45, %46 : vector<4x16x16xf32>
    %48 = vector.broadcast %11 : vector<1x1x16xf32> to vector<4x16x16xf32>
    %49 = arith.addf %47, %48 : vector<4x16x16xf32>
    %cst_23 = arith.constant dense<0xFF800000> : vector<4x16xf32>
    %50 = vector.multi_reduction <maximumf>, %49, %cst_23 [2] : vector<4x16x16xf32> to vector<4x16xf32>
    %51 = vector.shape_cast %50 : vector<4x16xf32> to vector<4x16x1xf32>
    %52 = vector.broadcast %51 : vector<4x16x1xf32> to vector<4x16x16xf32>
    %53 = arith.subf %49, %52 : vector<4x16x16xf32>
    %54 = math.exp %53 : vector<4x16x16xf32>
    %cst_24 = arith.constant dense<0.000000e+00> : vector<4x16xf32>
    %55 = vector.multi_reduction <add>, %54, %cst_24 [2] : vector<4x16x16xf32> to vector<4x16xf32>
    %56 = vector.shape_cast %55 : vector<4x16xf32> to vector<4x16x1xf32>
    %57 = tpu.reciprocal %56 {approx = true} : vector<4x16x1xf32> -> vector<4x16x1xf32>
    %58 = vector.broadcast %57 : vector<4x16x1xf32> to vector<4x16x16xf32>
    %59 = arith.mulf %54, %58 : vector<4x16x16xf32>
    "tpu.trace_start"() <{level = 10 : i32, message = "hqk,hkd->hqd"}> : () -> ()
    %cst_25 = arith.constant dense<0.000000e+00> : vector<4x16x32xf32>
    %60 = tpu.matmul %59, %44, %cst_25 {dimension_numbers = #tpu.dot_dimension_numbers<[2], [1], [1], [2], [0, 0, 0, 1, 1, 2], [0], [0]>} : vector<4x16x16xf32>, vector<4x16x32xf32>, vector<4x16x32xf32> -> vector<4x16x32xf32>
    "tpu.trace_stop"() : () -> ()
    %61 = tpu.transpose %60, [1, 0, 2] : vector<4x16x32xf32> -> vector<16x4x32xf32>
    %62 = vector.shape_cast %61 : vector<16x4x32xf32> to vector<16x128xf32>
    %c0_26 = arith.constant 0 : index
    %c3 = arith.constant 3 : index
    %c0_27 = arith.constant 0 : index
    %c0_28 = arith.constant 0 : index
    %63 = vector.load %arg3[%c0_26, %c3, %c0_27, %c0_28] : memref<2x6x128x128xf32, #tpu.memory_space<vmem>>, vector<1x1x128x128xf32>
    %64 = vector.shape_cast %63 : vector<1x1x128x128xf32> to vector<128x128xf32>
    %cst_29 = arith.constant dense<0.000000e+00> : vector<16x128xf32>
    %65 = tpu.matmul %62, %64, %cst_29 {dimension_numbers = #tpu.dot_dimension_numbers<[1], [0], [0], [1], [0, 0, 1, 1], [], []>} : vector<16x128xf32>, vector<128x128xf32>, vector<16x128xf32> -> vector<16x128xf32>
    %66 = vector.broadcast %17 : vector<1x128xf32> to vector<16x128xf32>
    %67 = arith.addf %65, %66 : vector<16x128xf32>
    %68 = arith.addf %1, %67 : vector<16x128xf32>
    %69 = vector.broadcast %8 : vector<1x128xf32> to vector<16x128xf32>
    %70 = arith.mulf %68, %69 : vector<16x128xf32>
    %cst_30 = arith.constant dense<0.000000e+00> : vector<16xf32>
    %71 = vector.multi_reduction <add>, %70, %cst_30 [1] : vector<16x128xf32> to vector<16xf32>
    %72 = vector.shape_cast %71 : vector<16xf32> to vector<16x1xf32>
    %cst_31 = arith.constant 3.125000e-02 : f32
    %73 = vector.broadcast %cst_31 : f32 to vector<16x1xf32>
    %74 = arith.mulf %72, %73 : vector<16x1xf32>
    %75 = vector.broadcast %74 : vector<16x1xf32> to vector<16x128xf32>
    %76 = arith.subf %68, %75 : vector<16x128xf32>
    %77 = vector.broadcast %8 : vector<1x128xf32> to vector<16x128xf32>
    %78 = arith.mulf %76, %77 : vector<16x128xf32>
    %79 = arith.mulf %78, %78 : vector<16x128xf32>
    %cst_32 = arith.constant dense<0.000000e+00> : vector<16xf32>
    %80 = vector.multi_reduction <add>, %79, %cst_32 [1] : vector<16x128xf32> to vector<16xf32>
    %81 = vector.shape_cast %80 : vector<16xf32> to vector<16x1xf32>
    %cst_33 = arith.constant 3.125000e-02 : f32
    %82 = vector.broadcast %cst_33 : f32 to vector<16x1xf32>
    %83 = arith.mulf %81, %82 : vector<16x1xf32>
    %cst_34 = arith.constant 9.99999974E-6 : f32
    %84 = vector.broadcast %cst_34 : f32 to vector<16x1xf32>
    %85 = arith.addf %83, %84 : vector<16x1xf32>
    %86 = math.rsqrt %85 : vector<16x1xf32>
    %87 = vector.broadcast %86 : vector<16x1xf32> to vector<16x128xf32>
    %88 = arith.mulf %78, %87 : vector<16x128xf32>
    %89 = vector.broadcast %20 : vector<1x128xf32> to vector<16x128xf32>
    %90 = arith.mulf %88, %89 : vector<16x128xf32>
    %91 = vector.broadcast %21 : vector<1x128xf32> to vector<16x128xf32>
    %92 = arith.addf %90, %91 : vector<16x128xf32>
    %c0_35 = arith.constant 0 : index
    %c4 = arith.constant 4 : index
    %c0_36 = arith.constant 0 : index
    %c0_37 = arith.constant 0 : index
    %93 = vector.load %arg3[%c0_35, %c4, %c0_36, %c0_37] : memref<2x6x128x128xf32, #tpu.memory_space<vmem>>, vector<1x1x128x128xf32>
    %94 = vector.shape_cast %93 : vector<1x1x128x128xf32> to vector<128x128xf32>
    %cst_38 = arith.constant dense<0.000000e+00> : vector<16x128xf32>
    %95 = tpu.matmul %92, %94, %cst_38 {dimension_numbers = #tpu.dot_dimension_numbers<[1], [0], [0], [1], [0, 0, 1, 1], [], []>} : vector<16x128xf32>, vector<128x128xf32>, vector<16x128xf32> -> vector<16x128xf32>
    %96 = vector.broadcast %18 : vector<1x128xf32> to vector<16x128xf32>
    %97 = arith.addf %95, %96 : vector<16x128xf32>
    %cst_39 = arith.constant 0.000000e+00 : f32
    %98 = vector.broadcast %cst_39 : f32 to vector<16x128xf32>
    %99 = arith.maximumf %97, %98 : vector<16x128xf32>
    %c0_40 = arith.constant 0 : index
    %c5 = arith.constant 5 : index
    %c0_41 = arith.constant 0 : index
    %c0_42 = arith.constant 0 : index
    %100 = vector.load %arg3[%c0_40, %c5, %c0_41, %c0_42] : memref<2x6x128x128xf32, #tpu.memory_space<vmem>>, vector<1x1x128x128xf32>
    %101 = vector.shape_cast %100 : vector<1x1x128x128xf32> to vector<128x128xf32>
    %cst_43 = arith.constant dense<0.000000e+00> : vector<16x128xf32>
    %102 = tpu.matmul %99, %101, %cst_43 {dimension_numbers = #tpu.dot_dimension_numbers<[1], [0], [0], [1], [0, 0, 1, 1], [], []>} : vector<16x128xf32>, vector<128x128xf32>, vector<16x128xf32> -> vector<16x128xf32>
    %103 = vector.broadcast %19 : vector<1x128xf32> to vector<16x128xf32>
    %104 = arith.addf %102, %103 : vector<16x128xf32>
    %105 = arith.addf %92, %104 : vector<16x128xf32>
    %106 = vector.broadcast %8 : vector<1x128xf32> to vector<16x128xf32>
    %107 = arith.mulf %105, %106 : vector<16x128xf32>
    %cst_44 = arith.constant dense<0.000000e+00> : vector<16xf32>
    %108 = vector.multi_reduction <add>, %107, %cst_44 [1] : vector<16x128xf32> to vector<16xf32>
    %109 = vector.shape_cast %108 : vector<16xf32> to vector<16x1xf32>
    %cst_45 = arith.constant 3.125000e-02 : f32
    %110 = vector.broadcast %cst_45 : f32 to vector<16x1xf32>
    %111 = arith.mulf %109, %110 : vector<16x1xf32>
    %112 = vector.broadcast %111 : vector<16x1xf32> to vector<16x128xf32>
    %113 = arith.subf %105, %112 : vector<16x128xf32>
    %114 = vector.broadcast %8 : vector<1x128xf32> to vector<16x128xf32>
    %115 = arith.mulf %113, %114 : vector<16x128xf32>
    %116 = arith.mulf %115, %115 : vector<16x128xf32>
    %cst_46 = arith.constant dense<0.000000e+00> : vector<16xf32>
    %117 = vector.multi_reduction <add>, %116, %cst_46 [1] : vector<16x128xf32> to vector<16xf32>
    %118 = vector.shape_cast %117 : vector<16xf32> to vector<16x1xf32>
    %cst_47 = arith.constant 3.125000e-02 : f32
    %119 = vector.broadcast %cst_47 : f32 to vector<16x1xf32>
    %120 = arith.mulf %118, %119 : vector<16x1xf32>
    %cst_48 = arith.constant 9.99999974E-6 : f32
    %121 = vector.broadcast %cst_48 : f32 to vector<16x1xf32>
    %122 = arith.addf %120, %121 : vector<16x1xf32>
    %123 = math.rsqrt %122 : vector<16x1xf32>
    %124 = vector.broadcast %123 : vector<16x1xf32> to vector<16x128xf32>
    %125 = arith.mulf %115, %124 : vector<16x128xf32>
    %126 = vector.broadcast %22 : vector<1x128xf32> to vector<16x128xf32>
    %127 = arith.mulf %125, %126 : vector<16x128xf32>
    %128 = vector.broadcast %23 : vector<1x128xf32> to vector<16x128xf32>
    %129 = arith.addf %127, %128 : vector<16x128xf32>
    %c1_49 = arith.constant 1 : index
    %c0_50 = arith.constant 0 : index
    %c0_51 = arith.constant 0 : index
    %130 = vector.load %arg4[%c1_49, %c0_50, %c0_51] : memref<2x16x128xf32, #tpu.memory_space<vmem>>, vector<1x16x128xf32>
    %131 = vector.shape_cast %130 : vector<1x16x128xf32> to vector<16x128xf32>
    %132 = vector.extract_strided_slice %131 {offsets = [0, 0], sizes = [1, 128], strides = [1, 1]} : vector<16x128xf32> to vector<1x128xf32>
    %133 = vector.extract_strided_slice %131 {offsets = [1, 0], sizes = [1, 128], strides = [1, 1]} : vector<16x128xf32> to vector<1x128xf32>
    %134 = vector.extract_strided_slice %131 {offsets = [2, 0], sizes = [1, 128], strides = [1, 1]} : vector<16x128xf32> to vector<1x128xf32>
    %135 = vector.extract_strided_slice %131 {offsets = [3, 0], sizes = [1, 128], strides = [1, 1]} : vector<16x128xf32> to vector<1x128xf32>
    %136 = vector.extract_strided_slice %131 {offsets = [4, 0], sizes = [1, 128], strides = [1, 1]} : vector<16x128xf32> to vector<1x128xf32>
    %137 = vector.extract_strided_slice %131 {offsets = [5, 0], sizes = [1, 128], strides = [1, 1]} : vector<16x128xf32> to vector<1x128xf32>
    %138 = vector.extract_strided_slice %131 {offsets = [6, 0], sizes = [1, 128], strides = [1, 1]} : vector<16x128xf32> to vector<1x128xf32>
    %139 = vector.extract_strided_slice %131 {offsets = [7, 0], sizes = [1, 128], strides = [1, 1]} : vector<16x128xf32> to vector<1x128xf32>
    %140 = vector.extract_strided_slice %131 {offsets = [8, 0], sizes = [1, 128], strides = [1, 1]} : vector<16x128xf32> to vector<1x128xf32>
    %141 = vector.extract_strided_slice %131 {offsets = [9, 0], sizes = [1, 128], strides = [1, 1]} : vector<16x128xf32> to vector<1x128xf32>
    %c1_52 = arith.constant 1 : index
    %c0_53 = arith.constant 0 : index
    %c0_54 = arith.constant 0 : index
    %c0_55 = arith.constant 0 : index
    %142 = vector.load %arg3[%c1_52, %c0_53, %c0_54, %c0_55] : memref<2x6x128x128xf32, #tpu.memory_space<vmem>>, vector<1x1x128x128xf32>
    %143 = vector.shape_cast %142 : vector<1x1x128x128xf32> to vector<128x128xf32>
    %cst_56 = arith.constant dense<0.000000e+00> : vector<16x128xf32>
    %144 = tpu.matmul %129, %143, %cst_56 {dimension_numbers = #tpu.dot_dimension_numbers<[1], [0], [0], [1], [0, 0, 1, 1], [], []>} : vector<16x128xf32>, vector<128x128xf32>, vector<16x128xf32> -> vector<16x128xf32>
    %145 = vector.broadcast %132 : vector<1x128xf32> to vector<16x128xf32>
    %146 = arith.addf %144, %145 : vector<16x128xf32>
    %147 = vector.shape_cast %146 : vector<16x128xf32> to vector<16x4x32xf32>
    %148 = tpu.transpose %147, [1, 0, 2] : vector<16x4x32xf32> -> vector<4x16x32xf32>
    %c1_57 = arith.constant 1 : index
    %c1_58 = arith.constant 1 : index
    %c0_59 = arith.constant 0 : index
    %c0_60 = arith.constant 0 : index
    %149 = vector.load %arg3[%c1_57, %c1_58, %c0_59, %c0_60] : memref<2x6x128x128xf32, #tpu.memory_space<vmem>>, vector<1x1x128x128xf32>
    %150 = vector.shape_cast %149 : vector<1x1x128x128xf32> to vector<128x128xf32>
    %cst_61 = arith.constant dense<0.000000e+00> : vector<16x128xf32>
    %151 = tpu.matmul %129, %150, %cst_61 {dimension_numbers = #tpu.dot_dimension_numbers<[1], [0], [0], [1], [0, 0, 1, 1], [], []>} : vector<16x128xf32>, vector<128x128xf32>, vector<16x128xf32> -> vector<16x128xf32>
    %152 = vector.broadcast %133 : vector<1x128xf32> to vector<16x128xf32>
    %153 = arith.addf %151, %152 : vector<16x128xf32>
    %154 = vector.shape_cast %153 : vector<16x128xf32> to vector<16x4x32xf32>
    %155 = tpu.transpose %154, [1, 0, 2] : vector<16x4x32xf32> -> vector<4x16x32xf32>
    %c1_62 = arith.constant 1 : index
    %c2_63 = arith.constant 2 : index
    %c0_64 = arith.constant 0 : index
    %c0_65 = arith.constant 0 : index
    %156 = vector.load %arg3[%c1_62, %c2_63, %c0_64, %c0_65] : memref<2x6x128x128xf32, #tpu.memory_space<vmem>>, vector<1x1x128x128xf32>
    %157 = vector.shape_cast %156 : vector<1x1x128x128xf32> to vector<128x128xf32>
    %cst_66 = arith.constant dense<0.000000e+00> : vector<16x128xf32>
    %158 = tpu.matmul %129, %157, %cst_66 {dimension_numbers = #tpu.dot_dimension_numbers<[1], [0], [0], [1], [0, 0, 1, 1], [], []>} : vector<16x128xf32>, vector<128x128xf32>, vector<16x128xf32> -> vector<16x128xf32>
    %159 = vector.broadcast %134 : vector<1x128xf32> to vector<16x128xf32>
    %160 = arith.addf %158, %159 : vector<16x128xf32>
    %161 = vector.shape_cast %160 : vector<16x128xf32> to vector<16x4x32xf32>
    %162 = tpu.transpose %161, [1, 0, 2] : vector<16x4x32xf32> -> vector<4x16x32xf32>
    "tpu.trace_start"() <{level = 10 : i32, message = "hqd,hkd->hqk"}> : () -> ()
    %cst_67 = arith.constant dense<0.000000e+00> : vector<4x16x16xf32>
    %163 = tpu.matmul %148, %155, %cst_67 {dimension_numbers = #tpu.dot_dimension_numbers<[2], [2], [1], [1], [0, 0, 0, 1, 1, 1], [0], [0]>} : vector<4x16x32xf32>, vector<4x16x32xf32>, vector<4x16x16xf32> -> vector<4x16x16xf32>
    "tpu.trace_stop"() : () -> ()
    %cst_68 = arith.constant 0.353553385 : f32
    %164 = vector.broadcast %cst_68 : f32 to vector<4x16x16xf32>
    %165 = arith.mulf %163, %164 : vector<4x16x16xf32>
    %166 = vector.broadcast %11 : vector<1x1x16xf32> to vector<4x16x16xf32>
    %167 = arith.addf %165, %166 : vector<4x16x16xf32>
    %cst_69 = arith.constant dense<0xFF800000> : vector<4x16xf32>
    %168 = vector.multi_reduction <maximumf>, %167, %cst_69 [2] : vector<4x16x16xf32> to vector<4x16xf32>
    %169 = vector.shape_cast %168 : vector<4x16xf32> to vector<4x16x1xf32>
    %170 = vector.broadcast %169 : vector<4x16x1xf32> to vector<4x16x16xf32>
    %171 = arith.subf %167, %170 : vector<4x16x16xf32>
    %172 = math.exp %171 : vector<4x16x16xf32>
    %cst_70 = arith.constant dense<0.000000e+00> : vector<4x16xf32>
    %173 = vector.multi_reduction <add>, %172, %cst_70 [2] : vector<4x16x16xf32> to vector<4x16xf32>
    %174 = vector.shape_cast %173 : vector<4x16xf32> to vector<4x16x1xf32>
    %175 = tpu.reciprocal %174 {approx = true} : vector<4x16x1xf32> -> vector<4x16x1xf32>
    %176 = vector.broadcast %175 : vector<4x16x1xf32> to vector<4x16x16xf32>
    %177 = arith.mulf %172, %176 : vector<4x16x16xf32>
    "tpu.trace_start"() <{level = 10 : i32, message = "hqk,hkd->hqd"}> : () -> ()
    %cst_71 = arith.constant dense<0.000000e+00> : vector<4x16x32xf32>
    %178 = tpu.matmul %177, %162, %cst_71 {dimension_numbers = #tpu.dot_dimension_numbers<[2], [1], [1], [2], [0, 0, 0, 1, 1, 2], [0], [0]>} : vector<4x16x16xf32>, vector<4x16x32xf32>, vector<4x16x32xf32> -> vector<4x16x32xf32>
    "tpu.trace_stop"() : () -> ()
    %179 = tpu.transpose %178, [1, 0, 2] : vector<4x16x32xf32> -> vector<16x4x32xf32>
    %180 = vector.shape_cast %179 : vector<16x4x32xf32> to vector<16x128xf32>
    %c1_72 = arith.constant 1 : index
    %c3_73 = arith.constant 3 : index
    %c0_74 = arith.constant 0 : index
    %c0_75 = arith.constant 0 : index
    %181 = vector.load %arg3[%c1_72, %c3_73, %c0_74, %c0_75] : memref<2x6x128x128xf32, #tpu.memory_space<vmem>>, vector<1x1x128x128xf32>
    %182 = vector.shape_cast %181 : vector<1x1x128x128xf32> to vector<128x128xf32>
    %cst_76 = arith.constant dense<0.000000e+00> : vector<16x128xf32>
    %183 = tpu.matmul %180, %182, %cst_76 {dimension_numbers = #tpu.dot_dimension_numbers<[1], [0], [0], [1], [0, 0, 1, 1], [], []>} : vector<16x128xf32>, vector<128x128xf32>, vector<16x128xf32> -> vector<16x128xf32>
    %184 = vector.broadcast %135 : vector<1x128xf32> to vector<16x128xf32>
    %185 = arith.addf %183, %184 : vector<16x128xf32>
    %186 = arith.addf %129, %185 : vector<16x128xf32>
    %187 = vector.broadcast %8 : vector<1x128xf32> to vector<16x128xf32>
    %188 = arith.mulf %186, %187 : vector<16x128xf32>
    %cst_77 = arith.constant dense<0.000000e+00> : vector<16xf32>
    %189 = vector.multi_reduction <add>, %188, %cst_77 [1] : vector<16x128xf32> to vector<16xf32>
    %190 = vector.shape_cast %189 : vector<16xf32> to vector<16x1xf32>
    %cst_78 = arith.constant 3.125000e-02 : f32
    %191 = vector.broadcast %cst_78 : f32 to vector<16x1xf32>
    %192 = arith.mulf %190, %191 : vector<16x1xf32>
    %193 = vector.broadcast %192 : vector<16x1xf32> to vector<16x128xf32>
    %194 = arith.subf %186, %193 : vector<16x128xf32>
    %195 = vector.broadcast %8 : vector<1x128xf32> to vector<16x128xf32>
    %196 = arith.mulf %194, %195 : vector<16x128xf32>
    %197 = arith.mulf %196, %196 : vector<16x128xf32>
    %cst_79 = arith.constant dense<0.000000e+00> : vector<16xf32>
    %198 = vector.multi_reduction <add>, %197, %cst_79 [1] : vector<16x128xf32> to vector<16xf32>
    %199 = vector.shape_cast %198 : vector<16xf32> to vector<16x1xf32>
    %cst_80 = arith.constant 3.125000e-02 : f32
    %200 = vector.broadcast %cst_80 : f32 to vector<16x1xf32>
    %201 = arith.mulf %199, %200 : vector<16x1xf32>
    %cst_81 = arith.constant 9.99999974E-6 : f32
    %202 = vector.broadcast %cst_81 : f32 to vector<16x1xf32>
    %203 = arith.addf %201, %202 : vector<16x1xf32>
    %204 = math.rsqrt %203 : vector<16x1xf32>
    %205 = vector.broadcast %204 : vector<16x1xf32> to vector<16x128xf32>
    %206 = arith.mulf %196, %205 : vector<16x128xf32>
    %207 = vector.broadcast %138 : vector<1x128xf32> to vector<16x128xf32>
    %208 = arith.mulf %206, %207 : vector<16x128xf32>
    %209 = vector.broadcast %139 : vector<1x128xf32> to vector<16x128xf32>
    %210 = arith.addf %208, %209 : vector<16x128xf32>
    %c1_82 = arith.constant 1 : index
    %c4_83 = arith.constant 4 : index
    %c0_84 = arith.constant 0 : index
    %c0_85 = arith.constant 0 : index
    %211 = vector.load %arg3[%c1_82, %c4_83, %c0_84, %c0_85] : memref<2x6x128x128xf32, #tpu.memory_space<vmem>>, vector<1x1x128x128xf32>
    %212 = vector.shape_cast %211 : vector<1x1x128x128xf32> to vector<128x128xf32>
    %cst_86 = arith.constant dense<0.000000e+00> : vector<16x128xf32>
    %213 = tpu.matmul %210, %212, %cst_86 {dimension_numbers = #tpu.dot_dimension_numbers<[1], [0], [0], [1], [0, 0, 1, 1], [], []>} : vector<16x128xf32>, vector<128x128xf32>, vector<16x128xf32> -> vector<16x128xf32>
    %214 = vector.broadcast %136 : vector<1x128xf32> to vector<16x128xf32>
    %215 = arith.addf %213, %214 : vector<16x128xf32>
    %cst_87 = arith.constant 0.000000e+00 : f32
    %216 = vector.broadcast %cst_87 : f32 to vector<16x128xf32>
    %217 = arith.maximumf %215, %216 : vector<16x128xf32>
    %c1_88 = arith.constant 1 : index
    %c5_89 = arith.constant 5 : index
    %c0_90 = arith.constant 0 : index
    %c0_91 = arith.constant 0 : index
    %218 = vector.load %arg3[%c1_88, %c5_89, %c0_90, %c0_91] : memref<2x6x128x128xf32, #tpu.memory_space<vmem>>, vector<1x1x128x128xf32>
    %219 = vector.shape_cast %218 : vector<1x1x128x128xf32> to vector<128x128xf32>
    %cst_92 = arith.constant dense<0.000000e+00> : vector<16x128xf32>
    %220 = tpu.matmul %217, %219, %cst_92 {dimension_numbers = #tpu.dot_dimension_numbers<[1], [0], [0], [1], [0, 0, 1, 1], [], []>} : vector<16x128xf32>, vector<128x128xf32>, vector<16x128xf32> -> vector<16x128xf32>
    %221 = vector.broadcast %137 : vector<1x128xf32> to vector<16x128xf32>
    %222 = arith.addf %220, %221 : vector<16x128xf32>
    %223 = arith.addf %210, %222 : vector<16x128xf32>
    %224 = vector.broadcast %8 : vector<1x128xf32> to vector<16x128xf32>
    %225 = arith.mulf %223, %224 : vector<16x128xf32>
    %cst_93 = arith.constant dense<0.000000e+00> : vector<16xf32>
    %226 = vector.multi_reduction <add>, %225, %cst_93 [1] : vector<16x128xf32> to vector<16xf32>
    %227 = vector.shape_cast %226 : vector<16xf32> to vector<16x1xf32>
    %cst_94 = arith.constant 3.125000e-02 : f32
    %228 = vector.broadcast %cst_94 : f32 to vector<16x1xf32>
    %229 = arith.mulf %227, %228 : vector<16x1xf32>
    %230 = vector.broadcast %229 : vector<16x1xf32> to vector<16x128xf32>
    %231 = arith.subf %223, %230 : vector<16x128xf32>
    %232 = vector.broadcast %8 : vector<1x128xf32> to vector<16x128xf32>
    %233 = arith.mulf %231, %232 : vector<16x128xf32>
    %234 = arith.mulf %233, %233 : vector<16x128xf32>
    %cst_95 = arith.constant dense<0.000000e+00> : vector<16xf32>
    %235 = vector.multi_reduction <add>, %234, %cst_95 [1] : vector<16x128xf32> to vector<16xf32>
    %236 = vector.shape_cast %235 : vector<16xf32> to vector<16x1xf32>
    %cst_96 = arith.constant 3.125000e-02 : f32
    %237 = vector.broadcast %cst_96 : f32 to vector<16x1xf32>
    %238 = arith.mulf %236, %237 : vector<16x1xf32>
    %cst_97 = arith.constant 9.99999974E-6 : f32
    %239 = vector.broadcast %cst_97 : f32 to vector<16x1xf32>
    %240 = arith.addf %238, %239 : vector<16x1xf32>
    %241 = math.rsqrt %240 : vector<16x1xf32>
    %242 = vector.broadcast %241 : vector<16x1xf32> to vector<16x128xf32>
    %243 = arith.mulf %233, %242 : vector<16x128xf32>
    %244 = vector.broadcast %140 : vector<1x128xf32> to vector<16x128xf32>
    %245 = arith.mulf %243, %244 : vector<16x128xf32>
    %246 = vector.broadcast %141 : vector<1x128xf32> to vector<16x128xf32>
    %247 = arith.addf %245, %246 : vector<16x128xf32>
    %c0_98 = arith.constant 0 : index
    %c0_99 = arith.constant 0 : index
    %c0_100 = arith.constant 0 : index
    %248 = vector.load %arg7[%c0_98, %c0_99, %c0_100] : memref<1x16x128xf32, #tpu.memory_space<vmem>>, vector<1x16x128xf32>
    %249 = vector.shape_cast %248 : vector<1x16x128xf32> to vector<16x128xf32>
    %250 = vector.shape_cast %247 : vector<16x128xf32> to vector<1x16x128xf32>
    tpu.vector_store %arg7[%c0_98, %c0_99, %c0_100], %250 {strides = array<i32>} : memref<1x16x128xf32, #tpu.memory_space<vmem>>, vector<1x16x128xf32>,
    %c0_101 = arith.constant 0 : index
    %c0_102 = arith.constant 0 : index
    %251 = vector.load %arg6[%c0_101, %c0_102] : memref<8x128xf32, #tpu.memory_space<vmem>>, vector<8x128xf32>
    %c0_103 = arith.constant 0 : index
    %c0_104 = arith.constant 0 : index
    %c0_105 = arith.constant 0 : index
    %252 = vector.load %arg5[%c0_103, %c0_104, %c0_105] : memref<4x128x128xf32, #tpu.memory_space<vmem>>, vector<1x128x128xf32>
    %253 = vector.shape_cast %252 : vector<1x128x128xf32> to vector<128x128xf32>
    %cst_106 = arith.constant dense<0.000000e+00> : vector<16x128xf32>
    %254 = tpu.matmul %247, %253, %cst_106 {dimension_numbers = #tpu.dot_dimension_numbers<[1], [0], [0], [1], [0, 0, 1, 1], [], []>} : vector<16x128xf32>, vector<128x128xf32>, vector<16x128xf32> -> vector<16x128xf32>
    %255 = vector.extract_strided_slice %251 {offsets = [0, 0], sizes = [1, 128], strides = [1, 1]} : vector<8x128xf32> to vector<1x128xf32>
    %256 = vector.broadcast %255 : vector<1x128xf32> to vector<16x128xf32>
    %257 = arith.addf %254, %256 : vector<16x128xf32>
    %cst_107 = arith.constant 0.000000e+00 : f32
    %258 = vector.broadcast %cst_107 : f32 to vector<16x128xf32>
    %259 = arith.maximumf %257, %258 : vector<16x128xf32>
    %c1_108 = arith.constant 1 : index
    %c0_109 = arith.constant 0 : index
    %c0_110 = arith.constant 0 : index
    %260 = vector.load %arg5[%c1_108, %c0_109, %c0_110] : memref<4x128x128xf32, #tpu.memory_space<vmem>>, vector<1x128x128xf32>
    %261 = vector.shape_cast %260 : vector<1x128x128xf32> to vector<128x128xf32>
    %cst_111 = arith.constant dense<0.000000e+00> : vector<16x128xf32>
    %262 = tpu.matmul %259, %261, %cst_111 {dimension_numbers = #tpu.dot_dimension_numbers<[1], [0], [0], [1], [0, 0, 1, 1], [], []>} : vector<16x128xf32>, vector<128x128xf32>, vector<16x128xf32> -> vector<16x128xf32>
    %263 = vector.extract_strided_slice %251 {offsets = [1, 0], sizes = [1, 128], strides = [1, 1]} : vector<8x128xf32> to vector<1x128xf32>
    %264 = vector.broadcast %263 : vector<1x128xf32> to vector<16x128xf32>
    %265 = arith.addf %262, %264 : vector<16x128xf32>
    %c2_112 = arith.constant 2 : index
    %c0_113 = arith.constant 0 : index
    %c0_114 = arith.constant 0 : index
    %266 = vector.load %arg5[%c2_112, %c0_113, %c0_114] : memref<4x128x128xf32, #tpu.memory_space<vmem>>, vector<1x128x128xf32>
    %267 = vector.shape_cast %266 : vector<1x128x128xf32> to vector<128x128xf32>
    %cst_115 = arith.constant dense<0.000000e+00> : vector<16x128xf32>
    %268 = tpu.matmul %265, %267, %cst_115 {dimension_numbers = #tpu.dot_dimension_numbers<[1], [0], [0], [1], [0, 0, 1, 1], [], []>} : vector<16x128xf32>, vector<128x128xf32>, vector<16x128xf32> -> vector<16x128xf32>
    %269 = vector.extract_strided_slice %251 {offsets = [2, 0], sizes = [1, 128], strides = [1, 1]} : vector<8x128xf32> to vector<1x128xf32>
    %270 = vector.broadcast %269 : vector<1x128xf32> to vector<16x128xf32>
    %271 = arith.addf %268, %270 : vector<16x128xf32>
    %cst_116 = arith.constant 0.000000e+00 : f32
    %272 = vector.broadcast %cst_116 : f32 to vector<16x128xf32>
    %273 = arith.cmpf ogt, %271, %272 : vector<16x128xf32>
    %cst_117 = arith.constant 1.000000e-01 : f32
    %274 = vector.broadcast %cst_117 : f32 to vector<16x128xf32>
    %275 = arith.mulf %274, %271 : vector<16x128xf32>
    %276 = arith.select %273, %271, %275 : vector<16x128xi1>, vector<16x128xf32>
    %c3_118 = arith.constant 3 : index
    %c0_119 = arith.constant 0 : index
    %c0_120 = arith.constant 0 : index
    %277 = vector.load %arg5[%c3_118, %c0_119, %c0_120] : memref<4x128x128xf32, #tpu.memory_space<vmem>>, vector<1x128x128xf32>
    %278 = vector.shape_cast %277 : vector<1x128x128xf32> to vector<128x128xf32>
    %cst_121 = arith.constant dense<0.000000e+00> : vector<16x128xf32>
    %279 = tpu.matmul %276, %278, %cst_121 {dimension_numbers = #tpu.dot_dimension_numbers<[1], [0], [0], [1], [0, 0, 1, 1], [], []>} : vector<16x128xf32>, vector<128x128xf32>, vector<16x128xf32> -> vector<16x128xf32>
    %280 = vector.extract_strided_slice %251 {offsets = [3, 0], sizes = [1, 128], strides = [1, 1]} : vector<8x128xf32> to vector<1x128xf32>
    %281 = vector.broadcast %280 : vector<1x128xf32> to vector<16x128xf32>
    %282 = arith.addf %279, %281 : vector<16x128xf32>
    %c0_122 = arith.constant 0 : index
    %c0_123 = arith.constant 0 : index
    %c0_124 = arith.constant 0 : index
    %283 = vector.load %arg8[%c0_122, %c0_123, %c0_124] : memref<1x16x128xf32, #tpu.memory_space<vmem>>, vector<1x16x128xf32>
    %284 = vector.shape_cast %283 : vector<1x16x128xf32> to vector<16x128xf32>
    %285 = vector.shape_cast %282 : vector<16x128xf32> to vector<1x16x128xf32>
    tpu.vector_store %arg8[%c0_122, %c0_123, %c0_124], %285 {strides = array<i32>} : memref<1x16x128xf32, #tpu.memory_space<vmem>>, vector<1x16x128xf32>,
    return
  }
  func.func @transform_0(%arg0: i32) -> (i32, i32, i32) {
    %c0_i32 = arith.constant 0 : i32
    %c0_i32_0 = arith.constant 0 : i32
    %c0_i32_1 = arith.constant 0 : i32
    return %arg0, %c0_i32, %c0_i32_0 : i32, i32, i32
  }
  func.func @transform_1(%arg0: i32) -> (i32, i32, i32) {
    %c0_i32 = arith.constant 0 : i32
    %c0_i32_0 = arith.constant 0 : i32
    %c0_i32_1 = arith.constant 0 : i32
    return %arg0, %c0_i32, %c0_i32_0 : i32, i32, i32
  }
  func.func @transform_2(%arg0: i32) -> (i32, i32, i32, i32) {
    %c0_i32 = arith.constant 0 : i32
    %c0_i32_0 = arith.constant 0 : i32
    %c0_i32_1 = arith.constant 0 : i32
    %c0_i32_2 = arith.constant 0 : i32
    %c0_i32_3 = arith.constant 0 : i32
    return %c0_i32, %c0_i32_0, %c0_i32_1, %c0_i32_2 : i32, i32, i32, i32
  }
  func.func @transform_3(%arg0: i32) -> (i32, i32, i32) {
    %c0_i32 = arith.constant 0 : i32
    %c0_i32_0 = arith.constant 0 : i32
    %c0_i32_1 = arith.constant 0 : i32
    %c0_i32_2 = arith.constant 0 : i32
    return %c0_i32, %c0_i32_0, %c0_i32_1 : i32, i32, i32
  }
  func.func @transform_4(%arg0: i32) -> (i32, i32, i32) {
    %c0_i32 = arith.constant 0 : i32
    %c0_i32_0 = arith.constant 0 : i32
    %c0_i32_1 = arith.constant 0 : i32
    %c0_i32_2 = arith.constant 0 : i32
    return %c0_i32, %c0_i32_0, %c0_i32_1 : i32, i32, i32
  }
  func.func @transform_5(%arg0: i32) -> (i32, i32) {
    %c0_i32 = arith.constant 0 : i32
    %c0_i32_0 = arith.constant 0 : i32
    %c0_i32_1 = arith.constant 0 : i32
    return %c0_i32, %c0_i32_0 : i32, i32
  }
  func.func @transform_6(%arg0: i32) -> (i32, i32, i32) {
    %c0_i32 = arith.constant 0 : i32
    %c0_i32_0 = arith.constant 0 : i32
    %c0_i32_1 = arith.constant 0 : i32
    return %arg0, %c0_i32, %c0_i32_0 : i32, i32, i32
  }
  func.func @transform_7(%arg0: i32) -> (i32, i32, i32) {
    %c0_i32 = arith.constant 0 : i32
    %c0_i32_0 = arith.constant 0 : i32
    %c0_i32_1 = arith.constant 0 : i32
    return %arg0, %c0_i32, %c0_i32_0 : i32, i32, i32
  }
}

</mosaic_0001>

<bundles_post_ra>
// kernel: graph_autoencoder_forward.2
= control target key start
LH: loop header
LB: loop body
LE: loop exit
PB: predicated region body
PF: predicated region fallthrough
CT: control target
= control target key end

     0   :  { %14 = vsyncpa [#allocation3], 0  ;;  %s316_s12 = smov [#allocation2]   ;;  %s317_s14 = smov 128   ;;  %s469_s0 = inlined_call_operand.vmem [shape: f32[16,128], index: 0, kind: input, shape index: {}]   ;;  %s470_s1 = inlined_call_operand.vmem [shape: f32[16,16], index: 1, kind: input, shape index: {}]   ;;  %s471_s2 = inlined_call_operand.vmem [shape: f32[16,1], index: 2, kind: input, shape index: {}]   ;;  %s472_s3 = inlined_call_operand.vmem [shape: f32[128,128], index: 3, kind: input, shape index: {}]   ;;  %s473_s4 = inlined_call_operand.vmem [shape: f32[1,128], index: 4, kind: input, shape index: {}]   ;;  %s474_s5 = inlined_call_operand.vmem [shape: f32[1,128], index: 5, kind: input, shape index: {}]   ;;  %s475_s6 = inlined_call_operand.vmem [shape: f32[1,128], index: 6, kind: input, shape index: {}]   ;;  %s476_s7 = inlined_call_operand.hbm [shape: f32[128,128], index: 7, kind: input, shape index: {}]   ;;  %s477_s8 = inlined_call_operand.vmem [shape: f32[1,128], index: 8, kind: input, shape index: {}]   ;;  %s478_s9 = inlined_call_operand.vmem [shape: f32[16,128], index: 9, kind: output, shape index: {}]  }
   0x1   :  { %s33_s11 = sshll.u32 %s476_s7, 4  ;;  %s35_s13 = sshll.u32 %s316_s12, 4  ;;  %s34_s11 = int_to_ptr.hbm [resolvable:$true] %s33_s11  ;;  %s36_s13 = int_to_ptr.vmem [resolvable:$true] %s35_s13 }
   0x2   :  { %s318_s15 = smov 8  }
   0x3   :  { %41 = dma.hbm_to_vmem [thread:$0]  %s34_s11, 2048, %s36_s13, [#allocation3], %s317_s14, %s317_s14, %s318_s15  }
   0x4   :  { %314 = dma.done.wait [#allocation3], 2048  }
   0x5   :  { %315 = vsyncadd [#allocation3], 4294965248  ;;  %v69_v0 = vld [vmem:[%s472_s3 + $0x78] sm:$0xff]  ;;  %v68_v1 = vld [vmem:[%s472_s3 + $0x70] sm:$0xff]  ;;  %v319_v19 = vmov 0   ;;  %vm97_vm0 = vcmask 130048  }
   0x6   :  { %70 = vmatpush.msra.mxu0 %v69_v0  ;;  %v67_v2 = vld [vmem:[%s472_s3 + $0x68] sm:$0xff]  ;;  %v66_v3 = vld [vmem:[%s472_s3 + $0x60] sm:$0xff]  ;;  %v65_v4 = vld [vmem:[%s472_s3 + $0x58] sm:$0xff]  ;;  %279 = vset.pattern.permute.xlu0 %v319_v19 }
   0x7   :  { %v64_v5 = vld [vmem:[%s472_s3 + $0x50] sm:$0xff]  ;;  %v63_v6 = vld [vmem:[%s472_s3 + $0x48] sm:$0xff]  ;;  %v62_v7 = vld [vmem:[%s472_s3 + $0x40] sm:$0xff] }
   0x8   :  { %71 = vmatpush.msra.mxu0 %v68_v1  ;;  %v61_v8 = vld [vmem:[%s472_s3 + $0x38] sm:$0xff]  ;;  %v60_v9 = vld [vmem:[%s472_s3 + $0x30] sm:$0xff]  ;;  %v59_v10 = vld [vmem:[%s472_s3 + $0x28] sm:$0xff] }
   0x9   :  { %v58_v11 = vld [vmem:[%s472_s3 + $0x20] sm:$0xff]  ;;  %v57_v12 = vld [vmem:[%s472_s3 + $0x18] sm:$0xff]  ;;  %v56_v13 = vld [vmem:[%s472_s3 + $0x10] sm:$0xff] }
   0xa   :  { %72 = vmatpush.msra.mxu0 %v67_v2  ;;  %v55_v14 = vld [vmem:[%s472_s3 + $0x8] sm:$0xff]  ;;  %v54_v15 = vld [vmem:[%s472_s3] sm:$0xff]  ;;  %v211_v41 = vld [vmem:[#allocation2 + $0x78] sm:$0xff] }
   0xb   :  { %v48_v16 = vld [vmem:[%s469_s0] sm:$0xff]  ;;  %v49_v17 = vld [vmem:[%s469_s0 + $0x8] sm:$0xff]  ;;  %212 = vmatpush.msra.mxu2 %v211_v41  ;;  %v210_v43 = vld [vmem:[#allocation2 + $0x70] sm:$0xff] }
   0xc   :  { %73 = vmatpush.msra.mxu0 %v66_v3  ;;  %v52_v18 = vld [vmem:[%s471_s2] sm:$0xff]  ;;  %v53_v20 = vld [vmem:[%s471_s2 + $0x8] sm:$0xff]  ;;  %v207_v52 = vld [vmem:[#allocation2 + $0x58] sm:$0xff] }
   0xd   :  { %129 = vperm.xlu0 %279, %v52_v18   ;;  %v436_v23 = vld [vmem:[%s470_s1] sm:$0xff]  ;;  %v443_v24 = vld [vmem:[%s470_s1 + $0x8] sm:$0xff]  ;;  %213 = vmatpush.msra.mxu2 %v210_v43  ;;  %v206_v54 = vld [vmem:[#allocation2 + $0x50] sm:$0xff] }
   0xe   :  { %74 = vmatpush.msra.mxu0 %v65_v4  ;;  %v280_v27 = vld [vmem:[%s473_s4] ss:$0 sm:$0xff]  ;;  %v209_v46 = vld [vmem:[#allocation2 + $0x68] sm:$0xff]  ;;  %v203_v60 = vld [vmem:[#allocation2 + $0x38] sm:$0xff] }
   0xf   :  { %214 = vmatpush.msra.mxu2 %v209_v46  ;;  %v208_v49 = vld [vmem:[#allocation2 + $0x60] sm:$0xff]  ;;  %v205_v56 = vld [vmem:[#allocation2 + $0x48] sm:$0xff]  ;;  %v202_v61 = vld [vmem:[#allocation2 + $0x30] sm:$0xff] }
  0x10   :  { %75 = vmatpush.msra.mxu0 %v64_v5  ;;  %v204_v58 = vld [vmem:[#allocation2 + $0x40] sm:$0xff]  ;;  %v201_v63 = vld [vmem:[#allocation2 + $0x28] sm:$0xff]  ;;  %v199_v3 = vld [vmem:[#allocation2 + $0x18] sm:$0xff] }
  0x11   :  { %215 = vmatpush.msra.mxu2 %v208_v49  ;;  %v200_v1 = vld [vmem:[#allocation2 + $0x20] sm:$0xff]  ;;  %v198_v5 = vld [vmem:[#allocation2 + $0x10] sm:$0xff] }
  0x12   :  { %76 = vmatpush.msra.mxu0 %v63_v6  ;;  %v282_v19 = vld [vmem:[%s475_s6] ss:$0 sm:$0xff] }
  0x13   :  { %216 = vmatpush.msra.mxu2 %v207_v52 }
  0x14   :  { %77 = vmatpush.msra.mxu0 %v62_v7  ;;  %v197_v7 = vld [vmem:[#allocation2 + $0x8] sm:$0xff] }
  0x15   :  { %134 = vperm.xlu0 %279, %v53_v20   ;;  %217 = vmatpush.msra.mxu2 %v206_v54 }
  0x16   :  { %78 = vmatpush.msra.mxu0 %v61_v8  ;;  %v196_v8 = vld [vmem:[#allocation2] sm:$0xff] }
  0x17   :  { %218 = vmatpush.msra.mxu2 %v205_v56 }
  0x18   :  { %79 = vmatpush.msra.mxu0 %v60_v9 }
  0x19   :  { %219 = vmatpush.msra.mxu2 %v204_v58 }
  0x1a   :  { %80 = vmatpush.msra.mxu0 %v59_v10 }
  0x1b   :  { %220 = vmatpush.msra.mxu2 %v203_v60 }
  0x1c   :  { %81 = vmatpush.msra.mxu0 %v58_v11 }
  0x1d   :  { %221 = vmatpush.msra.mxu2 %v202_v61 }
  0x1e   :  { %82 = vmatpush.msra.mxu0 %v57_v12 }
  0x1f   :  { %222 = vmatpush.msra.mxu2 %v201_v63 }
  0x20   :  { %83 = vmatpush.msra.mxu0 %v56_v13 }
  0x21   :  { %223 = vmatpush.msra.mxu2 %v200_v1 }
  0x22   :  { %84 = vmatpush.msra.mxu0 %v55_v14 }
  0x23   :  { %224 = vmatpush.msra.mxu2 %v199_v3 }
  0x24   :  { %85 = vmatpush.msra.mxu0 %v54_v15  ;;  %v281_v15 = vld [vmem:[%s474_s5] ss:$0 sm:$0xff] }
  0x25   :  { %86 = vmatmul.f32.vlgmr.msra.gmra.mxu0 %v48_v16  ;;  %225 = vmatpush.msra.mxu2 %v198_v5 }
  0x27   :  { %226 = vmatpush.msra.mxu2 %v197_v7 }
  0x29   :  { %227 = vmatpush.msra.mxu2 %v196_v8 }
  0x2d   :  { %89 = vmatmul.f32.gmra.mxu0 %v49_v17 }
  0x7f   :  { %v130_v25 = vpop.permute.xlu0 %129 }
  0x87   :  { %v135_v31 = vpop.permute.xlu0 %134 }
  0xa2   :  { %v87_v21 = vpop.f32.mrf.mxu0 }
  0xaa   :  { %v90_v22 = vpop.f32.mrf.mxu0 }
  0xab   :  { %118 = vmatpush.msra.mxu1 %v90_v22 }
  0xad   :  { %119 = vmatpush.msra.mxu1 %v87_v21 }
  0xae   :  { %269 = vmatmul.msk.f32.vlgmr.msra.gmra.mxu1 %vm97_vm0, %v436_v23 }
  0xb6   :  { %270 = vmatmul.msk.f32.gmra.mxu1 %vm97_vm0, %v443_v24 }
 0x12b   :  { %v121_v26 = vpop.f32.mrf.mxu1 }
 0x12c   :  { %v122_v28 = vadd.f32 %v280_v27, %v121_v26 }
 0x12e   :  { %v137_v32 = vmul.f32 %v130_v25, %v122_v28 }
 0x133   :  { %v124_v29 = vpop.f32.mrf.mxu1 }
 0x134   :  { %v125_v30 = vadd.f32 %v280_v27, %v124_v29 }
 0x136   :  { %v138_v33 = vmul.f32 %v135_v31, %v125_v30 }
 0x138   :  { %v139_v34 = vadd.f32 %v138_v33, %v137_v32 }
 0x13a   :  { %v140_v35 = vrot.slane %v139_v34, 4 }
 0x13c   :  { %v141_v36 = vadd.f32 %v140_v35, %v139_v34 }
 0x13e   :  { %v142_v37 = vrot.slane %v141_v36, 2 }
 0x140   :  { %v143_v38 = vadd.f32 %v142_v37, %v141_v36  ;;  %v283_v36 = vld [vmem:[%s477_s8] ss:$0 sm:$0xff] }
 0x142   :  { %v144_v39 = vrot.slane %v143_v38, 1 }
 0x144   :  { %v145_v40 = vadd.f32 %v144_v39, %v143_v38 }
 0x146   :  { %v146_v42 = vmul.f32 0.0625, %v145_v40 }
 0x148   :  { %v147_v44 = vsub.f32 %v122_v28, %v146_v42  ;;  %v148_v45 = vsub.f32 %v125_v30, %v146_v42 }
 0x14a   :  { %v149_v47 = vmul.f32 %v147_v44, %v130_v25  ;;  %v150_v48 = vmul.f32 %v148_v45, %v135_v31 }
 0x14c   :  { %v151_v50 = vmul.f32 %v149_v47, %v149_v47  ;;  %v152_v51 = vmul.f32 %v150_v48, %v150_v48 }
 0x14e   :  { %v153_v53 = vadd.f32 %v152_v51, %v151_v50 }
 0x150   :  { %v154_v55 = vrot.slane %v153_v53, 4 }
 0x152   :  { %v155_v57 = vadd.f32 %v154_v55, %v153_v53 }
 0x154   :  { %v156_v59 = vrot.slane %v155_v57, 2 }
 0x156   :  { %v157_v62 = vadd.f32 %v156_v59, %v155_v57 }
 0x158   :  { %v158_v0 = vrot.slane %v157_v62, 1 }
 0x15a   :  { %v159_v2 = vadd.f32 %v158_v0, %v157_v62 }
 0x15c   :  { %v160_v4 = vmul.f32 0.0625, %v159_v2 }
 0x15e   :  { %v161_v6 = vadd.f32 1e-05, %v160_v4 }
 0x160   :  { %284 = vrsqrt.f32 %v161_v6  ;;  %vm168_vm2 = vweird.f32 %v161_v6 }
 0x166   :  { %v285_v9 = vpop.eup %284 }
 0x167   :  { %v163_v10 = vmul.f32 %v285_v9, %v161_v6  ;;  %vm169_vm1 = vweird.f32 %v285_v9 }
 0x168   :  { %vm170_vm3 = vmor %vm168_vm2, %vm169_vm1 }
 0x169   :  { %v164_v11 = vmul.f32 %v285_v9, %v163_v10 }
 0x16b   :  { %v165_v12 = vmul.f32 0.5, %v164_v11 }
 0x16d   :  { %v166_v13 = vsub.f32 1.5, %v165_v12 }
 0x16f   :  { %v167_v14 = vmul.f32 %v285_v9, %v166_v13 }
 0x171   :  { %v171_v16 = vsel %vm170_vm3, %v285_v9, %v167_v14 }
 0x172   :  { %v172_v17 = vmul.f32 %v171_v16, %v147_v44  ;;  %v173_v18 = vmul.f32 %v171_v16, %v148_v45 }
 0x174   :  { %v179_v20 = vmul.f32 %v281_v15, %v173_v18  ;;  %v178_v21 = vmul.f32 %v281_v15, %v172_v17 }
 0x176   :  { %v184_v22 = vadd.f32 %v282_v19, %v178_v21  ;;  %v185_v25 = vadd.f32 %v282_v19, %v179_v20 }
 0x178   :  { %v188_v26 = vmul.f32 1.442695, %v184_v22  ;;  %v190_v27 = vmul.f32 1.442695, %v185_v25  ;;  %vm186_vm4 = vcmp.gt.f32.partialorder %v184_v22, 0.0  ;;  %vm187_vm5 = vcmp.gt.f32.partialorder %v185_v25, 0.0 }
 0x17a   :  { %286 = vpow2.f32 %v188_v26 }
 0x17b   :  { %288 = vpow2.f32 %v190_v27 }
 0x180   :  { %v287_v28 = vpop.eup %286 }
 0x181   :  { %v271_v29 = vadd.f32 -1.0, %v287_v28  ;;  %v289_v31 = vpop.eup %288 }
 0x182   :  { %v272_v32 = vadd.f32 -1.0, %v289_v31 }
 0x183   :  { %v194_v30 = vsel %vm186_vm4, %v184_v22, %v271_v29 }
 0x184   :  { %228 = vmatmul.f32.vlgmr.msra.gmra.mxu2 %v194_v30  ;;  %v195_v33 = vsel %vm187_vm5, %v185_v25, %v272_v32 }
 0x18c   :  { %231 = vmatmul.f32.gmra.mxu2 %v195_v33 }
 0x207   :  { %v229_v34 = vpop.f32.mrf.mxu2 }
 0x20f   :  { %v232_v35 = vpop.f32.mrf.mxu2 }
 0x210   :  { %253 = vmatpush.msra.mxu3 %v232_v35 }
 0x212   :  { %254 = vmatpush.msra.mxu3 %v229_v34 }
 0x213   :  { %273 = vmatmul.msk.f32.vlgmr.msra.gmra.mxu3 %vm97_vm0, %v436_v23 }
 0x21b   :  { %274 = vmatmul.msk.f32.gmra.mxu3 %vm97_vm0, %v443_v24 }
 0x296   :  { %v256_v37 = vpop.f32.mrf.mxu3 }
 0x297   :  { %v257_v38 = vadd.f32 %v283_v36, %v256_v37 }
 0x299   :  { %262 = vst [vmem:[%s478_s9] sm:$0xff] %v257_v38 }
 0x29e   :  { %v259_v39 = vpop.f32.mrf.mxu3 }
 0x29f   :  { %v260_v40 = vadd.f32 %v283_v36, %v259_v39 }
 0x2a1   :  { %263 = vst [vmem:[%s478_s9 + $0x8] sm:$0xff] %v260_v40 }
 0x2a2   :  { %268 = vsyncpa [#allocation3], 1 }

// kernel: graph_autoencoder_forward.3
= control target key start
LH: loop header
LB: loop body
LE: loop exit
PB: predicated region body
PF: predicated region fallthrough
CT: control target
= control target key end

     0   :  { %s4437_s24 = smov 0   ;;  %s6469_s0 = inlined_call_operand.vmem [shape: f32[2,16,128], index: 0, kind: input, shape index: {}, may-alias: {0,6}]   ;;  %s6470_s1 = inlined_call_operand.vmem [shape: f32[2,1,16], index: 1, kind: input, shape index: {}]   ;;  %s6471_s2 = inlined_call_operand.vmem [shape: f32[2,6,128,128], index: 2, kind: input, shape index: {}]   ;;  %s6472_s3 = inlined_call_operand.vmem [shape: f32[2,16,128], index: 3, kind: input, shape index: {}]   ;;  %s6473_s4 = inlined_call_operand.vmem [shape: f32[4,128,128], index: 4, kind: input, shape index: {}]   ;;  %s6474_s5 = inlined_call_operand.vmem [shape: f32[8,128], index: 5, kind: input, shape index: {}]   ;;  %s6475_s6 = inlined_call_operand.vmem [shape: f32[2,16,128], index: 6, kind: output, shape index: {0}, may-alias: {0,6}]   ;;  %s6476_s7 = inlined_call_operand.vmem [shape: f32[2,16,128], index: 7, kind: output, shape index: {1}]  }
   0x1 LB: > { %s3964_s25 = sadd.s32 4294967295, %s4389_s24   ;;  %p3968_p0 = scmp.ge.s32.totalorder %s4389_s24, 1  ;;  %s4389_s24 = sphi %s4437_s24, %s18_s24  }
   0x2   : > { %p248_p1 = scmp.lt.s32.totalorder %s4389_s24, 3 }
   0x4   : > { %p249_p2 = pnand %p3968_p0, %p248_p1 }
   0x5   : > { %p288_p3 = scmp.lt.s32.totalorder (!%p249_p2), %s3964_s25, 1  ;;  %s4391_s10 = smov (!%p249_p2), 32  }
   0x6   : > { %252 = sbr.rel (%p249_p2) target bundleno = 4440 (0x1158), region = 44  ;;  %s4392_s12 = smov (!%p249_p2), 64  }
   0x7   : > { %s4393_s13 = smov (!%p249_p2), 96  }
   0xb   : > { %v3991_v0 = vld [vmem:[%s6471_s2 + $0xf8] sm:$0xff]  ;;  %v3990_v1 = vld [vmem:[%s6471_s2 + $0xf0] sm:$0xff]  ;;  %v3989_v3 = vld [vmem:[%s6471_s2 + $0xe8] sm:$0xff]  ;;  %s6478_s25 = smov (!%p288_p3, %s3964_s25), 1  ;;  %v4394_v48 = vmov 1983009808  }
   0xc   : > { %616 = vmatpush.msra.mxu1 %v3991_v0  ;;  %v332_v2 = vld [vmem:[%s6471_s2 + $0x78] sm:$0xff]  ;;  %v331_v4 = vld [vmem:[%s6471_s2 + $0x70] sm:$0xff]  ;;  %v330_v5 = vld [vmem:[%s6471_s2 + $0x68] sm:$0xff]  ;;  %s4527_s11 = sshll.u32 %s6478_s25, 4  ;;  %v383_v49 = vunpack.c.l.s4 %v4394_v48  ;;  %vm378_vm0 = vcmask 1047556   ;;  %vm1160_vm1 = vcmask 261120   ;;  %s295_s16 = scalar_lea.vmem %s6470_s1, %s6478_s25 }
   0xd   : > { %334 = vmatpush.msra.mxu0 %v332_v2  ;;  %v3988_v6 = vld [vmem:[%s6471_s2 + $0xe0] sm:$0xff]  ;;  %v3987_v8 = vld [vmem:[%s6471_s2 + $0xd8] sm:$0xff]  ;;  %v3986_v10 = vld [vmem:[%s6471_s2 + $0xd0] sm:$0xff]  ;;  %s4545_s22 = scalar_lea.vmem %s6469_s0, %s4527_s11  ;;  %vm1320_vm2 = vcmask 130048   ;;  %vm1771_vm3 = vcmask 523264   ;;  %vm1774_vm4 = vcmask 785408   ;;  %s300_s20 = scalar_lea.vmem %s6475_s6, %s4527_s11 }
   0xe   : > { %617 = vmatpush.msra.mxu1 %v3990_v1  ;;  %v329_v7 = vld [vmem:[%s6471_s2 + $0x60] sm:$0xff]  ;;  %v328_v9 = vld [vmem:[%s6471_s2 + $0x58] sm:$0xff]  ;;  %v327_v11 = vld [vmem:[%s6471_s2 + $0x50] sm:$0xff]  ;;  %v4597_v53 = vunpack.c.0.s8 %v383_v49  ;;  %v4395_v1 = vmov 1934713408   ;;  %s305_s21 = scalar_lea.vmem %s6476_s7, %s4527_s11 }
   0xf   : > { %335 = vmatpush.msra.mxu0 %v331_v4  ;;  %v3985_v12 = vld [vmem:[%s6471_s2 + $0xc8] sm:$0xff]  ;;  %v3984_v14 = vld [vmem:[%s6471_s2 + $0xc0] sm:$0xff]  ;;  %v3983_v16 = vld [vmem:[%s6471_s2 + $0xb8] sm:$0xff]  ;;  %v407_v2 = vunpack.c.l.s4 %v4395_v1 }
  0x10   : > { %618 = vmatpush.msra.mxu1 %v3989_v3  ;;  %v326_v13 = vld [vmem:[%s6471_s2 + $0x48] sm:$0xff]  ;;  %v325_v15 = vld [vmem:[%s6471_s2 + $0x40] sm:$0xff]  ;;  %v324_v17 = vld [vmem:[%s6471_s2 + $0x38] sm:$0xff] }
  0x11   : > { %336 = vmatpush.msra.mxu0 %v330_v5  ;;  %v3982_v18 = vld [vmem:[%s6471_s2 + $0xb0] sm:$0xff]  ;;  %v3981_v20 = vld [vmem:[%s6471_s2 + $0xa8] sm:$0xff]  ;;  %v3980_v22 = vld [vmem:[%s6471_s2 + $0xa0] sm:$0xff] }
  0x12   : > { %619 = vmatpush.msra.mxu1 %v3988_v6  ;;  %v323_v19 = vld [vmem:[%s6471_s2 + $0x30] sm:$0xff]  ;;  %v322_v21 = vld [vmem:[%s6471_s2 + $0x28] sm:$0xff]  ;;  %v321_v23 = vld [vmem:[%s6471_s2 + $0x20] sm:$0xff] }
  0x13   : > { %337 = vmatpush.msra.mxu0 %v329_v7  ;;  %v3979_v24 = vld [vmem:[%s6471_s2 + $0x98] sm:$0xff]  ;;  %v3978_v26 = vld [vmem:[%s6471_s2 + $0x90] sm:$0xff]  ;;  %v3977_v28 = vld [vmem:[%s6471_s2 + $0x88] sm:$0xff] }
  0x14   : > { %620 = vmatpush.msra.mxu1 %v3987_v8  ;;  %v320_v25 = vld [vmem:[%s6471_s2 + $0x18] sm:$0xff]  ;;  %v319_v27 = vld [vmem:[%s6471_s2 + $0x10] sm:$0xff]  ;;  %v318_v29 = vld [vmem:[%s6471_s2 + $0x8] sm:$0xff] }
  0x15   : > { %338 = vmatpush.msra.mxu0 %v328_v9  ;;  %v3976_v30 = vld [vmem:[%s6471_s2 + $0x80] sm:$0xff]  ;;  %v4562_v33 = vld [vmem:[%s4545_s22 + $0x8] sm:$0xff] }
  0x16   : > { %621 = vmatpush.msra.mxu1 %v3986_v10  ;;  %v4554_v31 = vld [vmem:[%s4545_s22] sm:$0xff] }
  0x17   : > { %339 = vmatpush.msra.mxu0 %v327_v11  ;;  %v317_v32 = vld [vmem:[%s6471_s2] sm:$0xff] }
  0x18   : > { %622 = vmatpush.msra.mxu1 %v3985_v12  ;;  %v4569_v34 = vld [vmem:[%s6472_s3] sm:$0xff] }
  0x19   : > { %340 = vmatpush.msra.mxu0 %v326_v13  ;;  %v615_v35 = vperm.slane %v4569_v34, 1  ;;  %v333_v38 = vperm.slane %v4569_v34, 0 }
  0x1a   : > { %623 = vmatpush.msra.mxu1 %v3984_v14 }
  0x1b   : > { %341 = vmatpush.msra.mxu0 %v325_v15  ;;  %v4616_v15 = vunpack.c.0.s8 %v407_v2 }
  0x1c   : > { %624 = vmatpush.msra.mxu1 %v3983_v16 }
  0x1d   : > { %342 = vmatpush.msra.mxu0 %v324_v17 }
  0x1e   : > { %625 = vmatpush.msra.mxu1 %v3982_v18 }
  0x1f   : > { %343 = vmatpush.msra.mxu0 %v323_v19 }
  0x20   : > { %626 = vmatpush.msra.mxu1 %v3981_v20 }
  0x21   : > { %344 = vmatpush.msra.mxu0 %v322_v21 }
  0x22   : > { %627 = vmatpush.msra.mxu1 %v3980_v22 }
  0x23   : > { %345 = vmatpush.msra.mxu0 %v321_v23 }
  0x24   : > { %628 = vmatpush.msra.mxu1 %v3979_v24 }
  0x25   : > { %346 = vmatpush.msra.mxu0 %v320_v25 }
  0x26   : > { %629 = vmatpush.msra.mxu1 %v3978_v26 }
  0x27   : > { %347 = vmatpush.msra.mxu0 %v319_v27 }
  0x28   : > { %630 = vmatpush.msra.mxu1 %v3977_v28 }
  0x29   : > { %348 = vmatpush.msra.mxu0 %v318_v29 }
  0x2a   : > { %631 = vmatpush.msra.mxu1 %v3976_v30 }
  0x2b   : > { %632 = vmatmul.f32.vlgmr.msra.gmra.mxu1 %v4554_v31  ;;  %349 = vmatpush.msra.mxu0 %v317_v32 }
  0x2c   : > { %350 = vmatmul.f32.vlgmr.msra.gmra.mxu0 %v4554_v31 }
  0x33   : > { %635 = vmatmul.f32.gmra.mxu1 %v4562_v33 }
  0x34   : > { %353 = vmatmul.f32.gmra.mxu0 %v4562_v33 }
  0xa8   : > { %v633_v36 = vpop.f32.mrf.mxu1 }
  0xa9   : > { %v4572_v37 = vadd.f32 %v633_v36, %v615_v35  ;;  %v351_v39 = vpop.f32.mrf.mxu0 }
  0xaa   : > { %v352_v40 = vadd.f32 %v351_v39, %v333_v38 }
  0xab   : > { %653 = vrot.lane.b32.xlu2 %v4572_v37, %s4391_s10  ;;  %647 = vrot.lane.b32.xlu1 %v4572_v37, %s4392_s12  ;;  %v661_v60 = vrot.slane %v4572_v37, 4 }
  0xac   : > { %v380_v52 = vrot.slane %v352_v40, 4 }
  0xb0   : > { %v636_v41 = vpop.f32.mrf.mxu1 }
  0xb1   : > { %v637_v42 = vadd.f32 %v636_v41, %v615_v35  ;;  %v354_v43 = vpop.f32.mrf.mxu0 }
  0xb2   : > { %v4585_v44 = vadd.f32 %v354_v43, %v333_v38 }
  0xb3   : > { %649 = vrot.lane.b32.xlu0 %v637_v42, %s4392_s12  ;;  %643 = vrot.lane.b32.xlu1 %v637_v42, %s4393_s13  ;;  %v717_v55 = vrot.slane %v637_v42, 4 }
  0xb4   : > { %365 = vrot.lane.b32.xlu2 %v352_v40, %s4392_s12  ;;  %v436_v6 = vrot.slane %v4585_v44, 4 }
  0xbb   : > { %655 = vrot.lane.b32.xlu0 %v637_v42, %s4391_s10  ;;  %371 = vrot.lane.b32.xlu1 %v352_v40, %s4391_s10 }
  0xbc   : > { %359 = vrot.lane.b32.xlu2 %v352_v40, %s4393_s13 }
  0xc3   : > { %641 = vrot.lane.b32.xlu0 %v4572_v37, %s4393_s13  ;;  %373 = vrot.lane.b32.xlu1 %v4585_v44, %s4391_s10 }
  0xc4   : > { %361 = vrot.lane.b32.xlu2 %v4585_v44, %s4393_s13 }
  0xcb   : > { %367 = vrot.lane.b32.xlu0 %v4585_v44, %s4392_s12 }
 0x105   : > { %v4595_v45 = vpop.permute.xlu2 %653 }
 0x106   : > { %v671_v7 = vrot.slane %v4595_v45, 4 }
 0x10e   : > { %v366_v46 = vpop.permute.xlu2 %365 }
 0x10f   : > { %v377_v50 = vrot.slane %v366_v46, 4  ;;  %v381_v58 = vsel %vm378_vm0, %v366_v46, %v380_v52 }
 0x110   : > { %v389_v63 = vperm.slane %v381_v58, %v4597_v53 }
 0x111   : > { %v379_v57 = vsel %vm378_vm0, %v377_v50, %v352_v40 }
 0x112   : > { %v385_v62 = vperm.slane %v379_v57, %v4597_v53  ;;  %v416_v13 = vrot.slane %v389_v63, 4 }
 0x114   : > { %v404_v12 = vrot.slane %v385_v62, 4 }
 0x116   : > { %v360_v51 = vpop.permute.xlu2 %359 }
 0x117   : > { %v392_v8 = vrot.slane %v360_v51, 4 }
 0x11d   : > { %v648_v47 = vpop.permute.xlu1 %647 }
 0x11e   : > { %v662_v3 = vsel %vm378_vm0, %v648_v47, %v661_v60  ;;  %v659_v4 = vrot.slane %v648_v47, 4  ;;  %v4611_v11 = vpop.permute.xlu2 %361 }
 0x11f   : > { %v4614_v14 = vperm.slane %v662_v3, %v4597_v53  ;;  %v448_v27 = vrot.slane %v4611_v11, 4 }
 0x120   : > { %v660_v22 = vsel %vm378_vm0, %v659_v4, %v4572_v37 }
 0x121   : > { %v666_v37 = vperm.slane %v660_v22, %v4597_v53 }
 0x123   : > { %v685_v2 = vrot.slane %v666_v37, 4 }
 0x125   : > { %v650_v54 = vpop.permute.xlu0 %649  ;;  %v644_v56 = vpop.permute.xlu1 %643 }
 0x126   : > { %v715_v59 = vrot.slane %v650_v54, 4  ;;  %v718_v61 = vsel %vm378_vm0, %v650_v54, %v717_v55  ;;  %v729_v10 = vrot.slane %v644_v56, 4 }
 0x127   : > { %v726_v5 = vperm.slane %v718_v61, %v4597_v53  ;;  %v697_v61 = vrot.slane %v4614_v14, 4 }
 0x128   : > { %v716_v0 = vsel %vm378_vm0, %v715_v59, %v637_v42 }
 0x129   : > { %v722_v9 = vperm.slane %v716_v0, %v4597_v53  ;;  %v753_v23 = vrot.slane %v726_v5, 4 }
 0x12b   : > { %v741_v26 = vrot.slane %v722_v9, 4 }
 0x12d   : > { %v656_v16 = vpop.permute.xlu0 %655  ;;  %v372_v17 = vpop.permute.xlu1 %371 }
 0x12e   : > { %v727_v18 = vrot.slane %v656_v16, 4  ;;  %v730_v19 = vsel %vm378_vm0, %v656_v16, %v729_v10  ;;  %v390_v20 = vrot.slane %v372_v17, 4  ;;  %v393_v21 = vsel %vm378_vm0, %v372_v17, %v392_v8 }
 0x12f   : > { %v738_v24 = vperm.slane %v730_v19, %v4597_v53  ;;  %v401_v25 = vperm.slane %v393_v21, %v4597_v53 }
 0x130   : > { %v728_v28 = vsel %vm378_vm0, %v727_v18, %v644_v56  ;;  %v391_v29 = vsel %vm378_vm0, %v390_v20, %v360_v51 }
 0x131   : > { %v734_v30 = vperm.slane %v728_v28, %v4597_v53  ;;  %v751_v32 = vrot.slane %v738_v24, 4  ;;  %v754_v35 = vsel %vm378_vm0, %v738_v24, %v753_v23  ;;  %v397_v36 = vperm.slane %v391_v29, %v4597_v53 }
 0x132   : > { %v762_v38 = vperm.slane %v754_v35, %v4616_v15  ;;  %v414_v39 = vrot.slane %v401_v25, 4  ;;  %v417_v40 = vsel %vm378_vm0, %v401_v25, %v416_v13 }
 0x133   : > { %v739_v41 = vrot.slane %v734_v30, 4  ;;  %v742_v42 = vsel %vm378_vm0, %v734_v30, %v741_v26  ;;  %v752_v43 = vsel %vm378_vm0, %v751_v32, %v726_v5  ;;  %v402_v46 = vrot.slane %v397_v36, 4 }
 0x134   : > { %v750_v47 = vperm.slane %v742_v42, %v4616_v15  ;;  %v758_v48 = vperm.slane %v752_v43, %v4616_v15  ;;  %v769_v49 = vrot.slane %v762_v38, 4  ;;  %v405_v50 = vsel %vm378_vm0, %v397_v36, %v404_v12 }
 0x135   : > { %v740_v51 = vsel %vm378_vm0, %v739_v41, %v722_v9  ;;  %v403_v52 = vsel %vm378_vm0, %v402_v46, %v385_v62  ;;  %v413_v54 = vperm.slane %v405_v50, %v4616_v15  ;;  %v415_v55 = vsel %vm378_vm0, %v414_v39, %v389_v63  ;;  %v642_v56 = vpop.permute.xlu0 %641  ;;  %v374_v5 = vpop.permute.xlu1 %373 }
 0x136   : > { %v4643_v57 = vperm.slane %v740_v51, %v4616_v15  ;;  %v4645_v58 = vrot.slane %v750_v47, 4  ;;  %v767_v59 = vrot.slane %v758_v48, 4  ;;  %v770_v60 = vsel %vm378_vm0, 0.0, %v769_v49 }
 0x137   : > { %v841_v0 = vrot.slane %v770_v60, 4  ;;  %v4650_v1 = vperm.slane %v403_v52, %v4616_v15  ;;  %v4653_v62 = vperm.slane %v415_v55, %v4616_v15  ;;  %v425_v4 = vperm.slane %v417_v40, %v4616_v15 }
 0x138   : > { %v4657_v63 = vsel %vm378_vm0, 0.0, %v4645_v58  ;;  %v768_v3 = vsel %vm378_vm0, 0.0, %v767_v59  ;;  %v763_v8 = vrot.slane %v4643_v57, 4  ;;  %v4663_v9 = vsel %vm378_vm0, %v769_v49, %v758_v48 }
 0x139   : > { %v426_v10 = vrot.slane %v4650_v1, 4  ;;  %v4666_v12 = vrot.slane %v413_v54, 4  ;;  %v430_v13 = vrot.slane %v4653_v62, 4  ;;  %v4669_v16 = vrot.slane %v425_v4, 4 }
 0x13a   : > { %v672_v17 = vsel %vm378_vm0, %v671_v7, %v642_v56  ;;  %v673_v18 = vrot.slane %v642_v56, 4  ;;  %v830_v19 = vrot.slane %v4657_v63, 4  ;;  %v4676_v20 = vsel %vm378_vm0, %v841_v0, %v768_v3 }
 0x13b   : > { %v678_v21 = vperm.slane %v672_v17, %v4597_v53  ;;  %v446_v22 = vrot.slane %v374_v5, 4  ;;  %v4680_v23 = vsel %vm378_vm0, 0.0, %v426_v10  ;;  %v4684_v24 = vsel %vm378_vm0, 0.0, %v4666_v12 }
 0x13c   : > { %v4687_v25 = vsel %vm378_vm0, 0.0, %v430_v13  ;;  %v674_v7 = vsel %vm378_vm0, %v4595_v45, %v673_v18  ;;  %v4693_v26 = vsel %vm378_vm0, 0.0, %v4669_v16  ;;  %v449_v38 = vsel %vm378_vm0, %v374_v5, %v448_v27 }
 0x13d   : > { %v682_v28 = vperm.slane %v674_v7, %v4597_v53  ;;  %v683_v29 = vrot.slane %v678_v21, 4  ;;  %v686_v30 = vsel %vm378_vm0, %v678_v21, %v685_v2  ;;  %v368_v32 = vpop.permute.xlu0 %367  ;;  %v447_v36 = vsel %vm378_vm0, %v446_v22, %v4611_v11  ;;  %v4007_v11 = vld [vmem:[%s6471_s2 + $0x178] sm:$0xff] }
 0x13e   : > { %v694_v35 = vperm.slane %v686_v30, %v4616_v15  ;;  %v434_v39 = vrot.slane %v368_v32, 4  ;;  %v453_v42 = vperm.slane %v447_v36, %v4597_v53  ;;  %v457_v48 = vperm.slane %v449_v38, %v4597_v53  ;;  %897 = vmatpush.msra.mxu2 %v4007_v11  ;;  %v4004_v38 = vld [vmem:[%s6471_s2 + $0x160] sm:$0xff] }
 0x13f   : > { %v684_v45 = vsel %vm378_vm0, %v683_v29, %v666_v37  ;;  %v695_v40 = vrot.slane %v682_v28, 4  ;;  %v698_v41 = vsel %vm378_vm0, %v682_v28, %v697_v61  ;;  %v495_v27 = vrot.slane %v4684_v24, 4  ;;  %v4006_v28 = vld [vmem:[%s6471_s2 + $0x170] sm:$0xff] }
 0x140   : > { %v690_v43 = vperm.slane %v684_v45, %v4616_v15  ;;  %v706_v46 = vperm.slane %v698_v41, %v4616_v15  ;;  %v709_v47 = vrot.slane %v694_v35, 4  ;;  %v435_v49 = vsel %vm378_vm0, %v434_v39, %v4585_v44  ;;  %898 = vmatpush.msra.mxu2 %v4006_v28  ;;  %v4005_v35 = vld [vmem:[%s6471_s2 + $0x168] sm:$0xff] }
 0x141   : > { %v696_v37 = vsel %vm378_vm0, %v695_v40, %v4614_v14  ;;  %v437_v50 = vsel %vm378_vm0, %v368_v32, %v436_v6  ;;  %v506_v56 = vrot.slane %v4693_v26, 4  ;;  %v458_v60 = vrot.slane %v453_v42, 4 }
 0x142   : > { %v702_v51 = vperm.slane %v696_v37, %v4616_v15  ;;  %v707_v52 = vrot.slane %v690_v43, 4  ;;  %v710_v54 = vsel %vm378_vm0, 0.0, %v709_v47  ;;  %v713_v55 = vrot.slane %v706_v46, 4  ;;  %899 = vmatpush.msra.mxu2 %v4005_v35 }
 0x143   : > { %v771_v59 = vsel %vm378_vm0, %v709_v47, %v690_v43  ;;  %v441_v14 = vperm.slane %v435_v49, %v4597_v53  ;;  %v776_v0 = vrot.slane %v710_v54, 4  ;;  %v470_v44 = vrot.slane %v457_v48, 4  ;;  %v4003_v47 = vld [vmem:[%s6471_s2 + $0x158] sm:$0xff] }
 0x144   : > { %v708_v61 = vsel %vm378_vm0, 0.0, %v707_v52  ;;  %v445_v6 = vperm.slane %v437_v50, %v4597_v53  ;;  %v711_v2 = vrot.slane %v702_v51, 4  ;;  %v714_v63 = vsel %vm378_vm0, 0.0, %v713_v55  ;;  %900 = vmatpush.msra.mxu2 %v4004_v38 }
 0x145   : > { %v459_v3 = vsel %vm378_vm0, %v458_v60, %v441_v14  ;;  %v460_v4 = vrot.slane %v441_v14, 4  ;;  %v764_v17 = vsel %vm378_vm0, 0.0, %v763_v8  ;;  %v825_v22 = vsel %vm378_vm0, %v4645_v58, %v4643_v57 }
 0x146   : > { %v4728_v5 = vperm.slane %v459_v3, %v4616_v15  ;;  %v471_v10 = vsel %vm378_vm0, %v470_v44, %v445_v6  ;;  %v472_v13 = vrot.slane %v445_v6, 4  ;;  %v831_v7 = vsel %vm378_vm0, %v830_v19, %v764_v17  ;;  %901 = vmatpush.msra.mxu2 %v4003_v47 }
 0x147   : > { %v461_v18 = vsel %vm378_vm0, %v453_v42, %v460_v4  ;;  %v4734_v21 = vperm.slane %v471_v10, %v4616_v15  ;;  %v777_v29 = vsel %vm378_vm0, %v776_v0, %v708_v61  ;;  %v787_v57 = vrot.slane %v714_v63, 4 }
 0x148   : > { %v469_v30 = vperm.slane %v461_v18, %v4616_v15  ;;  %v473_v8 = vsel %vm378_vm0, %v457_v48, %v472_v13  ;;  %v482_v32 = vrot.slane %v4728_v5, 4  ;;  %v835_v36 = vperm.slane %v831_v7, %v4597_v53 }
 0x149   : > { %v481_v58 = vperm.slane %v473_v8, %v4616_v15  ;;  %v486_v19 = vrot.slane %v4734_v21, 4  ;;  %v829_v45 = vperm.slane %v825_v22, %v4597_v53  ;;  %v840_v40 = vperm.slane %v4663_v9, %v4597_v53  ;;  %v4000_v22 = vld [vmem:[%s6471_s2 + $0x140] sm:$0xff] }
 0x14a   : > { %v4756_v39 = vrot.slane %v469_v30, 4  ;;  %v846_v41 = vperm.slane %v4676_v20, %v4597_v53  ;;  %v4764_v42 = vsel %vm378_vm0, 0.0, %v482_v32  ;;  %v847_v46 = vrot.slane %v835_v36, 4 }
 0x14b   : > { %v4766_v43 = vrot.slane %v481_v58, 4  ;;  %v712_v11 = vsel %vm378_vm0, 0.0, %v711_v2  ;;  %v4777_v20 = vperm.slane %v777_v29, %v4597_v53  ;;  %v487_v37 = vsel %vm378_vm0, 0.0, %v486_v19  ;;  %v3999_v58 = vld [vmem:[%s6471_s2 + $0x138] sm:$0xff] }
 0x14c   : > { %v4773_v48 = vsel %vm378_vm0, 0.0, %v4756_v39  ;;  %v859_v9 = vrot.slane %v846_v41, 4  ;;  %v848_v50 = vsel %vm378_vm0, %v847_v46, %v829_v45  ;;  %v4784_v52 = vperm.slane %v771_v59, %v4597_v53  ;;  %v4002_v59 = vld [vmem:[%s6471_s2 + $0x150] sm:$0xff] }
 0x14d   : > { %v489_v49 = vsel %vm378_vm0, 0.0, %v4766_v43  ;;  %v549_v54 = vrot.slane %v4773_v48, 4  ;;  %v854_v60 = vperm.slane %v848_v50, %v4616_v15  ;;  %v782_v61 = vsel %vm378_vm0, %v713_v55, %v702_v51  ;;  %902 = vmatpush.msra.mxu2 %v4002_v59  ;;  %v4001_v51 = vld [vmem:[%s6471_s2 + $0x148] sm:$0xff] }
 0x14e   : > { %v860_v14 = vsel %vm378_vm0, %v859_v9, %v840_v40  ;;  %v788_v44 = vsel %vm378_vm0, %v787_v57, %v712_v11  ;;  %v793_v6 = vrot.slane %v4777_v20, 4  ;;  %v849_v2 = vrot.slane %v829_v45, 4 }
 0x14f   : > { %v866_v0 = vperm.slane %v860_v14, %v4616_v15  ;;  %v560_v63 = vrot.slane %v489_v49, 4  ;;  %v873_v3 = vrot.slane %v854_v60, 4  ;;  %v792_v4 = vperm.slane %v788_v44, %v4597_v53  ;;  %903 = vmatpush.msra.mxu2 %v4001_v51  ;;  %v3997_v14 = vld [vmem:[%s6471_s2 + $0x128] sm:$0xff] }
 0x150   : > { %v861_v10 = vrot.slane %v840_v40, 4  ;;  %v786_v13 = vperm.slane %v782_v61, %v4597_v53  ;;  %v794_v17 = vsel %vm378_vm0, %v793_v6, %v4784_v52  ;;  %v850_v18 = vsel %vm378_vm0, %v835_v36, %v849_v2 }
 0x151   : > { %v871_v55 = vrot.slane %v866_v0, 4  ;;  %v874_v7 = vsel %vm378_vm0, %v866_v0, %v873_v3  ;;  %v800_v28 = vperm.slane %v794_v17, %v4616_v15  ;;  %v805_v29 = vrot.slane %v792_v4, 4  ;;  %904 = vmatpush.msra.mxu2 %v4000_v22  ;;  %v3996_v3 = vld [vmem:[%s6471_s2 + $0x120] sm:$0xff]  ;;  %v3995_v22 = vld [vmem:[%s6471_s2 + $0x118] sm:$0xff] }
 0x152   : > { %v858_v30 = vperm.slane %v850_v18, %v4616_v15  ;;  %4012 = vmatpush.xpose.msk.msra.mxu3 %vm1160_vm1, %v874_v7  ;;  %v862_v32 = vsel %vm378_vm0, %v846_v41, %v861_v10  ;;  %v490_v35 = vsel %vm378_vm0, %v4666_v12, %v4650_v1  ;;  %v496_v57 = vsel %vm378_vm0, %v495_v27, %v4680_v23 }
 0x153   : > { %v872_v8 = vsel %vm378_vm0, %v871_v55, %v854_v60  ;;  %v806_v19 = vsel %vm378_vm0, %v805_v29, %v786_v13  ;;  %v819_v36 = vrot.slane %v800_v28, 4  ;;  %v870_v38 = vperm.slane %v862_v32, %v4616_v15  ;;  %905 = vmatpush.msra.mxu2 %v3999_v58  ;;  %v3993_v58 = vld [vmem:[%s6471_s2 + $0x108] sm:$0xff] }
 0x154   : > { %4008 = vmatpush.xpose.msk.msrb.mxu0 %vm1160_vm1, %v872_v8  ;;  %v877_v45 = vrot.slane %v858_v30, 4  ;;  %v812_v1 = vperm.slane %v806_v19, %v4616_v15  ;;  %v4828_v12 = vperm.slane %v496_v57, %v4597_v53  ;;  %v501_v23 = vsel %vm378_vm0, %v4669_v16, %v4653_v62  ;;  %v3994_v8 = vld [vmem:[%s6471_s2 + $0x110] sm:$0xff] }
 0x155   : > { %v507_v24 = vsel %vm378_vm0, %v506_v56, %v4687_v25  ;;  %v561_v27 = vsel %vm378_vm0, %v560_v63, %v487_v37  ;;  %v875_v40 = vrot.slane %v870_v38, 4  ;;  %v4839_v41 = vperm.slane %v490_v35, %v4597_v53  ;;  %v3998_v25 = vld [vmem:[%s6471_s2 + $0x130] sm:$0xff] }
 0x156   : > { %v4842_v46 = vperm.slane %v507_v24, %v4597_v53  ;;  %v820_v47 = vsel %vm378_vm0, %v812_v1, %v819_v36  ;;  %v817_v9 = vrot.slane %v812_v1, 4  ;;  %v512_v62 = vrot.slane %v4828_v12, 4  ;;  %906 = vmatpush.msra.mxu2 %v3998_v25  ;;  %v3992_v1 = vld [vmem:[%s6471_s2 + $0x100] sm:$0xff] }
 0x157   : > { %v795_v16 = vrot.slane %v4784_v52, 4  ;;  %4013 = vmatpush.xpose.msk.msra.mxu3 %vm1160_vm1, %v820_v47  ;;  %v876_v26 = vsel %vm378_vm0, %v875_v40, %v858_v30  ;;  %v505_v56 = vperm.slane %v501_v23, %v4597_v53  ;;  %v807_v37 = vrot.slane %v786_v13, 4 }
 0x158   : > { %v524_v11 = vrot.slane %v4842_v46, 4  ;;  %v818_v49 = vsel %vm378_vm0, %v817_v9, %v800_v28  ;;  %v513_v50 = vsel %vm378_vm0, %v512_v62, %v4839_v41  ;;  %v878_v52 = vsel %vm378_vm0, %v870_v38, %v877_v45  ;;  %907 = vmatpush.msra.mxu2 %v3997_v14 }
 0x159   : > { %v796_v60 = vsel %vm378_vm0, %v4777_v20, %v795_v16  ;;  %4009 = vmatpush.xpose.msk.msrb.mxu0 %vm1160_vm1, %v818_v49  ;;  %v519_v61 = vperm.slane %v513_v50, %v4616_v15  ;;  %v808_v6 = vsel %vm378_vm0, %v792_v4, %v807_v37  ;;  %v544_v59 = vsel %vm378_vm0, %v4756_v39, %v4728_v5  ;;  %v308_v50 = vld [vmem:[%s295_s16] sm:$0x1] }
 0x15a   : > { %v525_v0 = vsel %vm378_vm0, %v524_v11, %v505_v56  ;;  %v804_v44 = vperm.slane %v796_v60, %v4616_v15  ;;  %v816_v20 = vperm.slane %v808_v6, %v4616_v15  ;;  %v550_v63 = vsel %vm378_vm0, %v549_v54, %v4764_v42  ;;  %908 = vmatpush.msra.mxu2 %v3996_v3 }
 0x15b   : > { %4016 = vmatpush.xpose.msk.msrb.mxu3 %vm1160_vm1, %v876_v26  ;;  %v531_v2 = vperm.slane %v525_v0, %v4616_v15  ;;  %v538_v4 = vrot.slane %v519_v61, 4  ;;  %v554_v51 = vperm.slane %v550_v63, %v4597_v53  ;;  %v555_v55 = vsel %vm378_vm0, %v4766_v43, %v4734_v21 }
 0x15c   : > { %v823_v10 = vrot.slane %v804_v44, 4  ;;  %v526_v13 = vrot.slane %v505_v56, 4  ;;  %v821_v39 = vrot.slane %v816_v20, 4  ;;  %v565_v48 = vperm.slane %v561_v27, %v4597_v53  ;;  %909 = vmatpush.msra.mxu2 %v3995_v22 }
 0x15d   : > { %4020 = vmatpush.xpose.msk.msra.mxu0 %vm1160_vm1, %v878_v52  ;;  %v536_v5 = vrot.slane %v531_v2, 4  ;;  %v539_v42 = vsel %vm378_vm0, %v531_v2, %v538_v4  ;;  %v548_v17 = vperm.slane %v544_v59, %v4597_v53  ;;  %v566_v18 = vrot.slane %v554_v51, 4 }
 0x15e   : > { %v824_v54 = vsel %vm378_vm0, %v816_v20, %v823_v10  ;;  %4014 = vmatmul.msk.f32.vlgmr.msra.gmra.mxu3 %vm1160_vm1, %v539_v42  ;;  %v822_v43 = vsel %vm378_vm0, %v821_v39, %v804_v44  ;;  %v559_v7 = vperm.slane %v555_v55, %v4597_v53  ;;  %v578_v28 = vrot.slane %v565_v48, 4  ;;  %910 = vmatpush.msra.mxu2 %v3994_v8 }
 0x15f   : > { %v537_v21 = vsel %vm378_vm0, %v536_v5, %v519_v61  ;;  %4017 = vmatpush.xpose.msk.msrb.mxu3 %vm1160_vm1, %v822_v43  ;;  %v567_v29 = vsel %vm378_vm0, %v566_v18, %v548_v17  ;;  %v514_v30 = vrot.slane %v4839_v41, 4  ;;  %v527_v36 = vsel %vm378_vm0, %v4842_v46, %v526_v13 }
 0x160   : > { %4010 = vmatmul.msk.f32.vlgmr.msrb.gmra.mxu0 %vm1160_vm1, %v537_v21  ;;  %v573_v32 = vperm.slane %v567_v29, %v4616_v15  ;;  %v579_v35 = vsel %vm378_vm0, %v578_v28, %v559_v7  ;;  %911 = vmatpush.msra.mxu2 %v3993_v58  ;;  %v535_v24 = vperm.slane %v527_v36, %v4616_v15  ;;  %v580_v41 = vrot.slane %v559_v7, 4 }
 0x161   : > { %4021 = vmatpush.xpose.msk.msra.mxu0 %vm1160_vm1, %v824_v54  ;;  %v585_v57 = vperm.slane %v579_v35, %v4616_v15  ;;  %v515_v45 = vsel %vm378_vm0, %v4828_v12, %v514_v30  ;;  %v568_v12 = vrot.slane %v548_v17, 4  ;;  %v314_v52 = vmul.f32 -1e+09, %v308_v50 }
 0x162   : > { %v592_v19 = vrot.slane %v573_v32, 4  ;;  %v523_v40 = vperm.slane %v515_v45, %v4616_v15  ;;  %912 = vmatpush.msra.mxu2 %v3992_v1  ;;  %v540_v46 = vrot.slane %v535_v24, 4  ;;  %v581_v9 = vsel %vm378_vm0, %v565_v48, %v580_v41 }
 0x163   : > { %v590_v38 = vrot.slane %v585_v57, 4  ;;  %913 = vmatmul.f32.vlgmr.msra.gmra.mxu2 %v4554_v31  ;;  %v569_v62 = vsel %vm378_vm0, %v554_v51, %v568_v12  ;;  %v589_v25 = vperm.slane %v581_v9, %v4616_v15  ;;  %v4942_v60 = vperm.slane %v314_v52, 0 }
 0x164   : > { %v593_v23 = vsel %vm378_vm0, %v585_v57, %v592_v19  ;;  %v542_v47 = vrot.slane %v523_v40, 4  ;;  %v541_v16 = vsel %vm378_vm0, %v540_v46, %v523_v40  ;;  %v577_v56 = vperm.slane %v569_v62, %v4616_v15 }
 0x165   : > { %v591_v27 = vsel %vm378_vm0, %v590_v38, %v573_v32  ;;  %v594_v31 = vrot.slane %v589_v25, 4  ;;  %v896_v8 = vperm.slane %v4569_v34, 2 }
 0x166   : > { %4015 = vmatmul.msk.f32.gmra.mxu3 %vm1160_vm1, %v593_v23  ;;  %v543_v26 = vsel %vm378_vm0, %v535_v24, %v542_v47  ;;  %v596_v11 = vrot.slane %v577_v56, 4 }
 0x167   : > { %v595_v37 = vsel %vm378_vm0, %v594_v31, %v577_v56 }
 0x168   : > { %4011 = vmatmul.msk.f32.gmra.mxu0 %vm1160_vm1, %v591_v27  ;;  %v597_v49 = vsel %vm378_vm0, %v589_v25, %v596_v11 }
 0x16b   : > { %916 = vmatmul.f32.gmra.mxu2 %v4562_v33 }
 0x16e   : > { %4018 = vmatmul.msk.f32.vlgmr.msrb.gmra.mxu3 %vm1160_vm1, %v541_v16 }
 0x170   : > { %4022 = vmatmul.msk.f32.vlgmr.msra.gmra.mxu0 %vm1160_vm1, %v543_v26 }
 0x176   : > { %4019 = vmatmul.msk.f32.gmra.mxu3 %vm1160_vm1, %v595_v37 }
 0x178   : > { %4023 = vmatmul.msk.f32.gmra.mxu0 %vm1160_vm1, %v597_v49 }
 0x1dd   : > { %v1190_v14 = vpop.f32.mrf.mxu0 }
 0x1de   : > { %v1301_v33 = vmul.f32 0.35355338, %v1190_v14 }
 0x1e0   : > { %v1312_v61 = vadd.f32 %v4942_v60, %v1301_v33 }
 0x1e1   : > { %v1225_v0 = vpop.f32.mrf.mxu3 }
 0x1e2   : > { %v1321_v44 = vsel %vm1320_vm2, %v1312_v61, -inf  ;;  %v1303_v6 = vmul.f32 0.35355338, %v1225_v0 }
 0x1e3   : > { %1322 = vmax.xlane.f32.xlu2 %v1321_v44 }
 0x1e4   : > { %v1314_v20 = vadd.f32 %v4942_v60, %v1303_v6 }
 0x1e5   : > { %v1193_v2 = vpop.f32.mrf.mxu0 }
 0x1e6   : > { %v1302_v59 = vmul.f32 0.35355338, %v1193_v2  ;;  %v1327_v63 = vsel %vm1320_vm2, %v1314_v20, -inf  ;;  %v914_v18 = vpop.f32.mrf.mxu2 }
 0x1e7   : > { %1328 = vmax.xlane.f32.xlu1 %v1327_v63  ;;  %v4963_v58 = vadd.f32 %v914_v18, %v896_v8 }
 0x1e8   : > { %v4949_v3 = vadd.f32 %v4942_v60, %v1302_v59 }
 0x1e9   : > { %v1228_v4 = vpop.f32.mrf.mxu3 }
 0x1ea   : > { %v1324_v10 = vsel %vm1320_vm2, %v4949_v3, -inf  ;;  %v1304_v51 = vmul.f32 0.35355338, %v1228_v4 }
 0x1eb   : > { %1325 = vmax.xlane.f32.xlu2 %v1324_v10 }
 0x1ec   : > { %v1315_v13 = vadd.f32 %v4942_v60, %v1304_v51 }
 0x1ed   : > { %v1295_v55 = vpop.f32.mrf.mxu0 }
 0x1ee   : > { %v1307_v5 = vmul.f32 0.35355338, %v1295_v55  ;;  %v1330_v39 = vsel %vm1320_vm2, %v1315_v13, -inf  ;;  %v917_v35 = vpop.f32.mrf.mxu2 }
 0x1ef   : > { %1331 = vmax.xlane.f32.xlu1 %v1330_v39  ;;  %v4965_v19 = vadd.f32 %v917_v35, %v896_v8 }
 0x1f0   : > { %v1318_v48 = vadd.f32 %v4942_v60, %v1307_v5 }
 0x1f1   : > { %v1260_v42 = vpop.f32.mrf.mxu3  ;;  %v4269_v38 = vpack.i.bf16 %v4963_v58, %v4965_v19 }
 0x1f2   : > { %v1339_v54 = vsel %vm1320_vm2, %v1318_v48, -inf  ;;  %v1305_v17 = vmul.f32 0.35355338, %v1260_v42 }
 0x1f3   : > { %1340 = vmax.xlane.f32.xlu0 %v1339_v54  ;;  %v942_v54 = vrot.slane %v4963_v58, 4 }
 0x1f4   : > { %v1316_v22 = vadd.f32 %v4942_v60, %v1305_v17 }
 0x1f5   : > { %v1298_v21 = vpop.f32.mrf.mxu0 }
 0x1f6   : > { %v1308_v43 = vmul.f32 0.35355338, %v1298_v21  ;;  %v1333_v28 = vsel %vm1320_vm2, %v1316_v22, -inf  ;;  %v998_v21 = vrot.slane %v4965_v19, 4 }
 0x1f8   : > { %v1319_v32 = vadd.f32 %v4942_v60, %v1308_v43 }
 0x1f9   : > { %v1263_v7 = vpop.f32.mrf.mxu3 }
 0x1fa   : > { %v1306_v29 = vmul.f32 0.35355338, %v1263_v7  ;;  %v1342_v36 = vsel %vm1320_vm2, %v1319_v32, -inf }
 0x1fb   : > { %1334 = vmax.xlane.f32.xlu0 %v1333_v28 }
 0x1fc   : > { %v1317_v30 = vadd.f32 %v4942_v60, %v1306_v29 }
 0x1fe   : > { %v1336_v57 = vsel %vm1320_vm2, %v1317_v30, -inf }
 0x1ff   : > { %1337 = vmax.xlane.f32.xlu2 %v1336_v57 }
 0x203   : > { %1343 = vmax.xlane.f32.xlu0 %v1342_v36 }
 0x208   : > { %4270 = vrot.lane.b32.xlu1 %v4269_v38, %s4393_s13 }
 0x217   : > { %4280 = vrot.lane.b32.xlu0 %v4269_v38, %s4391_s10  ;;  %4275 = vrot.lane.b32.xlu2 %v4269_v38, %s4392_s12 }
 0x256   : > { %v1323_v34 = vpop.xlane.xlu2 %1322 }
 0x257   : > { %v1345_v45 = vsub.f32 %v1312_v61, %v1323_v34 }
 0x259   : > { %v1353_v1 = vmul.f32 1.442695, %v1345_v45 }
 0x25a   : > { %v1329_v23 = vpop.xlane.xlu1 %1328 }
 0x25b   : > { %4299 = vpow2.f32 %v1353_v1  ;;  %v1347_v24 = vsub.f32 %v1314_v20, %v1329_v23 }
 0x25d   : > { %v1357_v27 = vmul.f32 1.442695, %v1347_v24 }
 0x25e   : > { %v1326_v56 = vpop.xlane.xlu2 %1325 }
 0x25f   : > { %4301 = vpow2.f32 %v1357_v27  ;;  %v1346_v2 = vsub.f32 %v4949_v3, %v1326_v56 }
 0x261   : > { %v4973_v40 = vpop.eup %4299  ;;  %v1355_v4 = vmul.f32 1.442695, %v1346_v2 }
 0x262   : > { %v1369_v41 = vsel %vm1320_vm2, %v4973_v40, 0.0  ;;  %v1332_v12 = vpop.xlane.xlu1 %1331 }
 0x263   : > { %1370 = vadd.xlane.f32.xlu2 %v1369_v41  ;;  %v1348_v46 = vsub.f32 %v1315_v13, %v1332_v12 }
 0x265   : > { %v4977_v47 = vpop.eup %4301  ;;  %v1359_v9 = vmul.f32 1.442695, %v1348_v46 }
 0x266   : > { %v1341_v62 = vpop.xlane.xlu0 %1340  ;;  %v1375_v25 = vsel %vm1320_vm2, %v4977_v47, 0.0 }
 0x267   : > { %v1351_v16 = vsub.f32 %v1318_v48, %v1341_v62  ;;  %4303 = vpow2.f32 %v1359_v9  ;;  %1376 = vadd.xlane.f32.xlu0 %v1375_v25 }
 0x269   : > { %v1365_v26 = vmul.f32 1.442695, %v1351_v16 }
 0x26b   : > { %4305 = vpow2.f32 %v1365_v26 }
 0x26d   : > { %v4981_v31 = vpop.eup %4303 }
 0x26e   : > { %v1335_v11 = vpop.xlane.xlu0 %1334  ;;  %v1378_v49 = vsel %vm1320_vm2, %v4981_v31, 0.0 }
 0x26f   : > { %v1349_v37 = vsub.f32 %v1316_v22, %v1335_v11  ;;  %1379 = vadd.xlane.f32.xlu2 %v1378_v49 }
 0x271   : > { %v4985_v50 = vpop.eup %4305  ;;  %v1361_v52 = vmul.f32 1.442695, %v1349_v37 }
 0x272   : > { %v1387_v14 = vsel %vm1320_vm2, %v4985_v50, 0.0  ;;  %v1338_v33 = vpop.xlane.xlu2 %1337 }
 0x273   : > { %4307 = vpow2.f32 %v1361_v52  ;;  %1388 = vadd.xlane.f32.xlu0 %v1387_v14  ;;  %v1350_v61 = vsub.f32 %v1317_v30, %v1338_v33 }
 0x275   : > { %v1363_v0 = vmul.f32 1.442695, %v1350_v61 }
 0x276   : > { %v1344_v44 = vpop.xlane.xlu0 %1343 }
 0x277   : > { %v1352_v6 = vsub.f32 %v1319_v32, %v1344_v44  ;;  %4309 = vpow2.f32 %v1363_v0 }
 0x279   : > { %v4990_v20 = vpop.eup %4307  ;;  %v1367_v59 = vmul.f32 1.442695, %v1352_v6 }
 0x27a   : > { %v1381_v63 = vsel %vm1320_vm2, %v4990_v20, 0.0  ;;  %v4276_v10 = vpop.permute.xlu2 %4275  ;;  %v4271_v39 = vpop.permute.xlu1 %4270 }
 0x27b   : > { %4311 = vpow2.f32 %v1367_v59  ;;  %1382 = vadd.xlane.f32.xlu1 %v1381_v63  ;;  %v4278_v55 = vunpack.i.h.bf16 %v4276_v10  ;;  %v4277_v13 = vunpack.i.l.bf16 %v4276_v10  ;;  %v4273_v18 = vunpack.i.h.bf16 %v4271_v39 }
 0x27c   : > { %4313 = vpow2.f32 %v1355_v4  ;;  %v4272_v22 = vunpack.i.l.bf16 %v4271_v39 }
 0x27d   : > { %v4994_v51 = vpop.eup %4309  ;;  %v940_v42 = vrot.slane %v4278_v55, 4  ;;  %v996_v17 = vrot.slane %v4277_v13, 4  ;;  %v943_v7 = vsel %vm378_vm0, %v4278_v55, %v942_v54  ;;  %v999_v29 = vsel %vm378_vm0, %v4277_v13, %v998_v21 }
 0x27e   : > { %v1384_v3 = vsel %vm1320_vm2, %v4994_v51, 0.0  ;;  %v954_v8 = vrot.slane %v4273_v18, 4  ;;  %v1010_v32 = vrot.slane %v4272_v22, 4  ;;  %v951_v35 = vperm.slane %v943_v7, %v4597_v53 }
 0x27f   : > { %v941_v28 = vsel %vm378_vm0, %v940_v42, %v4963_v58  ;;  %v997_v30 = vsel %vm378_vm0, %v996_v17, %v4965_v19  ;;  %v1007_v34 = vperm.slane %v999_v29, %v4597_v53 }
 0x280   : > { %v947_v38 = vperm.slane %v941_v28, %v4597_v53  ;;  %v1003_v58 = vperm.slane %v997_v30, %v4597_v53  ;;  %v978_v41 = vrot.slane %v951_v35, 4 }
 0x281   : > { %v4996_v5 = vpop.eup %4311  ;;  %v1034_v62 = vrot.slane %v1007_v34, 4 }
 0x282   : > { %v1390_v48 = vsel %vm1320_vm2, %v4996_v5, 0.0  ;;  %v5004_v43 = vpop.eup %4313  ;;  %v966_v9 = vrot.slane %v947_v38, 4  ;;  %v1022_v49 = vrot.slane %v1003_v58, 4 }
 0x283   : > { %1385 = vadd.xlane.f32.xlu1 %v1384_v3  ;;  %1391 = vadd.xlane.f32.xlu0 %v1390_v48  ;;  %v1372_v36 = vsel %vm1320_vm2, %v5004_v43, 0.0 }
 0x289   : > { %v4281_v57 = vpop.permute.xlu0 %4280 }
 0x28a   : > { %v4283_v45 = vunpack.i.h.bf16 %v4281_v57  ;;  %v4282_v1 = vunpack.i.l.bf16 %v4281_v57 }
 0x28b   : > { %1373 = vadd.xlane.f32.xlu1 %v1372_v36 }
 0x28c   : > { %v952_v23 = vrot.slane %v4283_v45, 4  ;;  %v955_v19 = vsel %vm378_vm0, %v4283_v45, %v954_v8  ;;  %v1008_v24 = vrot.slane %v4282_v1, 4  ;;  %v1011_v27 = vsel %vm378_vm0, %v4282_v1, %v1010_v32 }
 0x28d   : > { %v963_v12 = vperm.slane %v955_v19, %v4597_v53  ;;  %v1019_v46 = vperm.slane %v1011_v27, %v4597_v53 }
 0x28e   : > { %v953_v16 = vsel %vm378_vm0, %v952_v23, %v4273_v18  ;;  %v1009_v25 = vsel %vm378_vm0, %v1008_v24, %v4272_v22 }
 0x28f   : > { %v959_v26 = vperm.slane %v953_v16, %v4597_v53  ;;  %v976_v56 = vrot.slane %v963_v12, 4  ;;  %v979_v11 = vsel %vm378_vm0, %v963_v12, %v978_v41  ;;  %v1015_v37 = vperm.slane %v1009_v25, %v4597_v53 }
 0x290   : > { %v987_v52 = vperm.slane %v979_v11, %v4616_v15  ;;  %v1032_v14 = vrot.slane %v1019_v46, 4  ;;  %v1035_v33 = vsel %vm378_vm0, %v1019_v46, %v1034_v62 }
 0x291   : > { %v964_v61 = vrot.slane %v959_v26, 4  ;;  %v967_v0 = vsel %vm378_vm0, %v959_v26, %v966_v9  ;;  %v977_v44 = vsel %vm378_vm0, %v976_v56, %v951_v35  ;;  %v1020_v6 = vrot.slane %v1015_v37, 4 }
 0x292   : > { %v975_v2 = vperm.slane %v967_v0, %v4616_v15  ;;  %v983_v59 = vperm.slane %v977_v44, %v4616_v15  ;;  %v994_v63 = vrot.slane %v987_v52, 4  ;;  %v1023_v4 = vsel %vm378_vm0, %v1015_v37, %v1022_v49 }
 0x293   : > { %v965_v10 = vsel %vm378_vm0, %v964_v61, %v947_v38  ;;  %v1021_v55 = vsel %vm378_vm0, %v1020_v6, %v1003_v58  ;;  %v1031_v13 = vperm.slane %v1023_v4, %v4616_v15  ;;  %v1033_v39 = vsel %vm378_vm0, %v1032_v14, %v1007_v34 }
 0x294   : > { %v971_v3 = vperm.slane %v965_v10, %v4616_v15  ;;  %v990_v48 = vrot.slane %v975_v2, 4  ;;  %v992_v42 = vrot.slane %v983_v59, 4  ;;  %v995_v54 = vsel %vm378_vm0, 0.0, %v994_v63 }
 0x295   : > { %v1068_v17 = vrot.slane %v995_v54, 4  ;;  %v1027_v18 = vperm.slane %v1021_v55, %v4616_v15  ;;  %v1039_v22 = vperm.slane %v1033_v39, %v4616_v15  ;;  %v1043_v21 = vperm.slane %v1035_v33, %v4616_v15 }
 0x296   : > { %v991_v7 = vsel %vm378_vm0, 0.0, %v990_v48  ;;  %v1046_v28 = vrot.slane %v1031_v13, 4  ;;  %v988_v29 = vrot.slane %v971_v3, 4  ;;  %v993_v30 = vsel %vm378_vm0, 0.0, %v992_v42 }
 0x297   : > { %v1048_v8 = vrot.slane %v1039_v22, 4  ;;  %v1050_v32 = vrot.slane %v1043_v21, 4  ;;  %v1044_v35 = vrot.slane %v1027_v18, 4  ;;  %v1052_v57 = vsel %vm378_vm0, %v990_v48, %v971_v3 }
 0x298   : > { %v1047_v36 = vsel %vm378_vm0, 0.0, %v1046_v28  ;;  %v1106_v38 = vsel %vm378_vm0, %v1046_v28, %v1027_v18  ;;  %v989_v34 = vsel %vm378_vm0, 0.0, %v988_v29  ;;  %v1056_v45 = vperm.slane %v1052_v57, %v4597_v53 }
 0x299   : > { %v1051_v1 = vsel %vm378_vm0, 0.0, %v1050_v32  ;;  %v1111_v58 = vrot.slane %v1047_v36, 4  ;;  %v1117_v23 = vsel %vm378_vm0, %v1050_v32, %v1039_v22  ;;  %v1045_v19 = vsel %vm378_vm0, 0.0, %v1044_v35 }
 0x29a   : > { %v1122_v24 = vrot.slane %v1051_v1, 4  ;;  %v1049_v27 = vsel %vm378_vm0, 0.0, %v1048_v8  ;;  %v1110_v41 = vperm.slane %v1106_v38, %v4597_v53  ;;  %v1121_v12 = vperm.slane %v1117_v23, %v4597_v53 }
 0x29b   : > { %v1112_v46 = vsel %vm378_vm0, %v1111_v58, %v1045_v19  ;;  %v1057_v9 = vrot.slane %v991_v7, 4  ;;  %v1063_v62 = vsel %vm378_vm0, %v994_v63, %v983_v59  ;;  %v1069_v16 = vsel %vm378_vm0, %v1068_v17, %v993_v30 }
 0x29c   : > { %v1116_v25 = vperm.slane %v1112_v46, %v4597_v53  ;;  %v1123_v26 = vsel %vm378_vm0, %v1122_v24, %v1049_v27  ;;  %v1130_v56 = vrot.slane %v1110_v41, 4  ;;  %v1142_v11 = vrot.slane %v1121_v12, 4 }
 0x29d   : > { %v1127_v37 = vperm.slane %v1123_v26, %v4597_v53  ;;  %v1058_v49 = vsel %vm378_vm0, %v1057_v9, %v989_v34  ;;  %v1067_v52 = vperm.slane %v1063_v62, %v4597_v53  ;;  %v1073_v14 = vperm.slane %v1069_v16, %v4597_v53 }
 0x29e   : > { %v1131_v33 = vsel %vm378_vm0, %v1116_v25, %v1130_v56  ;;  %v1128_v61 = vrot.slane %v1116_v25, 4  ;;  %v1062_v0 = vperm.slane %v1058_v49, %v4597_v53  ;;  %v1076_v44 = vrot.slane %v1056_v45, 4 }
 0x29f   : > { %v1139_v6 = vperm.slane %v1131_v33, %v4616_v15  ;;  %v1143_v2 = vsel %vm378_vm0, %v1127_v37, %v1142_v11  ;;  %v1140_v59 = vrot.slane %v1127_v37, 4  ;;  %v1088_v63 = vrot.slane %v1067_v52, 4 }
 0x2a0   : > { %v1151_v4 = vperm.slane %v1143_v2, %v4616_v15  ;;  %v1129_v10 = vsel %vm378_vm0, %v1128_v61, %v1110_v41  ;;  %v1077_v55 = vsel %vm378_vm0, %v1062_v0, %v1076_v44  ;;  %v1074_v13 = vrot.slane %v1062_v0, 4 }
 0x2a1   : > { %v1135_v39 = vperm.slane %v1129_v10, %v4616_v15  ;;  %v1141_v3 = vsel %vm378_vm0, %v1140_v59, %v1121_v12  ;;  %v1085_v48 = vperm.slane %v1077_v55, %v4616_v15  ;;  %v1089_v42 = vsel %vm378_vm0, %v1073_v14, %v1088_v63 }
 0x2a2   : > { %v1156_v54 = vrot.slane %v1151_v4, 4  ;;  %v1147_v17 = vperm.slane %v1141_v3, %v4616_v15  ;;  %v1097_v18 = vperm.slane %v1089_v42, %v4616_v15  ;;  %v1158_v22 = vrot.slane %v1139_v6, 4 }
 0x2a3   : > { %v1075_v21 = vsel %vm378_vm0, %v1074_v13, %v1056_v45  ;;  %v1086_v7 = vrot.slane %v1073_v14, 4  ;;  %v1154_v28 = vrot.slane %v1135_v39, 4  ;;  %v1104_v29 = vrot.slane %v1085_v48, 4 }
 0x2a4   : > { %v1157_v30 = vsel %vm378_vm0, %v1156_v54, %v1139_v6  ;;  %v1152_v8 = vrot.slane %v1147_v17, 4  ;;  %v1102_v32 = vrot.slane %v1097_v18, 4  ;;  %v1159_v35 = vsel %vm378_vm0, %v1151_v4, %v1158_v22 }
 0x2a5   : > { %1487 = vmatpush.msra.mxu3 %v1157_v30  ;;  %1516 = vmatpush.msrb.mxu0 %v1159_v35  ;;  %v1081_v57 = vperm.slane %v1075_v21, %v4616_v15  ;;  %v1087_v36 = vsel %vm378_vm0, %v1086_v7, %v1067_v52  ;;  %v1155_v38 = vsel %vm378_vm0, %v1147_v17, %v1154_v28 }
 0x2a6   : > { %v1153_v34 = vsel %vm378_vm0, %v1152_v8, %v1135_v39  ;;  %v1103_v45 = vsel %vm378_vm0, %v1102_v32, %v1085_v48  ;;  %v1093_v1 = vperm.slane %v1087_v36, %v4616_v15  ;;  %1458 = vmatpush.msrb.mxu2 %v1155_v38  ;;  %v1105_v58 = vsel %vm378_vm0, %v1097_v18, %v1104_v29  ;;  %v4046_v36 = vld [vmem:[%s6471_s2 + $0x1f0] sm:$0xff] }
 0x2a7   : > { %1429 = vmatpush.msrb.mxu1 %v1153_v34  ;;  %1488 = vmatpush.msra.mxu3 %v1103_v45  ;;  %v1100_v23 = vrot.slane %v1081_v57, 4 }
 0x2a8   : > { %v1098_v19 = vrot.slane %v1093_v1, 4  ;;  %1517 = vmatpush.msrb.mxu0 %v1105_v58 }
 0x2a9   : > { %v1101_v24 = vsel %vm378_vm0, %v1093_v1, %v1100_v23 }
 0x2aa   : > { %v1099_v27 = vsel %vm378_vm0, %v1098_v19, %v1081_v57  ;;  %1459 = vmatpush.msrb.mxu2 %v1101_v24  ;;  %v4047_v57 = vld [vmem:[%s6471_s2 + $0x1f8] sm:$0xff] }
 0x2ab   : > { %1430 = vmatpush.msrb.mxu1 %v1099_v27  ;;  %v4045_v27 = vld [vmem:[%s6471_s2 + $0x1e8] sm:$0xff] }
 0x2ad   : > { %1795 = vmatpush.msra.mxu1 %v4047_v57 }
 0x2af   : > { %1796 = vmatpush.msra.mxu1 %v4046_v36 }
 0x2b1   : > { %1797 = vmatpush.msra.mxu1 %v4045_v27 }
 0x2d6   : > { %v1371_v41 = vpop.xlane.xlu2 %1370 }
 0x2d7   : > { %4315 = vrcp.f32 %v1371_v41 }
 0x2da   : > { %v1377_v12 = vpop.xlane.xlu0 %1376 }
 0x2db   : > { %4317 = vrcp.f32 %v1377_v12 }
 0x2dd   : > { %v4316_v46 = vpop.eup %4315 }
 0x2de   : > { %v1401_v9 = vmul.f32 %v4316_v46, %v4973_v40 }
 0x2e0   : > { %4024 = vmatmul.msk.f32.vlgmr.msrb.gmra.mxu1 %vm1320_vm2, %v1401_v9 }
 0x2e1   : > { %v4318_v62 = vpop.eup %4317 }
 0x2e2   : > { %v1380_v16 = vpop.xlane.xlu2 %1379  ;;  %v1403_v25 = vmul.f32 %v4318_v62, %v4977_v47 }
 0x2e3   : > { %4319 = vrcp.f32 %v1380_v16 }
 0x2e4   : > { %4026 = vmatmul.msk.f32.vlgmr.msrb.gmra.mxu2 %vm1320_vm2, %v1403_v25  ;;  %v4044_v25 = vld [vmem:[%s6471_s2 + $0x1e0] sm:$0xff] }
 0x2e5   : > { %1798 = vmatpush.msra.mxu1 %v4044_v25 }
 0x2e6   : > { %v1389_v26 = vpop.xlane.xlu0 %1388 }
 0x2e7   : > { %4321 = vrcp.f32 %v1389_v26 }
 0x2e9   : > { %v4320_v56 = vpop.eup %4319 }
 0x2ea   : > { %v1404_v11 = vmul.f32 %v4320_v56, %v4981_v31 }
 0x2ec   : > { %4027 = vmatmul.msk.f32.gmra.mxu2 %vm1320_vm2, %v1404_v11 }
 0x2ed   : > { %v4322_v37 = vpop.eup %4321 }
 0x2ee   : > { %v1407_v49 = vmul.f32 %v4322_v37, %v4985_v50  ;;  %v1383_v40 = vpop.xlane.xlu1 %1382 }
 0x2ef   : > { %4323 = vrcp.f32 %v1383_v40 }
 0x2f0   : > { %4030 = vmatmul.msk.f32.vlgmr.msrb.gmra.mxu0 %vm1320_vm2, %v1407_v49 }
 0x2f5   : > { %v4324_v52 = vpop.eup %4323 }
 0x2f6   : > { %v1405_v47 = vmul.f32 %v4324_v52, %v4990_v20  ;;  %v1386_v14 = vpop.xlane.xlu1 %1385  ;;  %v1392_v33 = vpop.xlane.xlu0 %1391 }
 0x2f7   : > { %4325 = vrcp.f32 %v1386_v14 }
 0x2f8   : > { %4327 = vrcp.f32 %v1392_v33  ;;  %4028 = vmatmul.msk.f32.vlgmr.msra.gmra.mxu3 %vm1320_vm2, %v1405_v47 }
 0x2fd   : > { %v4326_v61 = vpop.eup %4325 }
 0x2fe   : > { %v4328_v31 = vpop.eup %4327  ;;  %v1374_v0 = vpop.xlane.xlu1 %1373  ;;  %v1406_v44 = vmul.f32 %v4326_v61, %v4994_v51 }
 0x2ff   : > { %4329 = vrcp.f32 %v1374_v0  ;;  %v1408_v50 = vmul.f32 %v4328_v31, %v4996_v5 }
 0x300   : > { %4029 = vmatmul.msk.f32.gmra.mxu3 %vm1320_vm2, %v1406_v44 }
 0x301   : > { %4031 = vmatmul.msk.f32.gmra.mxu0 %vm1320_vm2, %v1408_v50 }
 0x305   : > { %v4330_v6 = vpop.eup %4329 }
 0x306   : > { %v1402_v20 = vmul.f32 %v4330_v6, %v5004_v43 }
 0x308   : > { %4025 = vmatmul.msk.f32.gmra.mxu1 %vm1320_vm2, %v1402_v20 }
 0x35d   : > { %v1432_v55 = vpop.f32.mrf.mxu1 }
 0x35e   : > { %v1527_v13 = vrot.slane %v1432_v55, 4 }
 0x367   : > { %v1461_v59 = vpop.f32.mrf.mxu2 }
 0x368   : > { %v1539_v4 = vrot.slane %v1461_v59, 4 }
 0x36d   : > { %v1519_v2 = vpop.f32.mrf.mxu0 }
 0x36e   : > { %v1537_v63 = vrot.slane %v1519_v2, 4  ;;  %v1540_v10 = vsel %vm378_vm0, %v1519_v2, %v1539_v4 }
 0x36f   : > { %v1548_v5 = vperm.slane %v1540_v10, %v4597_v53  ;;  %v1464_v3 = vpop.f32.mrf.mxu2 }
 0x370   : > { %v1538_v51 = vsel %vm378_vm0, %v1537_v63, %v1461_v59  ;;  %v1595_v22 = vrot.slane %v1464_v3, 4 }
 0x371   : > { %v1544_v39 = vperm.slane %v1538_v51, %v4597_v53  ;;  %v1561_v54 = vrot.slane %v1548_v5, 4 }
 0x373   : > { %v1549_v18 = vrot.slane %v1544_v39, 4 }
 0x37b   : > { %v1490_v48 = vpop.f32.mrf.mxu3 }
 0x37c   : > { %v1525_v42 = vrot.slane %v1490_v48, 4  ;;  %v1528_v43 = vsel %vm378_vm0, %v1490_v48, %v1527_v13 }
 0x37d   : > { %v1536_v17 = vperm.slane %v1528_v43, %v4597_v53 }
 0x37e   : > { %v1526_v21 = vsel %vm378_vm0, %v1525_v42, %v1432_v55  ;;  %v1522_v7 = vpop.f32.mrf.mxu0 }
 0x37f   : > { %v1532_v28 = vperm.slane %v1526_v21, %v4597_v53  ;;  %v1562_v29 = vsel %vm378_vm0, %v1561_v54, %v1536_v17  ;;  %v1563_v30 = vrot.slane %v1536_v17, 4  ;;  %v1593_v8 = vrot.slane %v1522_v7, 4 }
 0x380   : > { %v1568_v32 = vperm.slane %v1562_v29, %v4616_v15  ;;  %v1596_v35 = vsel %vm378_vm0, %v1522_v7, %v1595_v22 }
 0x381   : > { %v1550_v38 = vsel %vm378_vm0, %v1549_v18, %v1532_v28  ;;  %v1551_v34 = vrot.slane %v1532_v28, 4  ;;  %v1564_v45 = vsel %vm378_vm0, %v1548_v5, %v1563_v30  ;;  %v1594_v1 = vsel %vm378_vm0, %v1593_v8, %v1464_v3 }
 0x382   : > { %v1556_v58 = vperm.slane %v1550_v38, %v4616_v15  ;;  %v1572_v23 = vperm.slane %v1564_v45, %v4616_v15  ;;  %v1577_v19 = vrot.slane %v1568_v32, 4  ;;  %v1600_v24 = vperm.slane %v1594_v1, %v4597_v53 }
 0x383   : > { %v1552_v41 = vsel %vm378_vm0, %v1544_v39, %v1551_v34  ;;  %v1604_v12 = vperm.slane %v1596_v35, %v4597_v53  ;;  %v1493_v46 = vpop.f32.mrf.mxu3 }
 0x384   : > { %v1560_v9 = vperm.slane %v1552_v41, %v4616_v15  ;;  %v1573_v62 = vrot.slane %v1556_v58, 4  ;;  %v1579_v16 = vrot.slane %v1572_v23, 4  ;;  %v1578_v26 = vsel %vm378_vm0, 0.0, %v1577_v19 }
 0x385   : > { %v1605_v56 = vrot.slane %v1600_v24, 4  ;;  %v1617_v11 = vrot.slane %v1604_v12, 4  ;;  %v1581_v37 = vrot.slane %v1493_v46, 4  ;;  %v1435_v49 = vpop.f32.mrf.mxu1 }
 0x386   : > { %v1575_v40 = vrot.slane %v1560_v9, 4  ;;  %v1580_v52 = vsel %vm378_vm0, 0.0, %v1579_v16  ;;  %v1648_v47 = vsel %vm378_vm0, %v1579_v16, %v1568_v32  ;;  %v1583_v14 = vrot.slane %v1435_v49, 4 }
 0x387   : > { %v1652_v33 = vperm.slane %v1648_v47, %v4597_v53  ;;  %v1653_v61 = vrot.slane %v1580_v52, 4  ;;  %v1582_v31 = vsel %vm378_vm0, %v1581_v37, %v1435_v49  ;;  %v1574_v0 = vsel %vm378_vm0, 0.0, %v1573_v62 }
 0x388   : > { %v1576_v44 = vsel %vm378_vm0, 0.0, %v1575_v40  ;;  %v1584_v50 = vsel %vm378_vm0, %v1493_v46, %v1583_v14  ;;  %v1588_v6 = vperm.slane %v1582_v31, %v4597_v53  ;;  %v1637_v20 = vsel %vm378_vm0, %v1575_v40, %v1556_v58 }
 0x389   : > { %v1654_v2 = vsel %vm378_vm0, %v1653_v61, %v1578_v26  ;;  %v1592_v59 = vperm.slane %v1584_v50, %v4597_v53  ;;  %v1641_v63 = vperm.slane %v1637_v20, %v4597_v53  ;;  %v1642_v4 = vrot.slane %v1576_v44, 4 }
 0x38a   : > { %v1606_v10 = vsel %vm378_vm0, %v1605_v56, %v1588_v6  ;;  %v1607_v55 = vrot.slane %v1588_v6, 4  ;;  %v1658_v51 = vperm.slane %v1654_v2, %v4597_v53  ;;  %v1673_v5 = vrot.slane %v1652_v33, 4 }
 0x38b   : > { %v1612_v13 = vperm.slane %v1606_v10, %v4616_v15  ;;  %v1618_v39 = vsel %vm378_vm0, %v1617_v11, %v1592_v59  ;;  %v1619_v3 = vrot.slane %v1592_v59, 4  ;;  %v1643_v48 = vsel %vm378_vm0, %v1642_v4, %v1574_v0 }
 0x38c   : > { %v1608_v42 = vsel %vm378_vm0, %v1600_v24, %v1607_v55  ;;  %v1624_v43 = vperm.slane %v1618_v39, %v4616_v15  ;;  %v1647_v54 = vperm.slane %v1643_v48, %v4597_v53  ;;  %v1661_v17 = vrot.slane %v1641_v63, 4 }
 0x38d   : > { %v1616_v18 = vperm.slane %v1608_v42, %v4616_v15  ;;  %v1620_v22 = vsel %vm378_vm0, %v1604_v12, %v1619_v3  ;;  %v1629_v21 = vrot.slane %v1612_v13, 4  ;;  %v1674_v7 = vsel %vm378_vm0, %v1658_v51, %v1673_v5 }
 0x38e   : > { %v1628_v28 = vperm.slane %v1620_v22, %v4616_v15  ;;  %v1662_v29 = vsel %vm378_vm0, %v1647_v54, %v1661_v17  ;;  %v1682_v30 = vperm.slane %v1674_v7, %v4616_v15  ;;  %v1633_v32 = vrot.slane %v1624_v43, 4  ;;  %v4042_v17 = vld [vmem:[%s6471_s2 + $0x1d0] sm:$0xff]  ;;  %v4040_v22 = vld [vmem:[%s6471_s2 + $0x1c0] sm:$0xff] }
 0x38f   : > { %v1631_v8 = vrot.slane %v1616_v18, 4  ;;  %v1670_v35 = vperm.slane %v1662_v29, %v4616_v15  ;;  %v1659_v57 = vrot.slane %v1647_v54, 4  ;;  %v1630_v36 = vsel %vm378_vm0, 0.0, %v1629_v21  ;;  %v4043_v54 = vld [vmem:[%s6471_s2 + $0x1d8] sm:$0xff]  ;;  %v4041_v18 = vld [vmem:[%s6471_s2 + $0x1c8] sm:$0xff]  ;;  %v4038_v7 = vld [vmem:[%s6471_s2 + $0x1b0] sm:$0xff] }
 0x390   : > { %v1635_v38 = vrot.slane %v1628_v28, 4  ;;  %v1687_v34 = vrot.slane %v1682_v30, 4  ;;  %v1671_v45 = vrot.slane %v1658_v51, 4  ;;  %v1634_v49 = vsel %vm378_vm0, 0.0, %v1633_v32  ;;  %1799 = vmatpush.msra.mxu1 %v4043_v54  ;;  %v4039_v21 = vld [vmem:[%s6471_s2 + $0x1b8] sm:$0xff]  ;;  %v4037_v28 = vld [vmem:[%s6471_s2 + $0x1a8] sm:$0xff] }
 0x391   : > { %v1632_v1 = vsel %vm378_vm0, 0.0, %v1631_v8  ;;  %v1691_v58 = vsel %vm378_vm0, %v1631_v8, %v1612_v13  ;;  %v1689_v23 = vrot.slane %v1670_v35, 4  ;;  %v1660_v19 = vsel %vm378_vm0, %v1659_v57, %v1641_v63  ;;  %v4036_v29 = vld [vmem:[%s6471_s2 + $0x1a0] sm:$0xff]  ;;  %v4034_v8 = vld [vmem:[%s6471_s2 + $0x190] sm:$0xff]  ;;  %v4033_v32 = vld [vmem:[%s6471_s2 + $0x188] sm:$0xff] }
 0x392   : > { %v1636_v24 = vsel %vm378_vm0, 0.0, %v1635_v38  ;;  %v1695_v27 = vperm.slane %v1691_v58, %v4597_v53  ;;  %v1696_v41 = vrot.slane %v1632_v1, 4  ;;  %v1688_v12 = vsel %vm378_vm0, %v1687_v34, %v1670_v35  ;;  %1800 = vmatpush.msra.mxu1 %v4042_v17  ;;  %v4032_v35 = vld [vmem:[%s6471_s2 + $0x180] sm:$0xff]  ;;  %v4054_v54 = vld [vmem:[%s6471_s2 + $0x230] sm:$0xff] }
 0x393   : > { %1755 = vrot.lane.b32.xlu1 %v1688_v12, %s4392_s12  ;;  %v1690_v46 = vsel %vm378_vm0, %v1682_v30, %v1689_v23  ;;  %v1666_v9 = vperm.slane %v1660_v19, %v4616_v15  ;;  %v1672_v62 = vsel %vm378_vm0, %v1671_v45, %v1652_v33  ;;  %v1702_v16 = vsel %vm378_vm0, %v1635_v38, %v1624_v43  ;;  %v4035_v30 = vld [vmem:[%s6471_s2 + $0x198] sm:$0xff] }
 0x394   : > { %v1697_v25 = vsel %vm378_vm0, %v1696_v41, %v1630_v36  ;;  %1763 = vrot.lane.b32.xlu0 %v1690_v46, %s4393_s13  ;;  %v1678_v26 = vperm.slane %v1672_v62, %v4616_v15  ;;  %v1706_v56 = vperm.slane %v1702_v16, %v4597_v53  ;;  %v1707_v11 = vrot.slane %v1636_v24, 4  ;;  %1801 = vmatpush.msra.mxu1 %v4041_v18  ;;  %v4053_v18 = vld [vmem:[%s6471_s2 + $0x228] sm:$0xff] }
 0x395   : > { %v1685_v37 = vrot.slane %v1666_v9, 4  ;;  %v1701_v40 = vperm.slane %v1697_v25, %v4597_v53  ;;  %v1715_v52 = vrot.slane %v1695_v27, 4  ;;  %v309_v12 = vlaneseq }
 0x396   : > { %v1683_v47 = vrot.slane %v1678_v26, 4  ;;  %v1708_v14 = vsel %vm378_vm0, %v1707_v11, %v1634_v49  ;;  %v1727_v33 = vrot.slane %v1706_v56, 4  ;;  %1802 = vmatpush.msra.mxu1 %v4040_v22  ;;  %v4380_v11 = vld [vmem:[%s4545_s22] sm:$0xff] }
 0x397   : > { %v1686_v61 = vsel %vm378_vm0, %v1678_v26, %v1685_v37  ;;  %v1712_v31 = vperm.slane %v1708_v14, %v4597_v53  ;;  %v1716_v0 = vsel %vm378_vm0, %v1701_v40, %v1715_v52  ;;  %v1713_v44 = vrot.slane %v1701_v40, 4  ;;  %v4052_v22 = vld [vmem:[%s6471_s2 + $0x220] sm:$0xff] }
 0x398   : > { %1747 = vrot.lane.b32.xlu2 %v1686_v61, %s4391_s10  ;;  %v1724_v50 = vperm.slane %v1716_v0, %v4616_v15  ;;  %v1684_v6 = vsel %vm378_vm0, %v1683_v47, %v1666_v9  ;;  %1803 = vmatpush.msra.mxu1 %v4039_v21  ;;  %v310_v46 = vand.u32 127, %v309_v12  ;;  %v5249_v9 = vld [vmem:[%s6472_s3] sm:$0xff]  ;;  %v4396_v26 = vmov 0.0   ;;  %v4381_v47 = vld [vmem:[%s4545_s22 + $0x8] sm:$0xff]  ;;  %v4063_v61 = vld [vmem:[%s6471_s2 + $0x278] sm:$0xff] }
 0x399   : > { %v1728_v20 = vsel %vm378_vm0, %v1712_v31, %v1727_v33  ;;  %v1714_v2 = vsel %vm378_vm0, %v1713_v44, %v1695_v27  ;;  %v1725_v59 = vrot.slane %v1712_v31, 4  ;;  %v1794_v62 = vperm.slane %v5249_v9, 3  ;;  %v4062_v31 = vld [vmem:[%s6471_s2 + $0x270] sm:$0xff]  ;;  %1888 = vmatpush.msra.mxu2 %v4063_v61  ;;  %v4051_v21 = vld [vmem:[%s6471_s2 + $0x218] sm:$0xff]  ;;  %v4068_v61 = vld [vmem:[%s6471_s2 + $0x2a0] sm:$0xff] }
 0x39a   : > { %v1736_v63 = vperm.slane %v1728_v20, %v4616_v15  ;;  %v1743_v4 = vrot.slane %v1724_v50, 4  ;;  %v1720_v10 = vperm.slane %v1714_v2, %v4616_v15  ;;  %1804 = vmatpush.msra.mxu1 %v4038_v7  ;;  %vm311_vm5 = vcmp.lt.s32.totalorder %v310_v46, 32  ;;  %v4050_v7 = vld [vmem:[%s6471_s2 + $0x210] sm:$0xff]  ;;  %v4072_v46 = vld [vmem:[%s6471_s2 + $0x2c0] sm:$0xff] }
 0x39b   : > { %v1726_v55 = vsel %vm378_vm0, %v1725_v59, %v1706_v56  ;;  %v5252_v56 = vsel %vm311_vm5, 1.0, %v4396_v26  ;;  %1889 = vmatpush.msra.mxu2 %v4062_v31  ;;  %v1864_v12 = vperm.slane %v5249_v9, 6  ;;  %v1867_v26 = vperm.slane %v5249_v9, 7 }
 0x39c   : > { %v1744_v51 = vsel %vm378_vm0, %v1736_v63, %v1743_v4  ;;  %v1741_v5 = vrot.slane %v1736_v63, 4  ;;  %v1732_v13 = vperm.slane %v1726_v55, %v4616_v15  ;;  %v1739_v39 = vrot.slane %v1720_v10, 4  ;;  %1805 = vmatpush.msra.mxu1 %v4037_v28  ;;  %v4061_v55 = vld [vmem:[%s6471_s2 + $0x268] sm:$0xff]  ;;  %v4079_v28 = vld [vmem:[%s6471_s2 + $0x2f8] sm:$0xff] }
 0x39d   : > { %1765 = vrot.lane.b32.xlu1 %v1744_v51, %s4393_s13  ;;  %1890 = vmatpush.msra.mxu2 %v4061_v55  ;;  %v4060_v51 = vld [vmem:[%s6471_s2 + $0x260] sm:$0xff] }
 0x39e   : > { %v1742_v3 = vsel %vm378_vm0, %v1741_v5, %v1724_v50  ;;  %v1737_v48 = vrot.slane %v1732_v13, 4  ;;  %v1740_v42 = vsel %vm378_vm0, %v1732_v13, %v1739_v39  ;;  %1806 = vmatpush.msra.mxu1 %v4036_v29  ;;  %v4059_v5 = vld [vmem:[%s6471_s2 + $0x258] sm:$0xff]  ;;  %v4058_v13 = vld [vmem:[%s6471_s2 + $0x250] sm:$0xff]  ;;  %v4057_v39 = vld [vmem:[%s6471_s2 + $0x248] sm:$0xff]  ;;  %1931 = vmatpush.msrb.mxu3 %v4079_v28 }
 0x39f   : > { %1757 = vrot.lane.b32.xlu0 %v1742_v3, %s4392_s12  ;;  %1891 = vmatpush.msra.mxu2 %v4060_v51  ;;  %v4056_v3 = vld [vmem:[%s6471_s2 + $0x240] sm:$0xff]  ;;  %v4078_v29 = vld [vmem:[%s6471_s2 + $0x2f0] sm:$0xff]  ;;  %v4097_v28 = vld [vmem:[%s6471_s2 + $0x378] sm:$0xff] }
 0x3a0   : > { %1749 = vrot.lane.b32.xlu2 %v1740_v42, %s4391_s10  ;;  %v1738_v43 = vsel %vm378_vm0, %v1737_v48, %v1720_v10  ;;  %1807 = vmatpush.msra.mxu1 %v4035_v30  ;;  %v4055_v42 = vld [vmem:[%s6471_s2 + $0x238] sm:$0xff] }
 0x3a1   : > { %1892 = vmatpush.msra.mxu2 %v4059_v5  ;;  %1932 = vmatpush.msrb.mxu3 %v4078_v29  ;;  %v4129_v29 = vld [vmem:[%s6471_s2 + $0x478] sm:$0xff] }
 0x3a2   : > { %1808 = vmatpush.msra.mxu1 %v4034_v8  ;;  %v4049_v8 = vld [vmem:[%s6471_s2 + $0x208] sm:$0xff]  ;;  %2027 = vmatpush.msra.mxu0 %v4097_v28 }
 0x3a3   : > { %1893 = vmatpush.msra.mxu2 %v4058_v13  ;;  %v4115_v28 = vld [vmem:[%s6471_s2 + $0x408] sm:$0xff] }
 0x3a4   : > { %1809 = vmatpush.msra.mxu1 %v4033_v32  ;;  %v4077_v32 = vld [vmem:[%s6471_s2 + $0x2e8] sm:$0xff] }
 0x3a5   : > { %1894 = vmatpush.msra.mxu2 %v4057_v39  ;;  %1933 = vmatpush.msrb.mxu3 %v4077_v32  ;;  %v4128_v32 = vld [vmem:[%s6471_s2 + $0x470] sm:$0xff] }
 0x3a6   : > { %1810 = vmatpush.msra.mxu1 %v4032_v35 }
 0x3a7   : > { %1895 = vmatpush.msra.mxu2 %v4056_v3 }
 0x3a9   : > { %1896 = vmatpush.msra.mxu2 %v4055_v42 }
 0x3ab   : > { %1897 = vmatpush.msra.mxu2 %v4054_v54 }
 0x3ad   : > { %1898 = vmatpush.msra.mxu2 %v4053_v18 }
 0x3af   : > { %1899 = vmatpush.msra.mxu2 %v4052_v22 }
 0x3b1   : > { %1900 = vmatpush.msra.mxu2 %v4051_v21 }
 0x3b3   : > { %1901 = vmatpush.msra.mxu2 %v4050_v7 }
 0x3b5   : > { %1902 = vmatpush.msra.mxu2 %v4049_v8  ;;  %v4112_v8 = vld [vmem:[%s6471_s2 + $0x3f0] sm:$0xff] }
 0x3f2   : > { %v1748_v57 = vpop.permute.xlu2 %1747 }
 0x3f3   : > { %v1769_v36 = vsel %vm1160_vm1, %v1684_v6, %v1748_v57 }
 0x3fa   : > { %v1750_v58 = vpop.permute.xlu2 %1749 }
 0x3fb   : > { %v1770_v23 = vsel %vm1160_vm1, %v1738_v43, %v1750_v58  ;;  %v4075_v58 = vld [vmem:[%s6471_s2 + $0x2d8] sm:$0xff] }
 0x405   : > { %v1756_v38 = vpop.permute.xlu1 %1755 }
 0x406   : > { %v1772_v34 = vsel %vm1771_vm3, %v1769_v36, %v1756_v38  ;;  %v1764_v45 = vpop.permute.xlu0 %1763  ;;  %v4048_v38 = vld [vmem:[%s6471_s2 + $0x200] sm:$0xff] }
 0x407   : > { %v1775_v1 = vsel %vm1774_vm4, %v1772_v34, %v1764_v45  ;;  %v4076_v34 = vld [vmem:[%s6471_s2 + $0x2e0] sm:$0xff]  ;;  %1903 = vmatpush.msra.mxu2 %v4048_v38 }
 0x408   : > { %1811 = vmatmul.f32.vlgmr.msra.gmra.mxu1 %v1775_v1  ;;  %1934 = vmatpush.msrb.mxu3 %v4076_v34 }
 0x409   : > { %2589 = vmatpush.msrb.mxu2 %v4129_v29  ;;  %v4082_v29 = vld [vmem:[%s6471_s2 + $0x300] sm:$0xff] }
 0x40a   : > { %1935 = vmatpush.msrb.mxu3 %v4075_v58 }
 0x40b   : > { %2590 = vmatpush.msrb.mxu2 %v4128_v32  ;;  %v4114_v32 = vld [vmem:[%s6471_s2 + $0x400] sm:$0xff] }
 0x40f   : > { %v1766_v24 = vpop.permute.xlu1 %1765 }
 0x411   : > { %v1758_v19 = vpop.permute.xlu0 %1757 }
 0x412   : > { %v1773_v27 = vsel %vm1771_vm3, %v1770_v23, %v1758_v19  ;;  %v4074_v19 = vld [vmem:[%s6471_s2 + $0x2d0] sm:$0xff] }
 0x413   : > { %v1776_v41 = vsel %vm1774_vm4, %v1773_v27, %v1766_v24  ;;  %v4073_v27 = vld [vmem:[%s6471_s2 + $0x2c8] sm:$0xff]  ;;  %1936 = vmatpush.msrb.mxu3 %v4074_v19 }
 0x414   : > { %1814 = vmatmul.f32.gmra.mxu1 %v1776_v41 }
 0x415   : > { %1937 = vmatpush.msrb.mxu3 %v4073_v27  ;;  %v4111_v27 = vld [vmem:[%s6471_s2 + $0x3e8] sm:$0xff] }
 0x417   : > { %1938 = vmatpush.msrb.mxu3 %v4072_v46  ;;  %v4110_v46 = vld [vmem:[%s6471_s2 + $0x3e0] sm:$0xff] }
 0x485   : > { %v1812_v16 = vpop.f32.mrf.mxu1 }
 0x486   : > { %v1813_v25 = vadd.f32 %v1812_v16, %v1794_v62 }
 0x488   : > { %v1818_v37 = vadd.f32 %v4380_v11, %v1813_v25  ;;  %v4071_v11 = vld [vmem:[%s6471_s2 + $0x2b8] sm:$0xff] }
 0x489   : > { %1939 = vmatpush.msrb.mxu3 %v4071_v11  ;;  %v4092_v11 = vld [vmem:[%s6471_s2 + $0x350] sm:$0xff] }
 0x48a   : > { %v1820_v49 = vmul.f32 %v5252_v56, %v1818_v37 }
 0x48c   : > { %1822 = vadd.xlane.f32.xlu2 %v1820_v49 }
 0x491   : > { %v1815_v40 = vpop.f32.mrf.mxu1 }
 0x492   : > { %v1816_v52 = vadd.f32 %v1815_v40, %v1794_v62  ;;  %v4070_v40 = vld [vmem:[%s6471_s2 + $0x2b0] sm:$0xff] }
 0x493   : > { %1940 = vmatpush.msrb.mxu3 %v4070_v40  ;;  %v4091_v40 = vld [vmem:[%s6471_s2 + $0x348] sm:$0xff] }
 0x494   : > { %v1819_v14 = vadd.f32 %v4381_v47, %v1816_v52 }
 0x496   : > { %v1821_v33 = vmul.f32 %v5252_v56, %v1819_v14 }
 0x498   : > { %1824 = vadd.xlane.f32.xlu0 %v1821_v33 }
 0x4ff   : > { %v1823_v0 = vpop.xlane.xlu2 %1822 }
 0x500   : > { %v1826_v44 = vmul.f32 0.03125, %v1823_v0  ;;  %v4067_v0 = vld [vmem:[%s6471_s2 + $0x298] sm:$0xff] }
 0x502   : > { %v1828_v50 = vsub.f32 %v1818_v37, %v1826_v44 }
 0x504   : > { %v5265_v6 = vmul.f32 %v5252_v56, %v1828_v50 }
 0x506   : > { %v1832_v20 = vmul.f32 %v5265_v6, %v5265_v6 }
 0x508   : > { %1834 = vadd.xlane.f32.xlu1 %v1832_v20 }
 0x50b   : > { %v1825_v2 = vpop.xlane.xlu0 %1824 }
 0x50c   : > { %v1827_v59 = vmul.f32 0.03125, %v1825_v2 }
 0x50e   : > { %v1829_v63 = vsub.f32 %v1819_v14, %v1827_v59  ;;  %v4069_v14 = vld [vmem:[%s6471_s2 + $0x2a8] sm:$0xff]  ;;  %v4066_v59 = vld [vmem:[%s6471_s2 + $0x290] sm:$0xff] }
 0x50f   : > { %1941 = vmatpush.msrb.mxu3 %v4069_v14  ;;  %v4090_v14 = vld [vmem:[%s6471_s2 + $0x340] sm:$0xff] }
 0x510   : > { %v5270_v4 = vmul.f32 %v5252_v56, %v1829_v63  ;;  %v4065_v63 = vld [vmem:[%s6471_s2 + $0x288] sm:$0xff] }
 0x511   : > { %1942 = vmatpush.msrb.mxu3 %v4068_v61  ;;  %v4122_v61 = vld [vmem:[%s6471_s2 + $0x440] sm:$0xff] }
 0x512   : > { %v1833_v10 = vmul.f32 %v5270_v4, %v5270_v4 }
 0x513   : > { %1943 = vmatpush.msrb.mxu3 %v4067_v0 }
 0x514   : > { %1836 = vadd.xlane.f32.xlu2 %v1833_v10  ;;  %v4064_v10 = vld [vmem:[%s6471_s2 + $0x280] sm:$0xff] }
 0x515   : > { %1944 = vmatpush.msrb.mxu3 %v4066_v59  ;;  %v4104_v59 = vld [vmem:[%s6471_s2 + $0x3b0] sm:$0xff] }
 0x517   : > { %1945 = vmatpush.msrb.mxu3 %v4065_v63  ;;  %v4120_v63 = vld [vmem:[%s6471_s2 + $0x430] sm:$0xff] }
 0x519   : > { %1946 = vmatpush.msrb.mxu3 %v4064_v10  ;;  %v4087_v10 = vld [vmem:[%s6471_s2 + $0x328] sm:$0xff] }
 0x57b   : > { %v1835_v48 = vpop.xlane.xlu1 %1834 }
 0x57c   : > { %v1838_v43 = vmul.f32 0.03125, %v1835_v48  ;;  %v1930_v48 = vperm.slane %v5249_v9, 5 }
 0x57e   : > { %v1840_v17 = vadd.f32 1e-05, %v1838_v43 }
 0x580   : > { %4331 = vrsqrt.f32 %v1840_v17  ;;  %vm1848_vm7 = vweird.f32 %v1840_v17 }
 0x586   : > { %v4332_v30 = vpop.eup %4331 }
 0x587   : > { %v1843_v35 = vmul.f32 %v4332_v30, %v1840_v17  ;;  %v1837_v57 = vpop.xlane.xlu2 %1836  ;;  %vm1849_vm6 = vweird.f32 %v4332_v30 }
 0x588   : > { %v1839_v36 = vmul.f32 0.03125, %v1837_v57  ;;  %vm1850_vm8 = vmor %vm1848_vm7, %vm1849_vm6 }
 0x589   : > { %v1844_v45 = vmul.f32 %v4332_v30, %v1843_v35 }
 0x58a   : > { %v1841_v1 = vadd.f32 1e-05, %v1839_v36 }
 0x58b   : > { %v1845_v23 = vmul.f32 0.5, %v1844_v45 }
 0x58c   : > { %4333 = vrsqrt.f32 %v1841_v1  ;;  %vm1858_vm10 = vweird.f32 %v1841_v1 }
 0x58d   : > { %v1846_v24 = vsub.f32 1.5, %v1845_v23 }
 0x58f   : > { %v1847_v41 = vmul.f32 %v4332_v30, %v1846_v24  ;;  %v4095_v24 = vld [vmem:[%s6471_s2 + $0x368] sm:$0xff] }
 0x591   : > { %v1851_v62 = vsel %vm1850_vm8, %v4332_v30, %v1847_v41  ;;  %v4096_v30 = vld [vmem:[%s6471_s2 + $0x370] sm:$0xff]  ;;  %v4127_v41 = vld [vmem:[%s6471_s2 + $0x468] sm:$0xff] }
 0x592   : > { %v4334_v16 = vpop.eup %4333  ;;  %v1862_v25 = vmul.f32 %v1851_v62, %v5265_v6  ;;  %2028 = vmatpush.msra.mxu0 %v4096_v30  ;;  %2591 = vmatpush.msrb.mxu2 %v4127_v41  ;;  %v4126_v62 = vld [vmem:[%s6471_s2 + $0x460] sm:$0xff] }
 0x593   : > { %v1853_v37 = vmul.f32 %v4334_v16, %v1841_v1  ;;  %vm1859_vm9 = vweird.f32 %v4334_v16  ;;  %v4098_v30 = vld [vmem:[%s6471_s2 + $0x380] sm:$0xff] }
 0x594   : > { %v1865_v49 = vmul.f32 %v1864_v12, %v1862_v25  ;;  %vm1860_vm11 = vmor %vm1858_vm10, %vm1859_vm9  ;;  %2029 = vmatpush.msra.mxu0 %v4095_v24  ;;  %v4109_v25 = vld [vmem:[%s6471_s2 + $0x3d8] sm:$0xff]  ;;  %2592 = vmatpush.msrb.mxu2 %v4126_v62 }
 0x595   : > { %v1854_v52 = vmul.f32 %v4334_v16, %v1853_v37  ;;  %v4108_v37 = vld [vmem:[%s6471_s2 + $0x3d0] sm:$0xff] }
 0x596   : > { %v1868_v47 = vadd.f32 %v1867_v26, %v1865_v49  ;;  %v4124_v49 = vld [vmem:[%s6471_s2 + $0x450] sm:$0xff] }
 0x597   : > { %v1855_v33 = vmul.f32 0.5, %v1854_v52  ;;  %v4107_v52 = vld [vmem:[%s6471_s2 + $0x3c8] sm:$0xff] }
 0x598   : > { %1904 = vmatmul.f32.vlgmr.msra.gmra.mxu2 %v1868_v47 }
 0x599   : > { %v1856_v31 = vsub.f32 1.5, %v1855_v33  ;;  %v4106_v33 = vld [vmem:[%s6471_s2 + $0x3c0] sm:$0xff] }
 0x59b   : > { %v1857_v44 = vmul.f32 %v4334_v16, %v1856_v31 }
 0x59d   : > { %v1861_v50 = vsel %vm1860_vm11, %v4334_v16, %v1857_v44  ;;  %v4093_v16 = vld [vmem:[%s6471_s2 + $0x358] sm:$0xff] }
 0x59e   : > { %v1863_v6 = vmul.f32 %v1861_v50, %v5270_v4  ;;  %v1887_v4 = vperm.slane %v5249_v9, 4  ;;  %v4113_v9 = vld [vmem:[%s6471_s2 + $0x3f8] sm:$0xff] }
 0x59f   : > { %2308 = vmatpush.msrb.mxu1 %v4113_v9  ;;  %v4089_v44 = vld [vmem:[%s6471_s2 + $0x338] sm:$0xff] }
 0x5a0   : > { %v1866_v20 = vmul.f32 %v1864_v12, %v1863_v6  ;;  %v4094_v12 = vld [vmem:[%s6471_s2 + $0x360] sm:$0xff]  ;;  %v4105_v50 = vld [vmem:[%s6471_s2 + $0x3b8] sm:$0xff] }
 0x5a1   : > { %2309 = vmatpush.msrb.mxu1 %v4112_v8  ;;  %2030 = vmatpush.msra.mxu0 %v4094_v12  ;;  %v4121_v6 = vld [vmem:[%s6471_s2 + $0x438] sm:$0xff] }
 0x5a2   : > { %v1869_v2 = vadd.f32 %v1867_v26, %v1866_v20  ;;  %v4125_v26 = vld [vmem:[%s6471_s2 + $0x458] sm:$0xff] }
 0x5a3   : > { %2310 = vmatpush.msrb.mxu1 %v4111_v27  ;;  %2031 = vmatpush.msra.mxu0 %v4093_v16 }
 0x5a4   : > { %1907 = vmatmul.f32.gmra.mxu2 %v1869_v2 }
 0x5a5   : > { %2311 = vmatpush.msrb.mxu1 %v4110_v46  ;;  %2593 = vmatpush.msrb.mxu2 %v4125_v26 }
 0x5a6   : > { %2032 = vmatpush.msra.mxu0 %v4092_v11 }
 0x5a7   : > { %2312 = vmatpush.msrb.mxu1 %v4109_v25  ;;  %2594 = vmatpush.msrb.mxu2 %v4124_v49 }
 0x5a8   : > { %2033 = vmatpush.msra.mxu0 %v4091_v40  ;;  %v5544_v40 = vld [vmem:[%s6472_s3 + $0x10] sm:$0xff] }
 0x5a9   : > { %2313 = vmatpush.msrb.mxu1 %v4108_v37 }
 0x5aa   : > { %2034 = vmatpush.msra.mxu0 %v4090_v14 }
 0x5ab   : > { %2314 = vmatpush.msrb.mxu1 %v4107_v52  ;;  %v2307_v52 = vperm.slane %v5544_v40, 1 }
 0x5ac   : > { %2035 = vmatpush.msra.mxu0 %v4089_v44 }
 0x5ad   : > { %2315 = vmatpush.msrb.mxu1 %v4106_v33 }
 0x5af   : > { %2316 = vmatpush.msrb.mxu1 %v4105_v50 }
 0x5b1   : > { %2317 = vmatpush.msrb.mxu1 %v4104_v59 }
 0x61b   : > { %v1905_v55 = vpop.f32.mrf.mxu2 }
 0x61c   : > { %v1906_v51 = vadd.f32 %v1905_v55, %v1887_v4  ;;  %v4119_v55 = vld [vmem:[%s6471_s2 + $0x428] sm:$0xff] }
 0x61e   : > { %v1911_v5 = vmax.f32 %v1906_v51, 0.0  ;;  %v4086_v51 = vld [vmem:[%s6471_s2 + $0x320] sm:$0xff] }
 0x620   : > { %1947 = vmatmul.f32.vlgmr.msrb.gmra.mxu3 %v1911_v5  ;;  %v4102_v5 = vld [vmem:[%s6471_s2 + $0x3a0] sm:$0xff] }
 0x627   : > { %v1908_v13 = vpop.f32.mrf.mxu2 }
 0x628   : > { %v1909_v39 = vadd.f32 %v1908_v13, %v1887_v4  ;;  %v4103_v4 = vld [vmem:[%s6471_s2 + $0x3a8] sm:$0xff]  ;;  %v4118_v13 = vld [vmem:[%s6471_s2 + $0x420] sm:$0xff] }
 0x629   : > { %2318 = vmatpush.msrb.mxu1 %v4103_v4 }
 0x62a   : > { %v1912_v3 = vmax.f32 %v1909_v39, 0.0  ;;  %v4085_v39 = vld [vmem:[%s6471_s2 + $0x318] sm:$0xff] }
 0x62b   : > { %2319 = vmatpush.msrb.mxu1 %v4102_v5 }
 0x62c   : > { %1950 = vmatmul.f32.gmra.mxu3 %v1912_v3  ;;  %v4101_v3 = vld [vmem:[%s6471_s2 + $0x398] sm:$0xff] }
 0x62d   : > { %2320 = vmatpush.msrb.mxu1 %v4101_v3 }
 0x6a3   : > { %v1948_v42 = vpop.f32.mrf.mxu3 }
 0x6a4   : > { %v1949_v43 = vadd.f32 %v1948_v42, %v1930_v48  ;;  %v4084_v42 = vld [vmem:[%s6471_s2 + $0x310] sm:$0xff] }
 0x6a6   : > { %v1954_v54 = vadd.f32 %v1949_v43, %v1868_v47  ;;  %v4123_v47 = vld [vmem:[%s6471_s2 + $0x448] sm:$0xff]  ;;  %v4100_v43 = vld [vmem:[%s6471_s2 + $0x390] sm:$0xff] }
 0x6a7   : > { %2595 = vmatpush.msrb.mxu2 %v4123_v47  ;;  %2321 = vmatpush.msrb.mxu1 %v4100_v43 }
 0x6a8   : > { %v1956_v17 = vmul.f32 %v5252_v56, %v1954_v54 }
 0x6a9   : > { %2596 = vmatpush.msrb.mxu2 %v4122_v61  ;;  %v2026_v61 = vperm.slane %v5544_v40, 0 }
 0x6aa   : > { %1958 = vadd.xlane.f32.xlu0 %v1956_v17 }
 0x6ab   : > { %2597 = vmatpush.msrb.mxu2 %v4121_v6 }
 0x6ad   : > { %2598 = vmatpush.msrb.mxu2 %v4120_v63 }
 0x6af   : > { %v1951_v18 = vpop.f32.mrf.mxu3  ;;  %2599 = vmatpush.msrb.mxu2 %v4119_v55 }
 0x6b0   : > { %v1952_v22 = vadd.f32 %v1951_v18, %v1930_v48  ;;  %v4117_v48 = vld [vmem:[%s6471_s2 + $0x418] sm:$0xff]  ;;  %v4083_v18 = vld [vmem:[%s6471_s2 + $0x308] sm:$0xff] }
 0x6b1   : > { %2600 = vmatpush.msrb.mxu2 %v4118_v13 }
 0x6b2   : > { %v1955_v21 = vadd.f32 %v1952_v22, %v1869_v2  ;;  %v4088_v2 = vld [vmem:[%s6471_s2 + $0x330] sm:$0xff]  ;;  %v4099_v22 = vld [vmem:[%s6471_s2 + $0x388] sm:$0xff] }
 0x6b3   : > { %2036 = vmatpush.msra.mxu0 %v4088_v2  ;;  %2601 = vmatpush.msrb.mxu2 %v4117_v48 }
 0x6b4   : > { %v1957_v7 = vmul.f32 %v5252_v56, %v1955_v21  ;;  %2322 = vmatpush.msrb.mxu1 %v4099_v22 }
 0x6b5   : > { %2037 = vmatpush.msra.mxu0 %v4087_v10 }
 0x6b6   : > { %1960 = vadd.xlane.f32.xlu1 %v1957_v7  ;;  %2323 = vmatpush.msrb.mxu1 %v4098_v30 }
 0x6b7   : > { %2038 = vmatpush.msra.mxu0 %v4086_v51 }
 0x6b9   : > { %2039 = vmatpush.msra.mxu0 %v4085_v39 }
 0x6bb   : > { %2040 = vmatpush.msra.mxu0 %v4084_v42 }
 0x6bd   : > { %2041 = vmatpush.msra.mxu0 %v4083_v18 }
 0x6bf   : > { %2042 = vmatpush.msra.mxu0 %v4082_v29 }
 0x71d   : > { %v1959_v35 = vpop.xlane.xlu0 %1958 }
 0x71e   : > { %v1962_v57 = vmul.f32 0.03125, %v1959_v35 }
 0x720   : > { %v1964_v36 = vsub.f32 %v1954_v54, %v1962_v57  ;;  %v4116_v54 = vld [vmem:[%s6471_s2 + $0x410] sm:$0xff] }
 0x721   : > { %2602 = vmatpush.msrb.mxu2 %v4116_v54 }
 0x722   : > { %v5391_v38 = vmul.f32 %v5252_v56, %v1964_v36 }
 0x723   : > { %2603 = vmatpush.msrb.mxu2 %v4115_v28 }
 0x724   : > { %v1968_v34 = vmul.f32 %v5391_v38, %v5391_v38 }
 0x725   : > { %2604 = vmatpush.msrb.mxu2 %v4114_v32 }
 0x726   : > { %1970 = vadd.xlane.f32.xlu2 %v1968_v34  ;;  %v316_v34 = vld [vmem:[%s6472_s3 + $0x8] sm:$0xff] }
 0x727   : > { %v2003_v27 = vperm.slane %v316_v34, 1 }
 0x729   : > { %v1961_v45 = vpop.xlane.xlu1 %1960 }
 0x72a   : > { %v1963_v1 = vmul.f32 0.03125, %v1961_v45 }
 0x72c   : > { %v1965_v58 = vsub.f32 %v1955_v21, %v1963_v1  ;;  %v2000_v1 = vperm.slane %v316_v34, 0 }
 0x72e   : > { %v5396_v23 = vmul.f32 %v5252_v56, %v1965_v58 }
 0x730   : > { %v1969_v19 = vmul.f32 %v5396_v23, %v5396_v23 }
 0x732   : > { %1972 = vadd.xlane.f32.xlu0 %v1969_v19 }
 0x799   : > { %v1971_v31 = vpop.xlane.xlu2 %1970 }
 0x79a   : > { %v1974_v0 = vmul.f32 0.03125, %v1971_v31 }
 0x79c   : > { %v1976_v20 = vadd.f32 1e-05, %v1974_v0 }
 0x79e   : > { %4335 = vrsqrt.f32 %v1976_v20  ;;  %vm1984_vm13 = vweird.f32 %v1976_v20 }
 0x7a4   : > { %v4336_v17 = vpop.eup %4335 }
 0x7a5   : > { %v1979_v21 = vmul.f32 %v4336_v17, %v1976_v20  ;;  %v1973_v7 = vpop.xlane.xlu0 %1972  ;;  %vm1985_vm12 = vweird.f32 %v4336_v17 }
 0x7a6   : > { %v1975_v9 = vmul.f32 0.03125, %v1973_v7  ;;  %vm1986_vm14 = vmor %vm1984_vm13, %vm1985_vm12 }
 0x7a7   : > { %v1980_v8 = vmul.f32 %v4336_v17, %v1979_v21 }
 0x7a8   : > { %v1977_v35 = vadd.f32 1e-05, %v1975_v9 }
 0x7a9   : > { %v1981_v57 = vmul.f32 0.5, %v1980_v8 }
 0x7aa   : > { %4337 = vrsqrt.f32 %v1977_v35  ;;  %vm1994_vm5 = vweird.f32 %v1977_v35 }
 0x7ab   : > { %v1982_v36 = vsub.f32 1.5, %v1981_v57 }
 0x7ad   : > { %v1983_v45 = vmul.f32 %v4336_v17, %v1982_v36 }
 0x7af   : > { %v1987_v58 = vsel %vm1986_vm14, %v4336_v17, %v1983_v45 }
 0x7b0   : > { %v4338_v19 = vpop.eup %4337  ;;  %v1998_v24 = vmul.f32 %v1987_v58, %v5391_v38 }
 0x7b1   : > { %v1989_v41 = vmul.f32 %v4338_v19, %v1977_v35  ;;  %vm1995_vm15 = vweird.f32 %v4338_v19 }
 0x7b2   : > { %v2001_v12 = vmul.f32 %v2000_v1, %v1998_v24  ;;  %vm1996_vm6 = vmor %vm1994_vm5, %vm1995_vm15 }
 0x7b3   : > { %v1990_v46 = vmul.f32 %v4338_v19, %v1989_v41 }
 0x7b4   : > { %v5530_v62 = vadd.f32 %v2003_v27, %v2001_v12 }
 0x7b5   : > { %v1991_v16 = vmul.f32 0.5, %v1990_v46 }
 0x7b6   : > { %2043 = vmatmul.f32.vlgmr.msra.gmra.mxu0 %v5530_v62  ;;  %2324 = vmatmul.f32.vlgmr.msrb.gmra.mxu1 %v5530_v62 }
 0x7b7   : > { %v1992_v25 = vsub.f32 1.5, %v1991_v16  ;;  %2605 = vmatmul.f32.vlgmr.msrb.gmra.mxu2 %v5530_v62 }
 0x7b9   : > { %v1993_v26 = vmul.f32 %v4338_v19, %v1992_v25 }
 0x7bb   : > { %v1997_v11 = vsel %vm1996_vm6, %v4338_v19, %v1993_v26 }
 0x7bc   : > { %v1999_v38 = vmul.f32 %v1997_v11, %v5396_v23 }
 0x7be   : > { %v2002_v37 = vmul.f32 %v2000_v1, %v1999_v38 }
 0x7c0   : > { %v5536_v49 = vadd.f32 %v2003_v27, %v2002_v37 }
 0x7c2   : > { %2046 = vmatmul.f32.gmra.mxu0 %v5536_v49  ;;  %2327 = vmatmul.f32.gmra.mxu1 %v5536_v49 }
 0x7c3   : > { %2608 = vmatmul.f32.gmra.mxu2 %v5536_v49 }
 0x833   : > { %v2325_v47 = vpop.f32.mrf.mxu1  ;;  %v2044_v31 = vpop.f32.mrf.mxu0 }
 0x834   : > { %v2326_v14 = vadd.f32 %v2325_v47, %v2307_v52  ;;  %v5553_v0 = vadd.f32 %v2044_v31, %v2026_v61 }
 0x836   : > { %2339 = vrot.lane.b32.xlu0 %v2326_v14, %s4392_s12  ;;  %2333 = vrot.lane.b32.xlu1 %v2326_v14, %s4393_s13  ;;  %v2353_v59 = vrot.slane %v2326_v14, 4  ;;  %v2072_v58 = vrot.slane %v5553_v0, 4 }
 0x83f   : > { %v2328_v23 = vpop.f32.mrf.mxu1  ;;  %v2047_v44 = vpop.f32.mrf.mxu0 }
 0x840   : > { %v2329_v33 = vadd.f32 %v2328_v23, %v2307_v52  ;;  %v5560_v50 = vadd.f32 %v2047_v44, %v2026_v61 }
 0x842   : > { %2347 = vrot.lane.b32.xlu0 %v2329_v33, %s4391_s10  ;;  %2341 = vrot.lane.b32.xlu2 %v2329_v33, %s4392_s12  ;;  %v2409_v29 = vrot.slane %v2329_v33, 4  ;;  %v2128_v26 = vrot.slane %v5560_v50, 4 }
 0x843   : > { %2335 = vrot.lane.b32.xlu1 %v2329_v33, %s4393_s13 }
 0x84a   : > { %2058 = vrot.lane.b32.xlu0 %v5553_v0, %s4392_s12  ;;  %2345 = vrot.lane.b32.xlu2 %v2326_v14, %s4391_s10 }
 0x84b   : > { %2052 = vrot.lane.b32.xlu1 %v5553_v0, %s4393_s13 }
 0x852   : > { %2064 = vrot.lane.b32.xlu2 %v5553_v0, %s4391_s10  ;;  %2060 = vrot.lane.b32.xlu0 %v5560_v50, %s4392_s12 }
 0x853   : > { %2054 = vrot.lane.b32.xlu1 %v5560_v50, %s4393_s13 }
 0x85a   : > { %2066 = vrot.lane.b32.xlu2 %v5560_v50, %s4391_s10 }
 0x89c   : > { %v2342_v6 = vpop.permute.xlu2 %2341 }
 0x89d   : > { %v2407_v18 = vrot.slane %v2342_v6, 4  ;;  %v2410_v57 = vsel %vm378_vm0, %v2342_v6, %v2409_v29 }
 0x89e   : > { %v2418_v12 = vperm.slane %v2410_v57, %v4597_v53 }
 0x89f   : > { %v2408_v1 = vsel %vm378_vm0, %v2407_v18, %v2329_v33 }
 0x8a0   : > { %v2414_v11 = vperm.slane %v2408_v1, %v4597_v53 }
 0x8a4   : > { %v2346_v20 = vpop.permute.xlu2 %2345 }
 0x8a5   : > { %v2363_v2 = vrot.slane %v2346_v20, 4 }
 0x8a8   : > { %v2334_v63 = vpop.permute.xlu1 %2333  ;;  %v2340_v10 = vpop.permute.xlu0 %2339 }
 0x8a9   : > { %v2364_v4 = vsel %vm378_vm0, %v2363_v2, %v2334_v63  ;;  %v2365_v55 = vrot.slane %v2334_v63, 4  ;;  %v2351_v51 = vrot.slane %v2340_v10, 4  ;;  %v2354_v5 = vsel %vm378_vm0, %v2340_v10, %v2353_v59 }
 0x8aa   : > { %v2370_v13 = vperm.slane %v2364_v4, %v4597_v53  ;;  %v2362_v39 = vperm.slane %v2354_v5, %v4597_v53 }
 0x8ab   : > { %v2366_v3 = vsel %vm378_vm0, %v2346_v20, %v2365_v55  ;;  %v2352_v48 = vsel %vm378_vm0, %v2351_v51, %v2326_v14  ;;  %v2433_v55 = vrot.slane %v2414_v11, 4  ;;  %v2445_v51 = vrot.slane %v2418_v12, 4 }
 0x8ac   : > { %v2374_v42 = vperm.slane %v2366_v3, %v4597_v53  ;;  %v2375_v43 = vrot.slane %v2370_v13, 4  ;;  %v2358_v54 = vperm.slane %v2352_v48, %v4597_v53  ;;  %v2389_v17 = vrot.slane %v2362_v39, 4  ;;  %v5578_v22 = vpop.permute.xlu2 %2064 }
 0x8ae   : > { %v2387_v21 = vrot.slane %v2374_v42, 4  ;;  %v2376_v7 = vsel %vm378_vm0, %v2375_v43, %v2358_v54  ;;  %v2377_v28 = vrot.slane %v2358_v54, 4  ;;  %v2390_v9 = vsel %vm378_vm0, %v2374_v42, %v2389_v17 }
 0x8af   : > { %v2382_v30 = vperm.slane %v2376_v7, %v4616_v15  ;;  %v2398_v8 = vperm.slane %v2390_v9, %v4616_v15 }
 0x8b0   : > { %v2378_v32 = vsel %vm378_vm0, %v2370_v13, %v2377_v28  ;;  %v2388_v35 = vsel %vm378_vm0, %v2387_v21, %v2362_v39  ;;  %v2082_v39 = vrot.slane %v5578_v22, 4 }
 0x8b1   : > { %v2386_v36 = vperm.slane %v2378_v32, %v4616_v15  ;;  %v2394_v34 = vperm.slane %v2388_v35, %v4616_v15  ;;  %v2405_v45 = vrot.slane %v2398_v8, 4  ;;  %v2399_v19 = vrot.slane %v2382_v30, 4 }
 0x8b3   : > { %v2401_v24 = vrot.slane %v2386_v36, 4  ;;  %v2403_v27 = vrot.slane %v2394_v34, 4  ;;  %v2406_v41 = vsel %vm378_vm0, 0.0, %v2405_v45  ;;  %v2474_v46 = vsel %vm378_vm0, %v2405_v45, %v2394_v34 }
 0x8b4   : > { %v2479_v16 = vrot.slane %v2406_v41, 4  ;;  %v2348_v25 = vpop.permute.xlu0 %2347  ;;  %v2478_v52 = vperm.slane %v2474_v46, %v4597_v53  ;;  %v2400_v31 = vsel %vm378_vm0, 0.0, %v2399_v19  ;;  %v5602_v6 = vpop.permute.xlu2 %2066 }
 0x8b5   : > { %v2402_v38 = vsel %vm378_vm0, 0.0, %v2401_v24  ;;  %v2404_v37 = vsel %vm378_vm0, 0.0, %v2403_v27  ;;  %v2336_v47 = vpop.permute.xlu1 %2335  ;;  %v2419_v61 = vrot.slane %v2348_v25, 4  ;;  %v2463_v20 = vsel %vm378_vm0, %v2401_v24, %v2382_v30 }
 0x8b6   : > { %v2468_v14 = vrot.slane %v2402_v38, 4  ;;  %v2480_v23 = vsel %vm378_vm0, %v2479_v16, %v2404_v37  ;;  %v2421_v33 = vrot.slane %v2336_v47, 4  ;;  %v2499_v2 = vrot.slane %v2478_v52, 4 }
 0x8b7   : > { %v2484_v44 = vperm.slane %v2480_v23, %v4597_v53  ;;  %v2420_v59 = vsel %vm378_vm0, %v2419_v61, %v2336_v47  ;;  %v5608_v10 = vperm.slane %v2463_v20, %v4597_v53  ;;  %v2138_v3 = vrot.slane %v5602_v6, 4 }
 0x8b8   : > { %v2422_v63 = vsel %vm378_vm0, %v2348_v25, %v2421_v33  ;;  %v2469_v4 = vsel %vm378_vm0, %v2468_v14, %v2400_v31  ;;  %v2426_v5 = vperm.slane %v2420_v59, %v4597_v53 }
 0x8b9   : > { %v2430_v13 = vperm.slane %v2422_v63, %v4597_v53  ;;  %v5616_v48 = vperm.slane %v2469_v4, %v4597_v53  ;;  %v2497_v42 = vrot.slane %v2484_v44, 4  ;;  %v2487_v9 = vrot.slane %v5608_v10, 4 }
 0x8ba   : > { %v2431_v43 = vrot.slane %v2426_v5, 4  ;;  %v2434_v54 = vsel %vm378_vm0, %v2426_v5, %v2433_v55  ;;  %v5624_v29 = vsel %vm378_vm0, %v2484_v44, %v2499_v2 }
 0x8bb   : > { %v2443_v17 = vrot.slane %v2430_v13, 4  ;;  %v2446_v18 = vsel %vm378_vm0, %v2430_v13, %v2445_v51  ;;  %v2442_v21 = vperm.slane %v2434_v54, %v4616_v15  ;;  %v2485_v37 = vrot.slane %v5616_v48, 4 }
 0x8bc   : > { %v2454_v7 = vperm.slane %v2446_v18, %v4616_v15  ;;  %v2059_v28 = vpop.permute.xlu0 %2058  ;;  %v2432_v30 = vsel %vm378_vm0, %v2431_v43, %v2414_v11  ;;  %v5647_v23 = vsel %vm378_vm0, %v2497_v42, %v2478_v52 }
 0x8bd   : > { %v2444_v8 = vsel %vm378_vm0, %v2443_v17, %v2418_v12  ;;  %v2053_v32 = vpop.permute.xlu1 %2052  ;;  %v2070_v35 = vrot.slane %v2059_v28, 4  ;;  %v2073_v57 = vsel %vm378_vm0, %v2059_v28, %v2072_v58  ;;  %v2438_v36 = vperm.slane %v2432_v30, %v4616_v15 }
 0x8be   : > { %v2450_v34 = vperm.slane %v2444_v8, %v4616_v15  ;;  %v2457_v45 = vrot.slane %v2442_v21, 4  ;;  %v2461_v1 = vrot.slane %v2454_v7, 4  ;;  %v2083_v19 = vsel %vm378_vm0, %v2082_v39, %v2053_v32 }
 0x8bf   : > { %v2084_v24 = vrot.slane %v2053_v32, 4  ;;  %v2071_v27 = vsel %vm378_vm0, %v2070_v35, %v5553_v0  ;;  %v2081_v41 = vperm.slane %v2073_v57, %v4597_v53  ;;  %v2455_v46 = vrot.slane %v2438_v36, 4 }
 0x8c0   : > { %v5636_v12 = vsel %vm378_vm0, 0.0, %v2457_v45  ;;  %v2459_v16 = vrot.slane %v2450_v34, 4  ;;  %v2462_v58 = vsel %vm378_vm0, 0.0, %v2461_v1  ;;  %v2528_v25 = vsel %vm378_vm0, %v2461_v1, %v2450_v34 }
 0x8c1   : > { %v2533_v11 = vrot.slane %v2462_v58, 4  ;;  %v2085_v38 = vsel %vm378_vm0, %v5578_v22, %v2084_v24  ;;  %v2522_v0 = vrot.slane %v5636_v12, 4  ;;  %v2089_v14 = vperm.slane %v2083_v19, %v4597_v53 }
 0x8c2   : > { %v2460_v47 = vsel %vm378_vm0, 0.0, %v2459_v16  ;;  %v2093_v61 = vperm.slane %v2085_v38, %v4597_v53  ;;  %v2077_v31 = vperm.slane %v2071_v27, %v4597_v53  ;;  %v2108_v44 = vrot.slane %v2081_v41, 4 }
 0x8c3   : > { %v2534_v33 = vsel %vm378_vm0, %v2533_v11, %v2460_v47  ;;  %v2456_v22 = vsel %vm378_vm0, 0.0, %v2455_v46  ;;  %v5654_v20 = vperm.slane %v2528_v25, %v4597_v53  ;;  %v2094_v59 = vrot.slane %v2089_v14, 4 }
 0x8c4   : > { %v5657_v2 = vperm.slane %v2534_v33, %v4597_v53  ;;  %v2061_v63 = vpop.permute.xlu0 %2060  ;;  %v2106_v4 = vrot.slane %v2093_v61, 4  ;;  %v2096_v52 = vrot.slane %v2077_v31, 4  ;;  %v2109_v55 = vsel %vm378_vm0, %v2093_v61, %v2108_v44 }
 0x8c5   : > { %v2055_v51 = vpop.permute.xlu1 %2054  ;;  %v2126_v5 = vrot.slane %v2061_v63, 4  ;;  %v2095_v13 = vsel %vm378_vm0, %v2094_v59, %v2077_v31  ;;  %v2117_v39 = vperm.slane %v2109_v55, %v4616_v15  ;;  %v2553_v27 = vrot.slane %v5654_v20, 4 }
 0x8c6   : > { %v2139_v42 = vsel %vm378_vm0, %v2138_v3, %v2055_v51  ;;  %v2140_v43 = vrot.slane %v2055_v51, 4  ;;  %v2097_v54 = vsel %vm378_vm0, %v2089_v14, %v2096_v52  ;;  %v5665_v17 = vperm.slane %v2095_v13, %v4616_v15 }
 0x8c7   : > { %v2107_v18 = vsel %vm378_vm0, %v2106_v4, %v2081_v41  ;;  %v2145_v21 = vperm.slane %v2139_v42, %v4597_v53  ;;  %v2105_v7 = vperm.slane %v2097_v54, %v4616_v15  ;;  %v2124_v30 = vrot.slane %v2117_v39, 4 }
 0x8c8   : > { %v2113_v28 = vperm.slane %v2107_v18, %v4616_v15  ;;  %v2141_v8 = vsel %vm378_vm0, %v5602_v6, %v2140_v43  ;;  %v2118_v3 = vrot.slane %v5665_v17, 4  ;;  %v2127_v57 = vsel %vm378_vm0, %v2126_v5, %v5560_v50 }
 0x8c9   : > { %v2149_v32 = vperm.slane %v2141_v8, %v4597_v53  ;;  %v2150_v35 = vrot.slane %v2145_v21, 4  ;;  %v5677_v34 = vrot.slane %v2105_v7, 4  ;;  %v2125_v19 = vsel %vm378_vm0, 0.0, %v2124_v30 }
 0x8ca   : > { %v2122_v1 = vrot.slane %v2113_v28, 4  ;;  %v2193_v24 = vsel %vm378_vm0, %v2124_v30, %v2113_v28  ;;  %v2198_v41 = vrot.slane %v2125_v19, 4  ;;  %v2517_v6 = vsel %vm378_vm0, %v2457_v45, %v2438_v36 }
 0x8cb   : > { %v2162_v46 = vrot.slane %v2149_v32, 4  ;;  %v5685_v12 = vsel %vm378_vm0, 0.0, %v5677_v34  ;;  %v2129_v58 = vsel %vm378_vm0, %v2061_v63, %v2128_v26  ;;  %v2133_v25 = vperm.slane %v2127_v57, %v4597_v53 }
 0x8cc   : > { %v2123_v16 = vsel %vm378_vm0, 0.0, %v2122_v1  ;;  %v2119_v11 = vsel %vm378_vm0, 0.0, %v2118_v3  ;;  %v5694_v38 = vperm.slane %v2193_v24, %v4597_v53  ;;  %v2137_v36 = vperm.slane %v2129_v58, %v4597_v53 }
 0x8cd   : > { %v2199_v47 = vsel %vm378_vm0, %v2198_v41, %v2123_v16  ;;  %v2187_v45 = vrot.slane %v5685_v12, 4  ;;  %v2151_v50 = vsel %vm378_vm0, %v2150_v35, %v2133_v25  ;;  %v2152_v33 = vrot.slane %v2133_v25, 4 }
 0x8ce   : > { %v5700_v14 = vperm.slane %v2199_v47, %v4597_v53  ;;  %v5704_v26 = vperm.slane %v2151_v50, %v4616_v15  ;;  %v2163_v61 = vsel %vm378_vm0, %v2162_v46, %v2137_v36  ;;  %v2164_v31 = vrot.slane %v2137_v36, 4 }
 0x8cf   : > { %v2523_v44 = vsel %vm378_vm0, %v2522_v0, %v2456_v22  ;;  %v2153_v59 = vsel %vm378_vm0, %v2145_v21, %v2152_v33  ;;  %v2169_v63 = vperm.slane %v2163_v61, %v4616_v15  ;;  %v2521_v4 = vperm.slane %v2517_v6, %v4597_v53 }
 0x8d0   : > { %v2527_v52 = vperm.slane %v2523_v44, %v4597_v53  ;;  %v2161_v55 = vperm.slane %v2153_v59, %v4616_v15  ;;  %v2165_v51 = vsel %vm378_vm0, %v2149_v32, %v2164_v31  ;;  %v2174_v5 = vrot.slane %v5704_v26, 4 }
 0x8d1   : > { %v2551_v13 = vrot.slane %v5657_v2, 4  ;;  %v2173_v39 = vperm.slane %v2165_v51, %v4616_v15  ;;  %v2178_v42 = vrot.slane %v2169_v63, 4  ;;  %v2486_v22 = vsel %vm378_vm0, %v2485_v37, %v5608_v10 }
 0x8d2   : > { %v2539_v0 = vrot.slane %v2527_v52, 4  ;;  %v2216_v43 = vrot.slane %v5700_v14, 4  ;;  %v2176_v54 = vrot.slane %v2161_v55, 4  ;;  %v2492_v21 = vperm.slane %v2486_v22, %v4616_v15 }
 0x8d3   : > { %v2552_v18 = vsel %vm378_vm0, %v2551_v13, %v5654_v20  ;;  %v2175_v7 = vsel %vm378_vm0, 0.0, %v2174_v5  ;;  %v2180_v28 = vrot.slane %v2173_v39, 4  ;;  %v2504_v37 = vperm.slane %v5647_v23, %v4616_v15 }
 0x8d4   : > { %v2540_v30 = vsel %vm378_vm0, %v2539_v0, %v2521_v4  ;;  %v2558_v8 = vperm.slane %v2552_v18, %v4616_v15  ;;  %v2177_v3 = vsel %vm378_vm0, 0.0, %v2176_v54  ;;  %v2511_v35 = vrot.slane %v2492_v21, 4 }
 0x8d5   : > { %v2546_v32 = vperm.slane %v2540_v30, %v4616_v15  ;;  %v2179_v57 = vsel %vm378_vm0, 0.0, %v2178_v42  ;;  %v2181_v20 = vsel %vm378_vm0, 0.0, %v2180_v28  ;;  %v2241_v1 = vrot.slane %v2177_v3, 4 }
 0x8d6   : > { %v2563_v19 = vrot.slane %v2558_v8, 4  ;;  %v2247_v24 = vsel %vm378_vm0, %v2180_v28, %v2169_v63  ;;  %v2252_v41 = vrot.slane %v2181_v20, 4  ;;  %v2509_v6 = vrot.slane %v2504_v37, 4 }
 0x8d7   : > { %v2565_v46 = vrot.slane %v2546_v32, 4  ;;  %v2512_v16 = vsel %vm378_vm0, %v2504_v37, %v2511_v35  ;;  %v2541_v58 = vrot.slane %v2521_v4, 4  ;;  %v2554_v23 = vsel %vm378_vm0, %v5657_v2, %v2553_v27 }
 0x8d8   : > { %v2564_v12 = vsel %vm378_vm0, %v2563_v19, %v2546_v32  ;;  %v2253_v25 = vsel %vm378_vm0, %v2252_v41, %v2179_v57  ;;  %v2562_v36 = vperm.slane %v2554_v23, %v4616_v15  ;;  %v2182_v50 = vsel %vm378_vm0, %v5677_v34, %v5665_v17 }
 0x8d9   : > { %4130 = vmatpush.xpose.msk.msra.mxu3 %vm1160_vm1, %v2564_v12  ;;  %v2566_v47 = vsel %vm378_vm0, %v2558_v8, %v2565_v46  ;;  %v5747_v33 = vperm.slane %v2253_v25, %v4597_v53  ;;  %v2510_v61 = vsel %vm378_vm0, %v2509_v6, %v2492_v21  ;;  %v2542_v2 = vsel %vm378_vm0, %v2527_v52, %v2541_v58 }
 0x8da   : > { %4134 = vmatpush.xpose.msk.msrb.mxu0 %vm1160_vm1, %v2566_v47  ;;  %v2188_v27 = vsel %vm378_vm0, %v2187_v45, %v2119_v11  ;;  %v2550_v31 = vperm.slane %v2542_v2, %v4616_v15  ;;  %v2567_v44 = vrot.slane %v2562_v36, 4  ;;  %v2217_v63 = vsel %vm378_vm0, %v2216_v43, %v5694_v38 }
 0x8db   : > { %v2192_v59 = vperm.slane %v2188_v27, %v4597_v53  ;;  %v2186_v17 = vperm.slane %v2182_v50, %v4597_v53  ;;  %v2223_v34 = vperm.slane %v2217_v63, %v4616_v15  ;;  %v2488_v4 = vsel %vm378_vm0, %v5616_v48, %v2487_v9 }
 0x8dc   : > { %v2508_v11 = vperm.slane %v5624_v29, %v4616_v15  ;;  %v2568_v45 = vsel %vm378_vm0, %v2567_v44, %v2550_v31  ;;  %v2569_v52 = vrot.slane %v2550_v31, 4  ;;  %v2496_v51 = vperm.slane %v2488_v4, %v4616_v15 }
 0x8dd   : > { %4131 = vmatpush.xpose.msk.msra.mxu3 %vm1160_vm1, %v2510_v61  ;;  %v2204_v55 = vrot.slane %v2192_v59, 4  ;;  %v2228_v5 = vrot.slane %v2223_v34, 4  ;;  %v2236_v48 = vsel %vm378_vm0, %v2176_v54, %v5704_v26  ;;  %v2242_v9 = vsel %vm378_vm0, %v2241_v1, %v2175_v7 }
 0x8de   : > { %4135 = vmatpush.xpose.msk.msrb.mxu0 %vm1160_vm1, %v2512_v16  ;;  %v2513_v10 = vrot.slane %v2508_v11, 4  ;;  %v2570_v29 = vsel %vm378_vm0, %v2562_v36, %v2569_v52  ;;  %v2515_v39 = vrot.slane %v2496_v51, 4  ;;  %v2246_v42 = vperm.slane %v2242_v9, %v4597_v53 }
 0x8df   : > { %v2205_v13 = vsel %vm378_vm0, %v2204_v55, %v2186_v17  ;;  %v2251_v22 = vperm.slane %v2247_v24, %v4597_v53  ;;  %v2270_v43 = vrot.slane %v5747_v33, 4  ;;  %v2240_v26 = vperm.slane %v2236_v48, %v4597_v53 }
 0x8e0   : > { %v2211_v0 = vperm.slane %v2205_v13, %v4616_v15  ;;  %v2514_v18 = vsel %vm378_vm0, %v2513_v10, %v2496_v51  ;;  %v2258_v54 = vrot.slane %v2246_v42, 4  ;;  %v2218_v30 = vrot.slane %v5694_v38, 4 }
 0x8e1   : > { %4138 = vmatpush.xpose.msk.msrb.mxu3 %vm1160_vm1, %v2568_v45  ;;  %v2271_v28 = vsel %vm378_vm0, %v2270_v43, %v2251_v22  ;;  %v2516_v8 = vsel %vm378_vm0, %v2508_v11, %v2515_v39  ;;  %v2206_v20 = vrot.slane %v2186_v17, 4  ;;  %v2272_v6 = vrot.slane %v2251_v22, 4 }
 0x8e2   : > { %4142 = vmatpush.xpose.msk.msra.mxu0 %vm1160_vm1, %v2570_v29  ;;  %v2229_v21 = vsel %vm378_vm0, %v2228_v5, %v2211_v0  ;;  %v2230_v7 = vrot.slane %v2211_v0, 4  ;;  %v2259_v3 = vsel %vm378_vm0, %v2258_v54, %v2240_v26  ;;  %v2277_v32 = vperm.slane %v2271_v28, %v4616_v15  ;;  %v2606_v54 = vpop.f32.mrf.mxu2 }
 0x8e3   : > { %4132 = vmatmul.msk.f32.vlgmr.msra.gmra.mxu3 %vm1160_vm1, %v2229_v21  ;;  %v2265_v35 = vperm.slane %v2259_v3, %v4616_v15  ;;  %v2219_v38 = vsel %vm378_vm0, %v5700_v14, %v2218_v30  ;;  %v2207_v24 = vsel %vm378_vm0, %v2192_v59, %v2206_v20  ;;  %v2260_v16 = vrot.slane %v2240_v26, 4 }
 0x8e4   : > { %v2231_v37 = vsel %vm378_vm0, %v2223_v34, %v2230_v7  ;;  %v2282_v57 = vrot.slane %v2277_v32, 4  ;;  %v2227_v46 = vperm.slane %v2219_v38, %v4616_v15  ;;  %v2215_v12 = vperm.slane %v2207_v24, %v4616_v15 }
 0x8e5   : > { %4139 = vmatpush.xpose.msk.msrb.mxu3 %vm1160_vm1, %v2514_v18  ;;  %4136 = vmatmul.msk.f32.vlgmr.msrb.gmra.mxu0 %vm1160_vm1, %v2231_v37  ;;  %v2284_v1 = vrot.slane %v2265_v35, 4  ;;  %v2273_v14 = vsel %vm378_vm0, %v5747_v33, %v2272_v6  ;;  %v2261_v25 = vsel %vm378_vm0, %v2246_v42, %v2260_v16 }
 0x8e6   : > { %4143 = vmatpush.xpose.msk.msra.mxu0 %vm1160_vm1, %v2516_v8  ;;  %v2283_v19 = vsel %vm378_vm0, %v2282_v57, %v2265_v35  ;;  %v2232_v58 = vrot.slane %v2227_v46, 4  ;;  %v2234_v23 = vrot.slane %v2215_v12, 4  ;;  %v2281_v36 = vperm.slane %v2273_v14, %v4616_v15 }
 0x8e7   : > { %v2285_v41 = vsel %vm378_vm0, %v2277_v32, %v2284_v1  ;;  %v2269_v61 = vperm.slane %v2261_v25, %v4616_v15  ;;  %v2588_v57 = vperm.slane %v5544_v40, 2 }
 0x8e8   : > { %v2233_v47 = vsel %vm378_vm0, %v2232_v58, %v2215_v12  ;;  %v2235_v50 = vsel %vm378_vm0, %v2227_v46, %v2234_v23  ;;  %v2286_v2 = vrot.slane %v2281_v36, 4 }
 0x8e9   : > { %v2288_v27 = vrot.slane %v2269_v61, 4  ;;  %v5838_v1 = vadd.f32 %v2606_v54, %v2588_v57 }
 0x8ea   : > { %v2287_v31 = vsel %vm378_vm0, %v2286_v2, %v2269_v61  ;;  %v2609_v37 = vpop.f32.mrf.mxu2 }
 0x8eb   : > { %4133 = vmatmul.msk.f32.gmra.mxu3 %vm1160_vm1, %v2283_v19  ;;  %v2289_v33 = vsel %vm378_vm0, %v2281_v36, %v2288_v27  ;;  %v5836_v20 = vadd.f32 %v2609_v37, %v2588_v57 }
 0x8ed   : > { %4137 = vmatmul.msk.f32.gmra.mxu0 %vm1160_vm1, %v2285_v41  ;;  %v4284_v38 = vpack.i.bf16 %v5838_v1, %v5836_v20 }
 0x8f3   : > { %4140 = vmatmul.msk.f32.vlgmr.msrb.gmra.mxu3 %vm1160_vm1, %v2233_v47 }
 0x8f5   : > { %4144 = vmatmul.msk.f32.vlgmr.msra.gmra.mxu0 %vm1160_vm1, %v2235_v50 }
 0x8fb   : > { %4141 = vmatmul.msk.f32.gmra.mxu3 %vm1160_vm1, %v2287_v31 }
 0x8fd   : > { %4145 = vmatmul.msk.f32.gmra.mxu0 %vm1160_vm1, %v2289_v33 }
 0x962   : > { %v2916_v44 = vpop.f32.mrf.mxu0 }
 0x963   : > { %v2994_v59 = vmul.f32 0.35355338, %v2916_v44 }
 0x965   : > { %v3002_v63 = vadd.f32 %v2994_v59, %v4942_v60 }
 0x966   : > { %v2881_v17 = vpop.f32.mrf.mxu3 }
 0x967   : > { %v2992_v34 = vmul.f32 0.35355338, %v2881_v17  ;;  %v3014_v4 = vsel %vm1320_vm2, %v3002_v63, -inf }
 0x968   : > { %3015 = vmax.xlane.f32.xlu0 %v3014_v4 }
 0x969   : > { %v3000_v11 = vadd.f32 %v2992_v34, %v4942_v60 }
 0x96a   : > { %v2919_v45 = vpop.f32.mrf.mxu0 }
 0x96b   : > { %v2995_v52 = vmul.f32 0.35355338, %v2919_v45  ;;  %v3008_v55 = vsel %vm1320_vm2, %v3000_v11, -inf }
 0x96c   : > { %3009 = vmax.xlane.f32.xlu2 %v3008_v55 }
 0x96d   : > { %v5821_v10 = vadd.f32 %v2995_v52, %v4942_v60 }
 0x96e   : > { %v2884_v51 = vpop.f32.mrf.mxu3 }
 0x96f   : > { %v2993_v5 = vmul.f32 0.35355338, %v2884_v51  ;;  %v3017_v13 = vsel %vm1320_vm2, %v5821_v10, -inf }
 0x971   : > { %v3001_v48 = vadd.f32 %v2993_v5, %v4942_v60 }
 0x972   : > { %v2986_v9 = vpop.f32.mrf.mxu0 }
 0x973   : > { %v2998_v29 = vmul.f32 0.35355338, %v2986_v9  ;;  %v3011_v39 = vsel %vm1320_vm2, %v3001_v48, -inf }
 0x974   : > { %3018 = vmax.xlane.f32.xlu2 %v3017_v13  ;;  %3012 = vmax.xlane.f32.xlu1 %v3011_v39 }
 0x975   : > { %v3006_v42 = vadd.f32 %v2998_v29, %v4942_v60 }
 0x976   : > { %v2951_v0 = vpop.f32.mrf.mxu3 }
 0x977   : > { %v2996_v22 = vmul.f32 0.35355338, %v2951_v0  ;;  %v3026_v43 = vsel %vm1320_vm2, %v3006_v42, -inf }
 0x978   : > { %3027 = vmax.xlane.f32.xlu0 %v3026_v43 }
 0x979   : > { %v3004_v18 = vadd.f32 %v2996_v22, %v4942_v60 }
 0x97a   : > { %v2989_v26 = vpop.f32.mrf.mxu0 }
 0x97b   : > { %v2999_v21 = vmul.f32 0.35355338, %v2989_v26  ;;  %v3020_v7 = vsel %vm1320_vm2, %v3004_v18, -inf }
 0x97c   : > { %3021 = vmax.xlane.f32.xlu1 %v3020_v7 }
 0x97d   : > { %v3007_v28 = vadd.f32 %v2999_v21, %v4942_v60 }
 0x97e   : > { %v2954_v30 = vpop.f32.mrf.mxu3 }
 0x97f   : > { %v2997_v8 = vmul.f32 0.35355338, %v2954_v30  ;;  %v3029_v3 = vsel %vm1320_vm2, %v3007_v28, -inf }
 0x980   : > { %3030 = vmax.xlane.f32.xlu0 %v3029_v3 }
 0x981   : > { %v3005_v32 = vadd.f32 %v2997_v8, %v4942_v60 }
 0x983   : > { %v3023_v35 = vsel %vm1320_vm2, %v3005_v32, -inf }
 0x984   : > { %3024 = vmax.xlane.f32.xlu1 %v3023_v35 }
 0x98c   : > { %4285 = vrot.lane.b32.xlu2 %v4284_v38, %s4393_s13 }
 0x994   : > { %4295 = vrot.lane.b32.xlu0 %v4284_v38, %s4391_s10 }
 0x99d   : > { %4290 = vrot.lane.b32.xlu1 %v4284_v38, %s4392_s12  ;;  %v2634_v38 = vrot.slane %v5838_v1, 4 }
 0x9db   : > { %v3016_v60 = vpop.xlane.xlu0 %3015 }
 0x9dc   : > { %v3034_v19 = vsub.f32 %v3002_v63, %v3016_v60  ;;  %v2690_v60 = vrot.slane %v5836_v20, 4 }
 0x9de   : > { %v3044_v24 = vmul.f32 1.442695, %v3034_v19 }
 0x9df   : > { %v3010_v41 = vpop.xlane.xlu2 %3009 }
 0x9e0   : > { %4339 = vpow2.f32 %v3044_v24  ;;  %v3032_v40 = vsub.f32 %v3000_v11, %v3010_v41 }
 0x9e2   : > { %v3040_v46 = vmul.f32 1.442695, %v3032_v40 }
 0x9e4   : > { %4341 = vpow2.f32 %v3040_v46 }
 0x9e6   : > { %v5845_v6 = vpop.eup %4339 }
 0x9e7   : > { %v3013_v12 = vpop.xlane.xlu1 %3012  ;;  %v3062_v16 = vsel %vm1320_vm2, %v5845_v6, 0.0  ;;  %v3019_v34 = vpop.xlane.xlu2 %3018 }
 0x9e8   : > { %v3033_v58 = vsub.f32 %v3001_v48, %v3013_v12  ;;  %3063 = vadd.xlane.f32.xlu0 %v3062_v16  ;;  %v3035_v55 = vsub.f32 %v5821_v10, %v3019_v34 }
 0x9ea   : > { %v5849_v14 = vpop.eup %4341  ;;  %v3042_v23 = vmul.f32 1.442695, %v3033_v58  ;;  %v3046_v9 = vmul.f32 1.442695, %v3035_v55 }
 0x9eb   : > { %v3028_v25 = vpop.xlane.xlu0 %3027  ;;  %v3056_v47 = vsel %vm1320_vm2, %v5849_v14, 0.0 }
 0x9ec   : > { %v3038_v36 = vsub.f32 %v3006_v42, %v3028_v25  ;;  %3057 = vadd.xlane.f32.xlu1 %v3056_v47  ;;  %4343 = vpow2.f32 %v3042_v23 }
 0x9ee   : > { %v3052_v50 = vmul.f32 1.442695, %v3038_v36 }
 0x9ef   : > { %v3022_v61 = vpop.xlane.xlu1 %3021  ;;  %v4286_v39 = vpop.permute.xlu2 %4285 }
 0x9f0   : > { %4345 = vpow2.f32 %v3052_v50  ;;  %v3036_v2 = vsub.f32 %v3004_v18, %v3022_v61  ;;  %v4288_v42 = vunpack.i.h.bf16 %v4286_v39  ;;  %v4287_v0 = vunpack.i.l.bf16 %v4286_v39 }
 0x9f2   : > { %v3048_v27 = vmul.f32 1.442695, %v3036_v2  ;;  %v5853_v31 = vpop.eup %4343  ;;  %v2646_v7 = vrot.slane %v4288_v42, 4 }
 0x9f3   : > { %v3031_v33 = vpop.xlane.xlu0 %3030  ;;  %v3059_v59 = vsel %vm1320_vm2, %v5853_v31, 0.0 }
 0x9f4   : > { %4347 = vpow2.f32 %v3048_v27  ;;  %v3039_v44 = vsub.f32 %v3007_v28, %v3031_v33  ;;  %3060 = vadd.xlane.f32.xlu1 %v3059_v59  ;;  %v2702_v28 = vrot.slane %v4287_v0, 4 }
 0x9f6   : > { %v5857_v63 = vpop.eup %4345  ;;  %v3054_v17 = vmul.f32 1.442695, %v3039_v44 }
 0x9f7   : > { %v3025_v4 = vpop.xlane.xlu1 %3024  ;;  %v3074_v11 = vsel %vm1320_vm2, %v5857_v63, 0.0 }
 0x9f8   : > { %4349 = vpow2.f32 %v3054_v17  ;;  %v3037_v45 = vsub.f32 %v3005_v32, %v3025_v4  ;;  %3075 = vadd.xlane.f32.xlu0 %v3074_v11 }
 0x9fa   : > { %v5861_v52 = vpop.eup %4347  ;;  %v3050_v51 = vmul.f32 1.442695, %v3037_v45 }
 0x9fb   : > { %v3068_v5 = vsel %vm1320_vm2, %v5861_v52, 0.0 }
 0x9fc   : > { %4351 = vpow2.f32 %v3050_v51  ;;  %3069 = vadd.xlane.f32.xlu2 %v3068_v5 }
 0x9fd   : > { %4353 = vpow2.f32 %v3046_v9 }
 0x9fe   : > { %v5866_v48 = vpop.eup %4349 }
 0x9ff   : > { %v3077_v29 = vsel %vm1320_vm2, %v5866_v48, 0.0 }
 0xa00   : > { %3078 = vadd.xlane.f32.xlu0 %v3077_v29 }
 0xa02   : > { %v5870_v13 = vpop.eup %4351 }
 0xa03   : > { %v3071_v10 = vsel %vm1320_vm2, %v5870_v13, 0.0  ;;  %v5874_v26 = vpop.eup %4353 }
 0xa04   : > { %3072 = vadd.xlane.f32.xlu2 %v3071_v10  ;;  %v3065_v30 = vsel %vm1320_vm2, %v5874_v26, 0.0 }
 0xa06   : > { %v4296_v22 = vpop.permute.xlu0 %4295 }
 0xa07   : > { %v4298_v43 = vunpack.i.h.bf16 %v4296_v22  ;;  %v4297_v18 = vunpack.i.l.bf16 %v4296_v22 }
 0xa09   : > { %v2644_v54 = vrot.slane %v4298_v43, 4  ;;  %v2700_v21 = vrot.slane %v4297_v18, 4  ;;  %v2647_v8 = vsel %vm378_vm0, %v4298_v43, %v2646_v7  ;;  %v2703_v3 = vsel %vm378_vm0, %v4297_v18, %v2702_v28 }
 0xa0a   : > { %v2655_v35 = vperm.slane %v2647_v8, %v4597_v53  ;;  %v2711_v57 = vperm.slane %v2703_v3, %v4597_v53 }
 0xa0b   : > { %v2645_v32 = vsel %vm378_vm0, %v2644_v54, %v4288_v42  ;;  %v2701_v37 = vsel %vm378_vm0, %v2700_v21, %v4287_v0 }
 0xa0c   : > { %3066 = vadd.xlane.f32.xlu2 %v3065_v30  ;;  %v2651_v24 = vperm.slane %v2645_v32, %v4597_v53  ;;  %v2707_v41 = vperm.slane %v2701_v37, %v4597_v53  ;;  %v2668_v25 = vrot.slane %v2655_v35, 4  ;;  %v2724_v47 = vrot.slane %v2711_v57, 4 }
 0xa0e   : > { %v2656_v61 = vrot.slane %v2651_v24, 4  ;;  %v2712_v2 = vrot.slane %v2707_v41, 4 }
 0xa0f   : > { %v4291_v19 = vpop.permute.xlu1 %4290 }
 0xa10   : > { %v4293_v40 = vunpack.i.h.bf16 %v4291_v19  ;;  %v4292_v46 = vunpack.i.l.bf16 %v4291_v19 }
 0xa12   : > { %v2632_v12 = vrot.slane %v4293_v40, 4  ;;  %v2635_v16 = vsel %vm378_vm0, %v4293_v40, %v2634_v38  ;;  %v2688_v58 = vrot.slane %v4292_v46, 4  ;;  %v2691_v23 = vsel %vm378_vm0, %v4292_v46, %v2690_v60 }
 0xa13   : > { %v2643_v36 = vperm.slane %v2635_v16, %v4597_v53  ;;  %v2699_v50 = vperm.slane %v2691_v23, %v4597_v53 }
 0xa14   : > { %v2633_v27 = vsel %vm378_vm0, %v2632_v12, %v5838_v1  ;;  %v2689_v33 = vsel %vm378_vm0, %v2688_v58, %v5836_v20 }
 0xa15   : > { %v2639_v44 = vperm.slane %v2633_v27, %v4597_v53  ;;  %v2670_v59 = vrot.slane %v2643_v36, 4  ;;  %v2669_v17 = vsel %vm378_vm0, %v2668_v25, %v2643_v36  ;;  %v2695_v34 = vperm.slane %v2689_v33, %v4597_v53 }
 0xa16   : > { %v2675_v4 = vperm.slane %v2669_v17, %v4616_v15  ;;  %v2725_v11 = vsel %vm378_vm0, %v2724_v47, %v2699_v50  ;;  %v2726_v45 = vrot.slane %v2699_v50, 4 }
 0xa17   : > { %v2658_v55 = vrot.slane %v2639_v44, 4  ;;  %v2657_v51 = vsel %vm378_vm0, %v2656_v61, %v2639_v44  ;;  %v2671_v1 = vsel %vm378_vm0, %v2655_v35, %v2670_v59  ;;  %v2713_v5 = vsel %vm378_vm0, %v2712_v2, %v2695_v34 }
 0xa18   : > { %v2663_v20 = vperm.slane %v2657_v51, %v4616_v15  ;;  %v2679_v9 = vperm.slane %v2671_v1, %v4616_v15  ;;  %v2684_v29 = vrot.slane %v2675_v4, 4  ;;  %v2714_v39 = vrot.slane %v2695_v34, 4 }
 0xa19   : > { %v2659_v10 = vsel %vm378_vm0, %v2651_v24, %v2658_v55  ;;  %v2719_v42 = vperm.slane %v2713_v5, %v4616_v15  ;;  %v2727_v0 = vsel %vm378_vm0, %v2711_v57, %v2726_v45  ;;  %v2731_v22 = vperm.slane %v2725_v11, %v4616_v15 }
 0xa1a   : > { %v2667_v43 = vperm.slane %v2659_v10, %v4616_v15  ;;  %v2680_v18 = vrot.slane %v2663_v20, 4  ;;  %v2685_v54 = vsel %vm378_vm0, 0.0, %v2684_v29  ;;  %v2686_v21 = vrot.slane %v2679_v9, 4 }
 0xa1b   : > { %v2715_v7 = vsel %vm378_vm0, %v2707_v41, %v2714_v39  ;;  %v2735_v28 = vperm.slane %v2727_v0, %v4616_v15  ;;  %v2736_v30 = vrot.slane %v2719_v42, 4  ;;  %v2740_v8 = vrot.slane %v2731_v22, 4 }
 0xa1c   : > { %v2682_v3 = vrot.slane %v2667_v43, 4  ;;  %v2687_v32 = vsel %vm378_vm0, 0.0, %v2686_v21  ;;  %v2723_v37 = vperm.slane %v2715_v7, %v4616_v15  ;;  %v2681_v35 = vsel %vm378_vm0, 0.0, %v2680_v18 }
 0xa1d   : > { %v2741_v57 = vsel %vm378_vm0, 0.0, %v2740_v8  ;;  %v2742_v38 = vrot.slane %v2735_v28, 4  ;;  %v2760_v60 = vrot.slane %v2687_v32, 4  ;;  %v2737_v19 = vsel %vm378_vm0, 0.0, %v2736_v30 }
 0xa1e   : > { %v2738_v24 = vrot.slane %v2723_v37, 4  ;;  %v2683_v41 = vsel %vm378_vm0, 0.0, %v2682_v3  ;;  %v2744_v40 = vsel %vm378_vm0, %v2682_v3, %v2663_v20  ;;  %v2755_v46 = vsel %vm378_vm0, %v2686_v21, %v2675_v4 }
 0xa1f   : > { %v2743_v12 = vsel %vm378_vm0, 0.0, %v2742_v38  ;;  %v2809_v16 = vsel %vm378_vm0, %v2742_v38, %v2731_v22  ;;  %v2748_v58 = vperm.slane %v2744_v40, %v4597_v53  ;;  %v2749_v23 = vrot.slane %v2683_v41, 4 }
 0xa20   : > { %v2814_v25 = vrot.slane %v2743_v12, 4  ;;  %v2739_v47 = vsel %vm378_vm0, 0.0, %v2738_v24  ;;  %v2798_v36 = vsel %vm378_vm0, %v2738_v24, %v2719_v42  ;;  %v2813_v50 = vperm.slane %v2809_v16, %v4597_v53 }
 0xa21   : > { %v2802_v61 = vperm.slane %v2798_v36, %v4597_v53  ;;  %v2803_v2 = vrot.slane %v2739_v47, 4  ;;  %v2750_v27 = vsel %vm378_vm0, %v2749_v23, %v2681_v35  ;;  %v2759_v33 = vperm.slane %v2755_v46, %v4597_v53 }
 0xa22   : > { %v2815_v44 = vsel %vm378_vm0, %v2814_v25, %v2741_v57  ;;  %v2834_v59 = vrot.slane %v2813_v50, 4  ;;  %v2754_v17 = vperm.slane %v2750_v27, %v4597_v53  ;;  %v2761_v34 = vsel %vm378_vm0, %v2760_v60, %v2685_v54 }
 0xa23   : > { %v2804_v4 = vsel %vm378_vm0, %v2803_v2, %v2737_v19  ;;  %v2819_v11 = vperm.slane %v2815_v44, %v4597_v53  ;;  %v2822_v45 = vrot.slane %v2802_v61, 4  ;;  %v2765_v55 = vperm.slane %v2761_v34, %v4597_v53 }
 0xa24   : > { %v2808_v51 = vperm.slane %v2804_v4, %v4597_v53  ;;  %v2768_v1 = vrot.slane %v2748_v58, 4  ;;  %v2780_v5 = vrot.slane %v2759_v33, 4  ;;  %v2766_v29 = vrot.slane %v2754_v17, 4 }
 0xa25   : > { %v2835_v20 = vsel %vm378_vm0, %v2819_v11, %v2834_v59  ;;  %v2832_v9 = vrot.slane %v2819_v11, 4  ;;  %v2778_v39 = vrot.slane %v2765_v55, 4 }
 0xa26   : > { %v2823_v10 = vsel %vm378_vm0, %v2808_v51, %v2822_v45  ;;  %v2843_v42 = vperm.slane %v2835_v20, %v4616_v15  ;;  %v2820_v0 = vrot.slane %v2808_v51, 4  ;;  %v2769_v22 = vsel %vm378_vm0, %v2754_v17, %v2768_v1 }
 0xa27   : > { %v2831_v43 = vperm.slane %v2823_v10, %v4616_v15  ;;  %v2833_v18 = vsel %vm378_vm0, %v2832_v9, %v2813_v50  ;;  %v2777_v54 = vperm.slane %v2769_v22, %v4616_v15  ;;  %v2781_v21 = vsel %vm378_vm0, %v2765_v55, %v2780_v5 }
 0xa28   : > { %v2848_v7 = vrot.slane %v2843_v42, 4  ;;  %v2821_v28 = vsel %vm378_vm0, %v2820_v0, %v2802_v61  ;;  %v2839_v30 = vperm.slane %v2833_v18, %v4616_v15  ;;  %v2789_v8 = vperm.slane %v2781_v21, %v4616_v15 }
 0xa29   : > { %v2827_v3 = vperm.slane %v2821_v28, %v4616_v15  ;;  %v2850_v32 = vrot.slane %v2831_v43, 4  ;;  %v2767_v37 = vsel %vm378_vm0, %v2766_v29, %v2748_v58  ;;  %v2779_v35 = vsel %vm378_vm0, %v2778_v39, %v2759_v33 }
 0xa2a   : > { %v2849_v57 = vsel %vm378_vm0, %v2848_v7, %v2831_v43  ;;  %v2844_v38 = vrot.slane %v2839_v30, 4  ;;  %v2794_v60 = vrot.slane %v2789_v8, 4  ;;  %v2773_v19 = vperm.slane %v2767_v37, %v4616_v15 }
 0xa2b   : > { %3174 = vmatpush.msra.mxu3 %v2849_v57  ;;  %v2851_v24 = vsel %vm378_vm0, %v2843_v42, %v2850_v32  ;;  %v2785_v41 = vperm.slane %v2779_v35, %v4616_v15  ;;  %v2846_v40 = vrot.slane %v2827_v3, 4  ;;  %v2796_v46 = vrot.slane %v2777_v54, 4 }
 0xa2c   : > { %v2845_v12 = vsel %vm378_vm0, %v2844_v38, %v2827_v3  ;;  %v2795_v16 = vsel %vm378_vm0, %v2794_v60, %v2777_v54  ;;  %3203 = vmatpush.msrb.mxu0 %v2851_v24  ;;  %v2792_v58 = vrot.slane %v2773_v19, 4 }
 0xa2d   : > { %3116 = vmatpush.msra.mxu1 %v2845_v12  ;;  %3175 = vmatpush.msra.mxu3 %v2795_v16  ;;  %v2790_v23 = vrot.slane %v2785_v41, 4  ;;  %v2847_v25 = vsel %vm378_vm0, %v2839_v30, %v2846_v40  ;;  %v2797_v47 = vsel %vm378_vm0, %v2789_v8, %v2796_v46  ;;  %v4169_v12 = vld [vmem:[%s6471_s2 + $0x4f8] sm:$0xff]  ;;  %v4168_v16 = vld [vmem:[%s6471_s2 + $0x4f0] sm:$0xff] }
 0xa2e   : > { %3145 = vmatpush.msra.mxu2 %v2847_v25  ;;  %3204 = vmatpush.msrb.mxu0 %v2797_v47  ;;  %v2793_v50 = vsel %vm378_vm0, %v2785_v41, %v2792_v58 }
 0xa2f   : > { %v2791_v36 = vsel %vm378_vm0, %v2790_v23, %v2773_v19 }
 0xa30   : > { %3117 = vmatpush.msra.mxu1 %v2791_v36  ;;  %3146 = vmatpush.msra.mxu2 %v2793_v50  ;;  %v4167_v50 = vld [vmem:[%s6471_s2 + $0x4e8] sm:$0xff] }
 0xa32   : > { %3480 = vmatpush.msrb.mxu1 %v4169_v12 }
 0xa34   : > { %3481 = vmatpush.msrb.mxu1 %v4168_v16 }
 0xa36   : > { %3482 = vmatpush.msrb.mxu1 %v4167_v50 }
 0xa5b   : > { %v3064_v61 = vpop.xlane.xlu0 %3063 }
 0xa5c   : > { %4355 = vrcp.f32 %v3064_v61 }
 0xa5f   : > { %v3058_v2 = vpop.xlane.xlu1 %3057 }
 0xa60   : > { %4357 = vrcp.f32 %v3058_v2 }
 0xa62   : > { %v4356_v27 = vpop.eup %4355 }
 0xa63   : > { %v3090_v33 = vmul.f32 %v4356_v27, %v5845_v6 }
 0xa65   : > { %4148 = vmatmul.msk.f32.vlgmr.msra.gmra.mxu2 %vm1320_vm2, %v3090_v33 }
 0xa66   : > { %v4358_v44 = vpop.eup %4357 }
 0xa67   : > { %v3088_v59 = vmul.f32 %v4358_v44, %v5849_v14  ;;  %v3061_v17 = vpop.xlane.xlu1 %3060 }
 0xa68   : > { %4359 = vrcp.f32 %v3061_v17  ;;  %v4166_v17 = vld [vmem:[%s6471_s2 + $0x4e0] sm:$0xff] }
 0xa69   : > { %4146 = vmatmul.msk.f32.vlgmr.msra.gmra.mxu1 %vm1320_vm2, %v3088_v59 }
 0xa6a   : > { %3483 = vmatpush.msrb.mxu1 %v4166_v17 }
 0xa6b   : > { %v3076_v34 = vpop.xlane.xlu0 %3075 }
 0xa6c   : > { %4361 = vrcp.f32 %v3076_v34 }
 0xa6e   : > { %v4360_v4 = vpop.eup %4359 }
 0xa6f   : > { %v3070_v11 = vpop.xlane.xlu2 %3069  ;;  %v3089_v45 = vmul.f32 %v4360_v4, %v5853_v31 }
 0xa70   : > { %4363 = vrcp.f32 %v3070_v11 }
 0xa71   : > { %4147 = vmatmul.msk.f32.gmra.mxu1 %vm1320_vm2, %v3089_v45 }
 0xa72   : > { %v4362_v55 = vpop.eup %4361 }
 0xa73   : > { %v3094_v6 = vmul.f32 %v4362_v55, %v5857_v63  ;;  %v3079_v51 = vpop.xlane.xlu0 %3078 }
 0xa74   : > { %4365 = vrcp.f32 %v3079_v51 }
 0xa75   : > { %4152 = vmatmul.msk.f32.vlgmr.msrb.gmra.mxu0 %vm1320_vm2, %v3094_v6 }
 0xa76   : > { %v4364_v14 = vpop.eup %4363 }
 0xa77   : > { %v3092_v1 = vmul.f32 %v4364_v14, %v5861_v52  ;;  %v3073_v5 = vpop.xlane.xlu2 %3072 }
 0xa78   : > { %4367 = vrcp.f32 %v3073_v5 }
 0xa79   : > { %4150 = vmatmul.msk.f32.vlgmr.msra.gmra.mxu3 %vm1320_vm2, %v3092_v1 }
 0xa7a   : > { %v4366_v20 = vpop.eup %4365 }
 0xa7b   : > { %v3095_v9 = vmul.f32 %v4366_v20, %v5866_v48 }
 0xa7d   : > { %4153 = vmatmul.msk.f32.gmra.mxu0 %vm1320_vm2, %v3095_v9 }
 0xa7e   : > { %v4368_v31 = vpop.eup %4367 }
 0xa7f   : > { %v3067_v29 = vpop.xlane.xlu2 %3066  ;;  %v3093_v63 = vmul.f32 %v4368_v31, %v5870_v13 }
 0xa80   : > { %4369 = vrcp.f32 %v3067_v29 }
 0xa81   : > { %4151 = vmatmul.msk.f32.gmra.mxu3 %vm1320_vm2, %v3093_v63 }
 0xa86   : > { %v4370_v39 = vpop.eup %4369 }
 0xa87   : > { %v3091_v10 = vmul.f32 %v4370_v39, %v5874_v26 }
 0xa89   : > { %4149 = vmatmul.msk.f32.gmra.mxu2 %vm1320_vm2, %v3091_v10 }
 0xae6   : > { %v3119_v43 = vpop.f32.mrf.mxu1 }
 0xae7   : > { %v3214_v13 = vrot.slane %v3119_v43, 4 }
 0xae8   : > { %v3148_v52 = vpop.f32.mrf.mxu2 }
 0xae9   : > { %v3226_v0 = vrot.slane %v3148_v52, 4 }
 0xaee   : > { %v3122_v41 = vpop.f32.mrf.mxu1 }
 0xaef   : > { %v3270_v61 = vrot.slane %v3122_v41, 4 }
 0xaf2   : > { %v3206_v42 = vpop.f32.mrf.mxu0 }
 0xaf3   : > { %v3224_v22 = vrot.slane %v3206_v42, 4  ;;  %v3227_v48 = vsel %vm378_vm0, %v3206_v42, %v3226_v0 }
 0xaf4   : > { %v3235_v54 = vperm.slane %v3227_v48, %v4597_v53 }
 0xaf5   : > { %v3225_v18 = vsel %vm378_vm0, %v3224_v22, %v3148_v52 }
 0xaf6   : > { %v3231_v21 = vperm.slane %v3225_v18, %v4597_v53  ;;  %v3248_v30 = vrot.slane %v3235_v54, 4 }
 0xaf8   : > { %v3236_v32 = vrot.slane %v3231_v21, 4 }
 0xafa   : > { %v3209_v34 = vpop.f32.mrf.mxu0 }
 0xafb   : > { %v3280_v29 = vrot.slane %v3209_v34, 4 }
 0xafc   : > { %v3177_v7 = vpop.f32.mrf.mxu3 }
 0xafd   : > { %v3212_v28 = vrot.slane %v3177_v7, 4  ;;  %v3215_v26 = vsel %vm378_vm0, %v3177_v7, %v3214_v13 }
 0xafe   : > { %v3223_v8 = vperm.slane %v3215_v26, %v4597_v53 }
 0xaff   : > { %v3213_v3 = vsel %vm378_vm0, %v3212_v28, %v3119_v43 }
 0xb00   : > { %v3219_v37 = vperm.slane %v3213_v3, %v4597_v53  ;;  %v3249_v35 = vsel %vm378_vm0, %v3248_v30, %v3223_v8  ;;  %v3250_v57 = vrot.slane %v3223_v8, 4 }
 0xb01   : > { %v3255_v38 = vperm.slane %v3249_v35, %v4616_v15 }
 0xb02   : > { %v3237_v60 = vsel %vm378_vm0, %v3236_v32, %v3219_v37  ;;  %v3238_v19 = vrot.slane %v3219_v37, 4  ;;  %v3251_v24 = vsel %vm378_vm0, %v3235_v54, %v3250_v57 }
 0xb03   : > { %v3243_v40 = vperm.slane %v3237_v60, %v4616_v15  ;;  %v3259_v46 = vperm.slane %v3251_v24, %v4616_v15  ;;  %v3264_v47 = vrot.slane %v3255_v38, 4 }
 0xb04   : > { %v3239_v58 = vsel %vm378_vm0, %v3231_v21, %v3238_v19  ;;  %v3180_v23 = vpop.f32.mrf.mxu3 }
 0xb05   : > { %v3247_v25 = vperm.slane %v3239_v58, %v4616_v15  ;;  %v3266_v36 = vrot.slane %v3259_v46, 4  ;;  %v3268_v2 = vrot.slane %v3180_v23, 4  ;;  %v3260_v27 = vrot.slane %v3243_v40, 4 }
 0xb06   : > { %v3271_v55 = vsel %vm378_vm0, %v3180_v23, %v3270_v61  ;;  %v3265_v51 = vsel %vm378_vm0, 0.0, %v3264_v47 }
 0xb07   : > { %v3262_v33 = vrot.slane %v3247_v25, 4  ;;  %v3267_v44 = vsel %vm378_vm0, 0.0, %v3266_v36  ;;  %v3335_v59 = vsel %vm378_vm0, %v3266_v36, %v3255_v38  ;;  %v3269_v45 = vsel %vm378_vm0, %v3268_v2, %v3122_v41 }
 0xb08   : > { %v3339_v4 = vperm.slane %v3335_v59, %v4597_v53  ;;  %v3340_v11 = vrot.slane %v3267_v44, 4  ;;  %v3275_v14 = vperm.slane %v3269_v45, %v4597_v53  ;;  %v3279_v63 = vperm.slane %v3271_v55, %v4597_v53 }
 0xb09   : > { %v3263_v6 = vsel %vm378_vm0, 0.0, %v3262_v33  ;;  %v3324_v1 = vsel %vm378_vm0, %v3262_v33, %v3243_v40  ;;  %v3261_v39 = vsel %vm378_vm0, 0.0, %v3260_v27 }
 0xb0a   : > { %v3341_v5 = vsel %vm378_vm0, %v3340_v11, %v3265_v51  ;;  %v3328_v20 = vperm.slane %v3324_v1, %v4597_v53  ;;  %v3329_v9 = vrot.slane %v3263_v6, 4  ;;  %v3360_v31 = vrot.slane %v3339_v4, 4 }
 0xb0b   : > { %v3345_v10 = vperm.slane %v3341_v5, %v4597_v53  ;;  %v3294_v54 = vrot.slane %v3275_v14, 4  ;;  %v3306_v28 = vrot.slane %v3279_v63, 4 }
 0xb0c   : > { %v3151_v52 = vpop.f32.mrf.mxu2  ;;  %v3330_v42 = vsel %vm378_vm0, %v3329_v9, %v3261_v39  ;;  %v3348_v0 = vrot.slane %v3328_v20, 4 }
 0xb0d   : > { %v3281_v22 = vsel %vm378_vm0, %v3280_v29, %v3151_v52  ;;  %v3282_v48 = vrot.slane %v3151_v52, 4  ;;  %v3334_v43 = vperm.slane %v3330_v42, %v4597_v53  ;;  %v3361_v18 = vsel %vm378_vm0, %v3345_v10, %v3360_v31 }
 0xb0e   : > { %v3287_v13 = vperm.slane %v3281_v22, %v4597_v53  ;;  %v3369_v21 = vperm.slane %v3361_v18, %v4616_v15  ;;  %v3358_v7 = vrot.slane %v3345_v10, 4 }
 0xb0f   : > { %v3283_v26 = vsel %vm378_vm0, %v3209_v34, %v3282_v48  ;;  %v3349_v30 = vsel %vm378_vm0, %v3334_v43, %v3348_v0  ;;  %v3346_v8 = vrot.slane %v3334_v43, 4 }
 0xb10   : > { %v3291_v3 = vperm.slane %v3283_v26, %v4597_v53  ;;  %v3292_v32 = vrot.slane %v3287_v13, 4  ;;  %v3295_v37 = vsel %vm378_vm0, %v3287_v13, %v3294_v54  ;;  %v3357_v35 = vperm.slane %v3349_v30, %v4616_v15 }
 0xb11   : > { %v3303_v57 = vperm.slane %v3295_v37, %v4616_v15  ;;  %v3374_v38 = vrot.slane %v3369_v21, 4  ;;  %v3347_v60 = vsel %vm378_vm0, %v3346_v8, %v3328_v20  ;;  %v3359_v19 = vsel %vm378_vm0, %v3358_v7, %v3339_v4  ;;  %v4165_v37 = vld [vmem:[%s6471_s2 + $0x4d8] sm:$0xff] }
 0xb12   : > { %v3293_v24 = vsel %vm378_vm0, %v3292_v32, %v3275_v14  ;;  %v3304_v41 = vrot.slane %v3291_v3, 4  ;;  %v3307_v40 = vsel %vm378_vm0, %v3291_v3, %v3306_v28  ;;  %v3376_v46 = vrot.slane %v3357_v35, 4  ;;  %3484 = vmatpush.msrb.mxu1 %v4165_v37 }
 0xb13   : > { %v3299_v12 = vperm.slane %v3293_v24, %v4616_v15  ;;  %v3315_v16 = vperm.slane %v3307_v40, %v4616_v15  ;;  %v3318_v58 = vrot.slane %v3303_v57, 4  ;;  %v3375_v23 = vsel %vm378_vm0, %v3374_v38, %v3357_v35  ;;  %v4163_v35 = vld [vmem:[%s6471_s2 + $0x4c8] sm:$0xff]  ;;  %v4162_v57 = vld [vmem:[%s6471_s2 + $0x4c0] sm:$0xff]  ;;  %v4161_v38 = vld [vmem:[%s6471_s2 + $0x4b8] sm:$0xff] }
 0xb14   : > { %v3305_v25 = vsel %vm378_vm0, %v3304_v41, %v3279_v63  ;;  %3442 = vrot.lane.b32.xlu1 %v3375_v23, %s4392_s12  ;;  %v3377_v47 = vsel %vm378_vm0, %v3369_v21, %v3376_v46  ;;  %v3353_v36 = vperm.slane %v3347_v60, %v4616_v15  ;;  %v3365_v50 = vperm.slane %v3359_v19, %v4616_v15  ;;  %v4160_v60 = vld [vmem:[%s6471_s2 + $0x4b0] sm:$0xff]  ;;  %v4159_v19 = vld [vmem:[%s6471_s2 + $0x4a8] sm:$0xff]  ;;  %v4158_v24 = vld [vmem:[%s6471_s2 + $0x4a0] sm:$0xff] }
 0xb15   : > { %v3311_v61 = vperm.slane %v3305_v25, %v4616_v15  ;;  %v3316_v2 = vrot.slane %v3299_v12, 4  ;;  %v3319_v27 = vsel %vm378_vm0, 0.0, %v3318_v58  ;;  %v3322_v33 = vrot.slane %v3315_v16, 4  ;;  %3450 = vrot.lane.b32.xlu0 %v3377_v47, %s4393_s13  ;;  %v4157_v41 = vld [vmem:[%s6471_s2 + $0x498] sm:$0xff]  ;;  %v4156_v40 = vld [vmem:[%s6471_s2 + $0x490] sm:$0xff]  ;;  %v4155_v46 = vld [vmem:[%s6471_s2 + $0x488] sm:$0xff] }
 0xb16   : > { %v3378_v44 = vsel %vm378_vm0, %v3318_v58, %v3299_v12  ;;  %v3383_v59 = vrot.slane %v3319_v27, 4  ;;  %v3370_v17 = vrot.slane %v3365_v50, 4  ;;  %v3372_v34 = vrot.slane %v3353_v36, 4  ;;  %v4154_v12 = vld [vmem:[%s6471_s2 + $0x480] sm:$0xff] }
 0xb17   : > { %v3317_v4 = vsel %vm378_vm0, 0.0, %v3316_v2  ;;  %v3320_v11 = vrot.slane %v3311_v61, 4  ;;  %v3323_v45 = vsel %vm378_vm0, 0.0, %v3322_v33  ;;  %v3382_v55 = vperm.slane %v3378_v44, %v4597_v53 }
 0xb18   : > { %v3394_v6 = vrot.slane %v3323_v45, 4  ;;  %v3373_v51 = vsel %vm378_vm0, %v3365_v50, %v3372_v34  ;;  %v3384_v14 = vsel %vm378_vm0, %v3383_v59, %v3317_v4  ;;  %v3389_v1 = vsel %vm378_vm0, %v3322_v33, %v3311_v61  ;;  %v6121_v59 = vld [vmem:[%s6472_s3 + $0x10] sm:$0xff] }
 0xb19   : > { %3434 = vrot.lane.b32.xlu2 %v3373_v51, %s4391_s10  ;;  %v3321_v5 = vsel %vm378_vm0, 0.0, %v3320_v11  ;;  %v3388_v20 = vperm.slane %v3384_v14, %v4597_v53  ;;  %v3393_v9 = vperm.slane %v3389_v1, %v4597_v53  ;;  %v3402_v31 = vrot.slane %v3382_v55, 4  ;;  %v4185_v1 = vld [vmem:[%s6471_s2 + $0x578] sm:$0xff] }
 0xb1a   : > { %v3395_v29 = vsel %vm378_vm0, %v3394_v6, %v3321_v5  ;;  %v3371_v63 = vsel %vm378_vm0, %v3370_v17, %v3353_v36  ;;  %v3479_v17 = vperm.slane %v6121_v59, 3  ;;  %v4184_v5 = vld [vmem:[%s6471_s2 + $0x570] sm:$0xff]  ;;  %3573 = vmatpush.msrb.mxu2 %v4185_v1 }
 0xb1b   : > { %v3399_v39 = vperm.slane %v3395_v29, %v4597_v53  ;;  %v3403_v10 = vsel %vm378_vm0, %v3388_v20, %v3402_v31  ;;  %v3414_v52 = vrot.slane %v3393_v9, 4  ;;  %v3400_v42 = vrot.slane %v3388_v20, 4 }
 0xb1c   : > { %v3411_v0 = vperm.slane %v3403_v10, %v4616_v15  ;;  %3574 = vmatpush.msrb.mxu2 %v4184_v5 }
 0xb1d   : > { %v3415_v22 = vsel %vm378_vm0, %v3399_v39, %v3414_v52  ;;  %v3401_v48 = vsel %vm378_vm0, %v3400_v42, %v3382_v55  ;;  %v3412_v43 = vrot.slane %v3399_v39, 4  ;;  %v4183_v42 = vld [vmem:[%s6471_s2 + $0x568] sm:$0xff] }
 0xb1e   : > { %v3423_v18 = vperm.slane %v3415_v22, %v4616_v15  ;;  %v3430_v54 = vrot.slane %v3411_v0, 4  ;;  %v3407_v13 = vperm.slane %v3401_v48, %v4616_v15  ;;  %3575 = vmatpush.msrb.mxu2 %v4183_v42  ;;  %v4181_v22 = vld [vmem:[%s6471_s2 + $0x558] sm:$0xff]  ;;  %v4180_v48 = vld [vmem:[%s6471_s2 + $0x550] sm:$0xff] }
 0xb1f   : > { %v3413_v21 = vsel %vm378_vm0, %v3412_v43, %v3393_v9  ;;  %v4179_v43 = vld [vmem:[%s6471_s2 + $0x548] sm:$0xff] }
 0xb20   : > { %v3431_v53 = vsel %vm378_vm0, %v3423_v18, %v3430_v54  ;;  %v3428_v7 = vrot.slane %v3423_v18, 4  ;;  %v3419_v28 = vperm.slane %v3413_v21, %v4616_v15  ;;  %v3426_v26 = vrot.slane %v3407_v13, 4  ;;  %v4164_v15 = vld [vmem:[%s6471_s2 + $0x4d0] sm:$0xff]  ;;  %v4178_v18 = vld [vmem:[%s6471_s2 + $0x540] sm:$0xff]  ;;  %v4177_v54 = vld [vmem:[%s6471_s2 + $0x538] sm:$0xff] }
 0xb21   : > { %3452 = vrot.lane.b32.xlu1 %v3431_v53, %s4393_s13  ;;  %3485 = vmatpush.msrb.mxu1 %v4164_v15  ;;  %v4176_v53 = vld [vmem:[%s6471_s2 + $0x530] sm:$0xff]  ;;  %v4170_v15 = vld [vmem:[%s6471_s2 + $0x500] sm:$0xff] }
 0xb22   : > { %v3429_v30 = vsel %vm378_vm0, %v3428_v7, %v3411_v0  ;;  %v3424_v8 = vrot.slane %v3419_v28, 4  ;;  %v3427_v3 = vsel %vm378_vm0, %v3419_v28, %v3426_v26  ;;  %v4182_v0 = vld [vmem:[%s6471_s2 + $0x560] sm:$0xff]  ;;  %v4175_v28 = vld [vmem:[%s6471_s2 + $0x528] sm:$0xff] }
 0xb23   : > { %3444 = vrot.lane.b32.xlu0 %v3429_v30, %s4392_s12  ;;  %3436 = vrot.lane.b32.xlu2 %v3427_v3, %s4391_s10  ;;  %v4174_v26 = vld [vmem:[%s6471_s2 + $0x520] sm:$0xff]  ;;  %v4173_v30 = vld [vmem:[%s6471_s2 + $0x518] sm:$0xff] }
 0xb24   : > { %v3425_v32 = vsel %vm378_vm0, %v3424_v8, %v3407_v13  ;;  %3486 = vmatpush.msrb.mxu1 %v4163_v35  ;;  %3576 = vmatpush.msrb.mxu2 %v4182_v0  ;;  %v4172_v8 = vld [vmem:[%s6471_s2 + $0x510] sm:$0xff]  ;;  %v4171_v3 = vld [vmem:[%s6471_s2 + $0x508] sm:$0xff]  ;;  %v4201_v35 = vld [vmem:[%s6471_s2 + $0x5f8] sm:$0xff] }
 0xb25   : > { %3616 = vmatpush.msrb.mxu3 %v4201_v35 }
 0xb26   : > { %3487 = vmatpush.msrb.mxu1 %v4162_v57  ;;  %3577 = vmatpush.msrb.mxu2 %v4181_v22  ;;  %v4200_v57 = vld [vmem:[%s6471_s2 + $0x5f0] sm:$0xff] }
 0xb27   : > { %3617 = vmatpush.msrb.mxu3 %v4200_v57 }
 0xb28   : > { %3488 = vmatpush.msrb.mxu1 %v4161_v38  ;;  %3578 = vmatpush.msrb.mxu2 %v4180_v48  ;;  %v3615_v48 = vperm.slane %v6121_v59, 5 }
 0xb2a   : > { %3489 = vmatpush.msrb.mxu1 %v4160_v60  ;;  %3579 = vmatpush.msrb.mxu2 %v4179_v43  ;;  %v4199_v60 = vld [vmem:[%s6471_s2 + $0x5e8] sm:$0xff] }
 0xb2b   : > { %3618 = vmatpush.msrb.mxu3 %v4199_v60 }
 0xb2c   : > { %3490 = vmatpush.msrb.mxu1 %v4159_v19  ;;  %3580 = vmatpush.msrb.mxu2 %v4178_v18 }
 0xb2e   : > { %3491 = vmatpush.msrb.mxu1 %v4158_v24  ;;  %3581 = vmatpush.msrb.mxu2 %v4177_v54 }
 0xb30   : > { %3492 = vmatpush.msrb.mxu1 %v4157_v41  ;;  %3582 = vmatpush.msrb.mxu2 %v4176_v53 }
 0xb32   : > { %3493 = vmatpush.msrb.mxu1 %v4156_v40  ;;  %3583 = vmatpush.msrb.mxu2 %v4175_v28  ;;  %v4198_v40 = vld [vmem:[%s6471_s2 + $0x5e0] sm:$0xff] }
 0xb33   : > { %3619 = vmatpush.msrb.mxu3 %v4198_v40  ;;  %v3703_v40 = vld [vmem:[%s6473_s4 + $0x48] sm:$0xff] }
 0xb34   : > { %3494 = vmatpush.msrb.mxu1 %v4155_v46  ;;  %3584 = vmatpush.msrb.mxu2 %v4174_v26  ;;  %v3709_v26 = vld [vmem:[%s6473_s4 + $0x78] sm:$0xff] }
 0xb35   : > { %3711 = vmatpush.msra.mxu0 %v3709_v26 }
 0xb36   : > { %3495 = vmatpush.msrb.mxu1 %v4154_v12  ;;  %3585 = vmatpush.msrb.mxu2 %v4173_v30 }
 0xb38   : > { %3586 = vmatpush.msrb.mxu2 %v4172_v8 }
 0xb3a   : > { %3587 = vmatpush.msrb.mxu2 %v4171_v3 }
 0xb3c   : > { %3588 = vmatpush.msrb.mxu2 %v4170_v15 }
 0xb73   : > { %v3435_v16 = vpop.permute.xlu2 %3434 }
 0xb74   : > { %v3456_v58 = vsel %vm1160_vm1, %v3371_v63, %v3435_v16  ;;  %v4197_v16 = vld [vmem:[%s6471_s2 + $0x5d8] sm:$0xff] }
 0xb75   : > { %3620 = vmatpush.msrb.mxu3 %v4197_v16 }
 0xb7d   : > { %v3437_v50 = vpop.permute.xlu2 %3436 }
 0xb7e   : > { %v3457_v61 = vsel %vm1160_vm1, %v3425_v32, %v3437_v50 }
 0xb86   : > { %v3443_v23 = vpop.permute.xlu1 %3442 }
 0xb87   : > { %v3458_v25 = vsel %vm1771_vm3, %v3456_v58, %v3443_v23  ;;  %v3451_v47 = vpop.permute.xlu0 %3450  ;;  %v4196_v23 = vld [vmem:[%s6471_s2 + $0x5d0] sm:$0xff] }
 0xb88   : > { %v3460_v36 = vsel %vm1774_vm4, %v3458_v25, %v3451_v47  ;;  %v3549_v25 = vperm.slane %v6121_v59, 6  ;;  %3621 = vmatpush.msrb.mxu3 %v4196_v23  ;;  %v3700_v23 = vld [vmem:[%s6473_s4 + $0x30] sm:$0xff] }
 0xb89   : > { %3496 = vmatmul.f32.vlgmr.msrb.gmra.mxu1 %v3460_v36  ;;  %v4195_v36 = vld [vmem:[%s6471_s2 + $0x5c8] sm:$0xff] }
 0xb8a   : > { %3622 = vmatpush.msrb.mxu3 %v4195_v36  ;;  %v3698_v36 = vld [vmem:[%s6473_s4 + $0x20] sm:$0xff] }
 0xb93   : > { %v3453_v27 = vpop.permute.xlu1 %3452 }
 0xb95   : > { %v3445_v2 = vpop.permute.xlu0 %3444 }
 0xb96   : > { %v3459_v33 = vsel %vm1771_vm3, %v3457_v61, %v3445_v2  ;;  %v3552_v61 = vperm.slane %v6121_v59, 7  ;;  %v4194_v2 = vld [vmem:[%s6471_s2 + $0x5c0] sm:$0xff] }
 0xb97   : > { %v3461_v44 = vsel %vm1774_vm4, %v3459_v33, %v3453_v27  ;;  %3623 = vmatpush.msrb.mxu3 %v4194_v2  ;;  %v3695_v2 = vld [vmem:[%s6473_s4 + $0x8] sm:$0xff] }
 0xb98   : > { %3499 = vmatmul.f32.gmra.mxu1 %v3461_v44  ;;  %v4193_v44 = vld [vmem:[%s6471_s2 + $0x5b8] sm:$0xff] }
 0xb99   : > { %3624 = vmatpush.msrb.mxu3 %v4193_v44  ;;  %v3694_v44 = vld [vmem:[%s6473_s4] sm:$0xff] }
 0xc06   : > { %v3497_v34 = vpop.f32.mrf.mxu1 }
 0xc07   : > { %v3498_v4 = vadd.f32 %v3497_v34, %v3479_v17 }
 0xc09   : > { %v3503_v11 = vadd.f32 %v3498_v4, %v5530_v62  ;;  %v4192_v4 = vld [vmem:[%s6471_s2 + $0x5b0] sm:$0xff] }
 0xc0a   : > { %3625 = vmatpush.msrb.mxu3 %v4192_v4 }
 0xc0b   : > { %v3505_v45 = vmul.f32 %v5252_v56, %v3503_v11 }
 0xc0d   : > { %3507 = vadd.xlane.f32.xlu2 %v3505_v45  ;;  %v4191_v45 = vld [vmem:[%s6471_s2 + $0x5a8] sm:$0xff] }
 0xc0e   : > { %3626 = vmatpush.msrb.mxu3 %v4191_v45 }
 0xc15   : > { %v3500_v55 = vpop.f32.mrf.mxu1 }
 0xc16   : > { %v3501_v6 = vadd.f32 %v3500_v55, %v3479_v17 }
 0xc18   : > { %v3504_v51 = vadd.f32 %v3501_v6, %v5536_v49  ;;  %v4190_v6 = vld [vmem:[%s6471_s2 + $0x5a0] sm:$0xff] }
 0xc19   : > { %3627 = vmatpush.msrb.mxu3 %v4190_v6 }
 0xc1a   : > { %v3506_v14 = vmul.f32 %v5252_v56, %v3504_v51 }
 0xc1c   : > { %3509 = vadd.xlane.f32.xlu0 %v3506_v14  ;;  %v4189_v14 = vld [vmem:[%s6471_s2 + $0x598] sm:$0xff] }
 0xc1d   : > { %3628 = vmatpush.msrb.mxu3 %v4189_v14 }
 0xc80   : > { %v3508_v62 = vpop.xlane.xlu2 %3507 }
 0xc81   : > { %v3511_v20 = vmul.f32 0.03125, %v3508_v62 }
 0xc83   : > { %v3513_v9 = vsub.f32 %v3503_v11, %v3511_v20 }
 0xc85   : > { %v6135_v31 = vmul.f32 %v5252_v56, %v3513_v9 }
 0xc87   : > { %v3517_v49 = vmul.f32 %v6135_v31, %v6135_v31 }
 0xc89   : > { %3519 = vadd.xlane.f32.xlu1 %v3517_v49  ;;  %v4187_v49 = vld [vmem:[%s6471_s2 + $0x588] sm:$0xff] }
 0xc8f   : > { %v3510_v29 = vpop.xlane.xlu0 %3509 }
 0xc90   : > { %v3512_v63 = vmul.f32 0.03125, %v3510_v29  ;;  %v4186_v29 = vld [vmem:[%s6471_s2 + $0x580] sm:$0xff] }
 0xc92   : > { %v3514_v39 = vsub.f32 %v3504_v51, %v3512_v63  ;;  %v3572_v63 = vperm.slane %v6121_v59, 4  ;;  %v3708_v59 = vld [vmem:[%s6473_s4 + $0x70] sm:$0xff] }
 0xc93   : > { %3712 = vmatpush.msra.mxu0 %v3708_v59 }
 0xc94   : > { %v6140_v10 = vmul.f32 %v5252_v56, %v3514_v39 }
 0xc96   : > { %v3518_v52 = vmul.f32 %v6140_v10, %v6140_v10 }
 0xc98   : > { %3521 = vadd.xlane.f32.xlu2 %v3518_v52 }
 0xcfc   : > { %v3520_v13 = vpop.xlane.xlu1 %3519 }
 0xcfd   : > { %v3523_v21 = vmul.f32 0.03125, %v3520_v13 }
 0xcff   : > { %v3525_v7 = vadd.f32 1e-05, %v3523_v21 }
 0xd01   : > { %4371 = vrsqrt.f32 %v3525_v7  ;;  %vm3533_vm1 = vweird.f32 %v3525_v7 }
 0xd07   : > { %v4372_v32 = vpop.eup %4371 }
 0xd08   : > { %v3528_v37 = vmul.f32 %v4372_v32, %v3525_v7  ;;  %vm3534_vm0 = vweird.f32 %v4372_v32 }
 0xd09   : > { %vm3535_vm2 = vmor %vm3533_vm1, %vm3534_vm0 }
 0xd0a   : > { %v3529_v38 = vmul.f32 %v4372_v32, %v3528_v37 }
 0xd0b   : > { %v3522_v19 = vpop.xlane.xlu2 %3521 }
 0xd0c   : > { %v3530_v24 = vmul.f32 0.5, %v3529_v38  ;;  %v3524_v41 = vmul.f32 0.03125, %v3522_v19  ;;  %v3707_v19 = vld [vmem:[%s6473_s4 + $0x68] sm:$0xff] }
 0xd0d   : > { %3713 = vmatpush.msra.mxu0 %v3707_v19  ;;  %v4229_v19 = vld [vmem:[%s6473_s4 + $0x158] sm:$0xff] }
 0xd0e   : > { %v3531_v46 = vsub.f32 1.5, %v3530_v24  ;;  %v3526_v12 = vadd.f32 1e-05, %v3524_v41  ;;  %v3706_v24 = vld [vmem:[%s6473_s4 + $0x60] sm:$0xff]  ;;  %v3705_v41 = vld [vmem:[%s6473_s4 + $0x58] sm:$0xff] }
 0xd0f   : > { %3714 = vmatpush.msra.mxu0 %v3706_v24  ;;  %v4228_v24 = vld [vmem:[%s6473_s4 + $0x150] sm:$0xff] }
 0xd10   : > { %v3532_v58 = vmul.f32 %v4372_v32, %v3531_v46  ;;  %4373 = vrsqrt.f32 %v3526_v12  ;;  %vm3543_vm4 = vweird.f32 %v3526_v12  ;;  %v3702_v46 = vld [vmem:[%s6473_s4 + $0x40] sm:$0xff] }
 0xd11   : > { %3715 = vmatpush.msra.mxu0 %v3705_v41 }
 0xd12   : > { %v3536_v47 = vsel %vm3535_vm2, %v4372_v32, %v3532_v58 }
 0xd13   : > { %v3547_v50 = vmul.f32 %v3536_v47, %v6135_v31  ;;  %v4188_v31 = vld [vmem:[%s6471_s2 + $0x590] sm:$0xff]  ;;  %v3699_v47 = vld [vmem:[%s6473_s4 + $0x28] sm:$0xff] }
 0xd14   : > { %3629 = vmatpush.msrb.mxu3 %v4188_v31 }
 0xd15   : > { %v3550_v27 = vmul.f32 %v3549_v25, %v3547_v50  ;;  %v3697_v50 = vld [vmem:[%s6473_s4 + $0x18] sm:$0xff] }
 0xd16   : > { %v4374_v33 = vpop.eup %4373  ;;  %3630 = vmatpush.msrb.mxu3 %v4187_v49 }
 0xd17   : > { %v3538_v17 = vmul.f32 %v4374_v33, %v3526_v12  ;;  %v3553_v34 = vadd.f32 %v3552_v61, %v3550_v27  ;;  %vm3544_vm3 = vweird.f32 %v4374_v33  ;;  %v3701_v12 = vld [vmem:[%s6473_s4 + $0x38] sm:$0xff] }
 0xd18   : > { %vm3545_vm7 = vmor %vm3543_vm4, %vm3544_vm3  ;;  %3631 = vmatpush.msrb.mxu3 %v4186_v29  ;;  %v4211_v29 = vld [vmem:[%s6473_s4 + $0xc8] sm:$0xff] }
 0xd19   : > { %v3539_v11 = vmul.f32 %v4374_v33, %v3538_v17  ;;  %3589 = vmatmul.f32.vlgmr.msrb.gmra.mxu2 %v3553_v34  ;;  %v4217_v17 = vld [vmem:[%s6473_s4 + $0xf8] sm:$0xff] }
 0xd1a   : > { %3754 = vmatpush.msra.mxu1 %v4217_v17  ;;  %v4249_v17 = vld [vmem:[%s6473_s4 + $0x1f8] sm:$0xff] }
 0xd1b   : > { %v3540_v55 = vmul.f32 0.5, %v3539_v11  ;;  %v4215_v11 = vld [vmem:[%s6473_s4 + $0xe8] sm:$0xff]  ;;  %3842 = vmatpush.msra.mxu3 %v4249_v17 }
 0xd1d   : > { %v3541_v51 = vsub.f32 1.5, %v3540_v55 }
 0xd1f   : > { %v3542_v1 = vmul.f32 %v4374_v33, %v3541_v51  ;;  %v4214_v51 = vld [vmem:[%s6473_s4 + $0xe0] sm:$0xff] }
 0xd21   : > { %v3546_v5 = vsel %vm3545_vm7, %v4374_v33, %v3542_v1 }
 0xd22   : > { %v3548_v62 = vmul.f32 %v3546_v5, %v6140_v10  ;;  %v4081_v5 = vld [vmem:[%s6472_s3 + $0x18] sm:$0xff] }
 0xd23   : > { %v3685_v31 = vperm.slane %v4081_v5, 0 }
 0xd24   : > { %v3551_v20 = vmul.f32 %v3549_v25, %v3548_v62  ;;  %v4213_v62 = vld [vmem:[%s6473_s4 + $0xd8] sm:$0xff] }
 0xd26   : > { %v3554_v9 = vadd.f32 %v3552_v61, %v3551_v20  ;;  %v3696_v61 = vld [vmem:[%s6473_s4 + $0x10] sm:$0xff] }
 0xd28   : > { %3592 = vmatmul.f32.gmra.mxu2 %v3554_v9 }
 0xd9c   : > { %v3590_v39 = vpop.f32.mrf.mxu2 }
 0xd9d   : > { %v3591_v10 = vadd.f32 %v3590_v39, %v3572_v63  ;;  %v3688_v39 = vperm.slane %v4081_v5, 1  ;;  %v4241_v5 = vld [vmem:[%s6473_s4 + $0x1b8] sm:$0xff] }
 0xd9f   : > { %v3596_v52 = vmax.f32 %v3591_v10, 0.0  ;;  %v4210_v10 = vld [vmem:[%s6473_s4 + $0xc0] sm:$0xff] }
 0xda1   : > { %3632 = vmatmul.f32.vlgmr.msrb.gmra.mxu3 %v3596_v52 }
 0xdab   : > { %v3593_v42 = vpop.f32.mrf.mxu2 }
 0xdac   : > { %v3594_v0 = vadd.f32 %v3593_v42, %v3572_v63 }
 0xdae   : > { %v3597_v22 = vmax.f32 %v3594_v0, 0.0  ;;  %v4209_v0 = vld [vmem:[%s6473_s4 + $0xb8] sm:$0xff] }
 0xdb0   : > { %3635 = vmatmul.f32.gmra.mxu3 %v3597_v22 }
 0xe24   : > { %v3633_v43 = vpop.f32.mrf.mxu3 }
 0xe25   : > { %v3634_v18 = vadd.f32 %v3633_v43, %v3615_v48  ;;  %v4208_v43 = vld [vmem:[%s6473_s4 + $0xb0] sm:$0xff] }
 0xe27   : > { %v3639_v54 = vadd.f32 %v3634_v18, %v3553_v34  ;;  %v4216_v34 = vld [vmem:[%s6473_s4 + $0xf0] sm:$0xff] }
 0xe28   : > { %3755 = vmatpush.msra.mxu1 %v4216_v34  ;;  %v4248_v34 = vld [vmem:[%s6473_s4 + $0x1f0] sm:$0xff] }
 0xe29   : > { %v3641_v13 = vmul.f32 %v5252_v56, %v3639_v54  ;;  %3843 = vmatpush.msra.mxu3 %v4248_v34 }
 0xe2a   : > { %3756 = vmatpush.msra.mxu1 %v4215_v11  ;;  %v4246_v11 = vld [vmem:[%s6473_s4 + $0x1e0] sm:$0xff] }
 0xe2b   : > { %3643 = vadd.xlane.f32.xlu0 %v3641_v13 }
 0xe2c   : > { %3757 = vmatpush.msra.mxu1 %v4214_v51 }
 0xe2e   : > { %3758 = vmatpush.msra.mxu1 %v4213_v62 }
 0xe33   : > { %v3636_v21 = vpop.f32.mrf.mxu3 }
 0xe34   : > { %v3637_v53 = vadd.f32 %v3636_v21, %v3615_v48  ;;  %v4206_v21 = vld [vmem:[%s6473_s4 + $0xa0] sm:$0xff] }
 0xe36   : > { %v3640_v7 = vadd.f32 %v3637_v53, %v3554_v9  ;;  %v4212_v9 = vld [vmem:[%s6473_s4 + $0xd0] sm:$0xff] }
 0xe37   : > { %3759 = vmatpush.msra.mxu1 %v4212_v9  ;;  %v4239_v9 = vld [vmem:[%s6473_s4 + $0x1a8] sm:$0xff] }
 0xe38   : > { %v3642_v28 = vmul.f32 %v5252_v56, %v3640_v7 }
 0xe39   : > { %3760 = vmatpush.msra.mxu1 %v4211_v29 }
 0xe3a   : > { %3645 = vadd.xlane.f32.xlu1 %v3642_v28 }
 0xe3b   : > { %3761 = vmatpush.msra.mxu1 %v4210_v10  ;;  %v4235_v10 = vld [vmem:[%s6473_s4 + $0x188] sm:$0xff] }
 0xe3d   : > { %3762 = vmatpush.msra.mxu1 %v4209_v0 }
 0xe3f   : > { %3763 = vmatpush.msra.mxu1 %v4208_v43 }
 0xe9e   : > { %v3644_v30 = vpop.xlane.xlu0 %3643 }
 0xe9f   : > { %v3647_v8 = vmul.f32 0.03125, %v3644_v30 }
 0xea1   : > { %v3649_v3 = vsub.f32 %v3639_v54, %v3647_v8  ;;  %v4207_v54 = vld [vmem:[%s6473_s4 + $0xa8] sm:$0xff] }
 0xea2   : > { %3764 = vmatpush.msra.mxu1 %v4207_v54 }
 0xea3   : > { %v6249_v32 = vmul.f32 %v5252_v56, %v3649_v3  ;;  %v4204_v3 = vld [vmem:[%s6473_s4 + $0x90] sm:$0xff] }
 0xea4   : > { %3765 = vmatpush.msra.mxu1 %v4206_v21 }
 0xea5   : > { %v3653_v37 = vmul.f32 %v6249_v32, %v6249_v32 }
 0xea7   : > { %3655 = vadd.xlane.f32.xlu2 %v3653_v37  ;;  %v4202_v37 = vld [vmem:[%s6473_s4 + $0x80] sm:$0xff] }
 0xead   : > { %v3646_v15 = vpop.xlane.xlu1 %3645 }
 0xeae   : > { %v3648_v35 = vmul.f32 0.03125, %v3646_v15  ;;  %v4233_v15 = vld [vmem:[%s6473_s4 + $0x178] sm:$0xff] }
 0xeaf   : > { %3795 = vmatpush.msra.mxu2 %v4233_v15 }
 0xeb0   : > { %v3650_v57 = vsub.f32 %v3640_v7, %v3648_v35  ;;  %v4205_v7 = vld [vmem:[%s6473_s4 + $0x98] sm:$0xff]  ;;  %v4232_v35 = vld [vmem:[%s6473_s4 + $0x170] sm:$0xff] }
 0xeb1   : > { %3766 = vmatpush.msra.mxu1 %v4205_v7  ;;  %3796 = vmatpush.msra.mxu2 %v4232_v35 }
 0xeb2   : > { %v6254_v38 = vmul.f32 %v5252_v56, %v3650_v57  ;;  %v3704_v56 = vld [vmem:[%s6473_s4 + $0x50] sm:$0xff]  ;;  %v4231_v57 = vld [vmem:[%s6473_s4 + $0x168] sm:$0xff] }
 0xeb3   : > { %3716 = vmatpush.msra.mxu0 %v3704_v56  ;;  %3767 = vmatpush.msra.mxu1 %v4204_v3  ;;  %v4227_v56 = vld [vmem:[%s6473_s4 + $0x148] sm:$0xff] }
 0xeb4   : > { %v3654_v60 = vmul.f32 %v6254_v38, %v6254_v38  ;;  %3797 = vmatpush.msra.mxu2 %v4231_v57 }
 0xeb5   : > { %3717 = vmatpush.msra.mxu0 %v3703_v40 }
 0xeb6   : > { %3657 = vadd.xlane.f32.xlu0 %v3654_v60  ;;  %v6372_v60 = vld [vmem:[%s6474_s5] sm:$0xff] }
 0xeb7   : > { %3718 = vmatpush.msra.mxu0 %v3702_v46  ;;  %v3710_v41 = vperm.slane %v6372_v60, 0  ;;  %v4226_v46 = vld [vmem:[%s6473_s4 + $0x140] sm:$0xff]  ;;  %v3753_v51 = vperm.slane %v6372_v60, 1 }
 0xeb9   : > { %3719 = vmatpush.msra.mxu0 %v3701_v12 }
 0xebb   : > { %3720 = vmatpush.msra.mxu0 %v3700_v23  ;;  %v4224_v23 = vld [vmem:[%s6473_s4 + $0x130] sm:$0xff] }
 0xebd   : > { %3721 = vmatpush.msra.mxu0 %v3699_v47  ;;  %v4222_v47 = vld [vmem:[%s6473_s4 + $0x120] sm:$0xff] }
 0xebf   : > { %3722 = vmatpush.msra.mxu0 %v3698_v36  ;;  %v4221_v36 = vld [vmem:[%s6473_s4 + $0x118] sm:$0xff] }
 0xec1   : > { %3723 = vmatpush.msra.mxu0 %v3697_v50  ;;  %v4220_v50 = vld [vmem:[%s6473_s4 + $0x110] sm:$0xff] }
 0xec3   : > { %3724 = vmatpush.msra.mxu0 %v3696_v61 }
 0xec5   : > { %3725 = vmatpush.msra.mxu0 %v3695_v2 }
 0xec7   : > { %3726 = vmatpush.msra.mxu0 %v3694_v44  ;;  %v4218_v44 = vld [vmem:[%s6473_s4 + $0x100] sm:$0xff] }
 0xf1a   : > { %v3656_v16 = vpop.xlane.xlu2 %3655 }
 0xf1b   : > { %v3659_v58 = vmul.f32 0.03125, %v3656_v16  ;;  %v4225_v16 = vld [vmem:[%s6473_s4 + $0x138] sm:$0xff] }
 0xf1d   : > { %v3661_v25 = vadd.f32 1e-05, %v3659_v58 }
 0xf1f   : > { %4375 = vrsqrt.f32 %v3661_v25  ;;  %vm3669_vm9 = vweird.f32 %v3661_v25 }
 0xf25   : > { %v4376_v27 = vpop.eup %4375 }
 0xf26   : > { %v3664_v33 = vmul.f32 %v4376_v27, %v3661_v25  ;;  %vm3670_vm8 = vweird.f32 %v4376_v27  ;;  %v4223_v25 = vld [vmem:[%s6473_s4 + $0x128] sm:$0xff] }
 0xf27   : > { %vm3671_vm10 = vmor %vm3669_vm9, %vm3670_vm8 }
 0xf28   : > { %v3665_v4 = vmul.f32 %v4376_v27, %v3664_v33  ;;  %v4219_v33 = vld [vmem:[%s6473_s4 + $0x108] sm:$0xff] }
 0xf29   : > { %v3658_v45 = vpop.xlane.xlu0 %3657 }
 0xf2a   : > { %v3666_v55 = vmul.f32 0.5, %v3665_v4  ;;  %v3660_v6 = vmul.f32 0.03125, %v3658_v45  ;;  %v4247_v4 = vld [vmem:[%s6473_s4 + $0x1e8] sm:$0xff]  ;;  %v4245_v45 = vld [vmem:[%s6473_s4 + $0x1d8] sm:$0xff] }
 0xf2b   : > { %3844 = vmatpush.msra.mxu3 %v4247_v4 }
 0xf2c   : > { %v3667_v14 = vsub.f32 1.5, %v3666_v55  ;;  %v3662_v1 = vadd.f32 1e-05, %v3660_v6  ;;  %v4244_v55 = vld [vmem:[%s6473_s4 + $0x1d0] sm:$0xff]  ;;  %v4243_v6 = vld [vmem:[%s6473_s4 + $0x1c8] sm:$0xff] }
 0xf2d   : > { %3845 = vmatpush.msra.mxu3 %v4246_v11 }
 0xf2e   : > { %v3668_v20 = vmul.f32 %v4376_v27, %v3667_v14  ;;  %4377 = vrsqrt.f32 %v3662_v1  ;;  %vm3679_vm12 = vweird.f32 %v3662_v1  ;;  %v4242_v14 = vld [vmem:[%s6473_s4 + $0x1c0] sm:$0xff] }
 0xf2f   : > { %3846 = vmatpush.msra.mxu3 %v4245_v45 }
 0xf30   : > { %v3672_v49 = vsel %vm3671_vm10, %v4376_v27, %v3668_v20  ;;  %v4240_v20 = vld [vmem:[%s6473_s4 + $0x1b0] sm:$0xff] }
 0xf31   : > { %v3683_v63 = vmul.f32 %v3672_v49, %v6249_v32  ;;  %v4203_v32 = vld [vmem:[%s6473_s4 + $0x88] sm:$0xff]  ;;  %3847 = vmatpush.msra.mxu3 %v4244_v55  ;;  %v4237_v49 = vld [vmem:[%s6473_s4 + $0x198] sm:$0xff] }
 0xf32   : > { %3768 = vmatpush.msra.mxu1 %v4203_v32 }
 0xf33   : > { %v3686_v52 = vmul.f32 %v3685_v31, %v3683_v63  ;;  %3848 = vmatpush.msra.mxu3 %v4243_v6 }
 0xf34   : > { %v4378_v42 = vpop.eup %4377  ;;  %3769 = vmatpush.msra.mxu1 %v4202_v37 }
 0xf35   : > { %v3674_v22 = vmul.f32 %v4378_v42, %v3662_v1  ;;  %v3689_v48 = vadd.f32 %v3688_v39, %v3686_v52  ;;  %vm3680_vm11 = vweird.f32 %v4378_v42  ;;  %3849 = vmatpush.msra.mxu3 %v4242_v14  ;;  %v4234_v52 = vld [vmem:[%s6473_s4 + $0x180] sm:$0xff] }
 0xf36   : > { %vm3681_vm13 = vmor %vm3679_vm12, %vm3680_vm11 }
 0xf37   : > { %v3675_v18 = vmul.f32 %v4378_v42, %v3674_v22  ;;  %3727 = vmatmul.f32.vlgmr.msra.gmra.mxu0 %v3689_v48  ;;  %3691 = vst [vmem:[%s300_s20] sm:$0xff] %v3689_v48  ;;  %3850 = vmatpush.msra.mxu3 %v4241_v5 }
 0xf39   : > { %v3676_v13 = vmul.f32 0.5, %v3675_v18  ;;  %3851 = vmatpush.msra.mxu3 %v4240_v20 }
 0xf3b   : > { %v3677_v53 = vsub.f32 1.5, %v3676_v13  ;;  %3852 = vmatpush.msra.mxu3 %v4239_v9 }
 0xf3d   : > { %v3678_v28 = vmul.f32 %v4378_v42, %v3677_v53  ;;  %v3841_v53 = vperm.slane %v6372_v60, 3 }
 0xf3f   : > { %v3682_v26 = vsel %vm3681_vm13, %v4378_v42, %v3678_v28  ;;  %v3794_v42 = vperm.slane %v6372_v60, 2 }
 0xf40   : > { %v3684_v59 = vmul.f32 %v3682_v26, %v6254_v38  ;;  %v4230_v38 = vld [vmem:[%s6473_s4 + $0x160] sm:$0xff] }
 0xf41   : > { %3798 = vmatpush.msra.mxu2 %v4230_v38 }
 0xf42   : > { %v3687_v30 = vmul.f32 %v3685_v31, %v3684_v59  ;;  %v4238_v31 = vld [vmem:[%s6473_s4 + $0x1a0] sm:$0xff] }
 0xf43   : > { %3799 = vmatpush.msra.mxu2 %v4229_v19  ;;  %3853 = vmatpush.msra.mxu3 %v4238_v31 }
 0xf44   : > { %v3690_v8 = vadd.f32 %v3688_v39, %v3687_v30  ;;  %v4236_v39 = vld [vmem:[%s6473_s4 + $0x190] sm:$0xff] }
 0xf45   : > { %3800 = vmatpush.msra.mxu2 %v4228_v24  ;;  %3854 = vmatpush.msra.mxu3 %v4237_v49 }
 0xf46   : > { %3692 = vst [vmem:[%s300_s20 + $0x8] sm:$0xff] %v3690_v8  ;;  %3730 = vmatmul.f32.gmra.mxu0 %v3690_v8 }
 0xf47   : > { %3801 = vmatpush.msra.mxu2 %v4227_v56  ;;  %3855 = vmatpush.msra.mxu3 %v4236_v39 }
 0xf49   : > { %3802 = vmatpush.msra.mxu2 %v4226_v46  ;;  %3856 = vmatpush.msra.mxu3 %v4235_v10 }
 0xf4b   : > { %3803 = vmatpush.msra.mxu2 %v4225_v16  ;;  %3857 = vmatpush.msra.mxu3 %v4234_v52 }
 0xf4d   : > { %3804 = vmatpush.msra.mxu2 %v4224_v23 }
 0xf4f   : > { %3805 = vmatpush.msra.mxu2 %v4223_v25 }
 0xf51   : > { %3806 = vmatpush.msra.mxu2 %v4222_v47 }
 0xf53   : > { %3807 = vmatpush.msra.mxu2 %v4221_v36 }
 0xf55   : > { %3808 = vmatpush.msra.mxu2 %v4220_v50 }
 0xf57   : > { %3809 = vmatpush.msra.mxu2 %v4219_v33 }
 0xf59   : > { %3810 = vmatpush.msra.mxu2 %v4218_v44 }
 0xfb4   : > { %v3728_v40 = vpop.f32.mrf.mxu0 }
 0xfb5   : > { %v3729_v12 = vadd.f32 %v3728_v40, %v3710_v41 }
 0xfb7   : > { %v3734_v58 = vmax.f32 %v3729_v12, 0.0 }
 0xfb9   : > { %3770 = vmatmul.f32.vlgmr.msra.gmra.mxu1 %v3734_v58 }
 0xfc3   : > { %v3731_v61 = vpop.f32.mrf.mxu0 }
 0xfc4   : > { %v3732_v2 = vadd.f32 %v3731_v61, %v3710_v41 }
 0xfc6   : > { %v3735_v27 = vmax.f32 %v3732_v2, 0.0 }
 0xfc8   : > { %3773 = vmatmul.f32.gmra.mxu1 %v3735_v27 }
0x1036   : > { %v3771_v1 = vpop.f32.mrf.mxu1 }
0x1037   : > { %v3772_v62 = vadd.f32 %v3771_v1, %v3753_v51 }
0x1039   : > { %3811 = vmatmul.f32.vlgmr.msra.gmra.mxu2 %v3772_v62 }
0x1045   : > { %v3774_v29 = vpop.f32.mrf.mxu1 }
0x1046   : > { %v3775_v63 = vadd.f32 %v3774_v29, %v3753_v51 }
0x1048   : > { %3814 = vmatmul.f32.gmra.mxu2 %v3775_v63 }
0x10bc   : > { %v3812_v0 = vpop.f32.mrf.mxu2 }
0x10bd   : > { %v3813_v22 = vadd.f32 %v3812_v0, %v3794_v42 }
0x10bf   : > { %vm3818_vm14 = vcmp.gt.f32.partialorder %v3813_v22, 0.0  ;;  %v3820_v48 = vmul.f32 0.1, %v3813_v22 }
0x10c1   : > { %v3822_v43 = vsel %vm3818_vm14, %v3813_v22, %v3820_v48 }
0x10c2   : > { %3858 = vmatmul.f32.vlgmr.msra.gmra.mxu3 %v3822_v43 }
0x10cb   : > { %v3815_v18 = vpop.f32.mrf.mxu2 }
0x10cc   : > { %v3816_v54 = vadd.f32 %v3815_v18, %v3794_v42 }
0x10ce   : > { %vm3819_vm15 = vcmp.gt.f32.partialorder %v3816_v54, 0.0  ;;  %v3821_v13 = vmul.f32 0.1, %v3816_v54 }
0x10d0   : > { %v3823_v21 = vsel %vm3819_vm15, %v3816_v54, %v3821_v13 }
0x10d1   : > { %3861 = vmatmul.f32.gmra.mxu3 %v3823_v21 }
0x1145   : > { %v3859_v7 = vpop.f32.mrf.mxu3 }
0x1146   : > { %v3860_v28 = vadd.f32 %v3859_v7, %v3841_v53 }
0x1148   : > { %3865 = vst [vmem:[%s305_s21] sm:$0xff] %v3860_v28 }
0x1154   : > { %v3862_v26 = vpop.f32.mrf.mxu3 }
0x1155   : > { %v3863_v59 = vadd.f32 %v3862_v26, %v3841_v53 }
0x1157   : > { %3866 = vst [vmem:[%s305_s21 + $0x8] sm:$0xff] %v3863_v59 }
0x1158 PF: > { %s18_s24 = sadd.s32 1, %s4389_s24  }
0x1159   : > { %p15_p4 = scmp.ge.s32.totalorder %s18_s24, 4  }
0x115b   :  { %17 = sbr.rel (!%p15_p4) target bundleno = 1 (0x1), region = 104 }

</bundles_post_ra>
